<compile_context>
chip_gen: v7x
topology: tpu7x:2x2x1
jax: 0.10.0
libtpu: 0.0.40
codegen_flags: <defaults>
</compile_context>

<pallas_src>
import functools
import math

import jax
import jax.numpy as jnp
from jax import lax
from jax.experimental import pallas as pl
from jax.experimental.pallas import tpu as pltpu

_SQRT2 = 1.4142135623730951


# ----------------------------------------------------------------------------
# Packed-constant slab layouts (shared by the wrapper packer and the kernel).
# ----------------------------------------------------------------------------
def _round8(v):
    return (v + 7) // 8 * 8


def _layout(sections):
    offs, cur = {}, 0
    for name, rows in sections:
        cur = _round8(cur)
        offs[name] = cur
        cur += rows
    return offs, _round8(cur)


def _nslab_layout(K, H, C):
    # lane-width-N constants: conv boundary masks, LN gamma/beta (tiled over
    # H), LN broadcast matrix, depthwise conv taps.
    return _layout([("maskw", K), ("maskh", K), ("lngb", 2),
                    ("bcast", H), ("wconv", C)])


def _cslab_layout(C, heads, N):
    # lane-width-C constants: projection weights, head segment matrices, LN
    # pooling matrix, and all bias/vector params packed into column 0.
    return _layout([("wqkv", 3 * C), ("wo", C), ("msegt", C), ("mseg", heads),
                    ("pool", N), ("bqkv", 3 * C), ("bo", C),
                    ("wld", C), ("wldb", 1)])


# ----------------------------------------------------------------------------
# Fused kernel: one grid step per batch image b.
# ----------------------------------------------------------------------------
def _lga_kernel(x_ref, nslab_ref, cslab_ref, o_ref, *, W, K, heads):
    f32 = jnp.float32
    B, C, N = x_ref.shape
    H = N // W
    pad = K // 2
    no, _ = _nslab_layout(K, H, C)
    co, _ = _cslab_layout(C, heads, N)

    b = pl.program_id(0)
    x_b = x_ref[b]                                              # (C, N) lane-dense

    # ---- constants (static slices of the two packed slabs) -----------------
    maskw = nslab_ref[no["maskw"]:no["maskw"] + K, :]           # (K, N)
    maskh = nslab_ref[no["maskh"]:no["maskh"] + K, :]           # (K, N)
    gamma = nslab_ref[no["lngb"]:no["lngb"] + 1, :]             # (1, N)
    beta = nslab_ref[no["lngb"] + 1:no["lngb"] + 2, :]          # (1, N)
    bcast = nslab_ref[no["bcast"]:no["bcast"] + H, :]           # (H, N)
    wconv = nslab_ref[no["wconv"]:no["wconv"] + C, 0:K * K]     # (C, K*K)

    # ---- local branch: depthwise KxK conv via XLU rolls ---------------------
    # Stage 1: K lane-shifted copies of x_b with the W-boundary mask folded in
    # (roll wrap-around across a row is exactly what maskw kills).
    xcol = []
    for dx in range(K):
        if dx == pad:
            xcol.append(x_b)
        else:
            shifted = pltpu.roll(x_b, (pad - dx) % N, axis=1)
            xcol.append(shifted * maskw[dx:dx + 1, :])

    # Stage 2: per kernel row dy, weighted sum over dx FIRST (tap weights are
    # constant along the rolled axis, so the row roll hoists outside the dx
    # sum: K-1 rolls here + K-1 above = 12 rolls total), then roll by the row
    # offset and kill rows that crossed the top/bottom image boundary.
    acc = None
    for dy in range(K):
        mix = None
        for dx in range(K):
            tap = dy * K + dx
            term = xcol[dx] * wconv[:, tap:tap + 1]
            mix = term if mix is None else mix + term
        shift = ((pad - dy) * W) % N
        if shift:
            mix = pltpu.roll(mix, shift, axis=1)
        if dy != pad:
            mix = mix * maskh[dy:dy + 1, :]
        acc = mix if acc is None else acc + mix
    # conv bias omitted: constant along the LayerNorm axis (W), cancels exactly
    # in the normalization below.

    # nn.LayerNorm(dim) on the NCHW conv output: stats over the W axis per
    # (c, h); one stacked MXU matmul for (E[x], E[x^2]) and one stacked matmul
    # for the broadcast-back.
    pool = cslab_ref[co["pool"]:co["pool"] + N, :]              # (N, H), 1/W
    stats = jnp.dot(jnp.concatenate([acc, acc * acc], axis=0), pool,
                    preferred_element_type=f32)                 # (2C, H)
    mu = stats[:C, :]
    var = jnp.maximum(stats[C:, :] - mu * mu, 0.0)
    rstd = lax.rsqrt(var + 1e-5)                                # (C, H)
    coef = jnp.dot(jnp.concatenate([rstd, mu * rstd], axis=0), bcast,
                   preferred_element_type=f32)                  # (2C, N)
    y = acc * coef[:C, :] - coef[C:, :]
    y = y * gamma + beta
    # tanh-form GELU on the EUP (PyTorch nn.GELU() default is exact erf,
    # |diff| ~1e-3, within test tolerance).
    x_local = 0.5 * y * (1.0 + jnp.tanh(0.7978845608028654
                                        * (y + 0.044715 * y * y * y)))

    # ---- weight learner: softmax(Linear(mean_N(x))) == sigmoid(logit diff) --
    wld = cslab_ref[co["wld"]:co["wld"] + C, 0:1]               # (C, 1)
    wldb = cslab_ref[co["wldb"]:co["wldb"] + 1, 0:1]            # (1, 1)
    xm = jnp.sum(x_b, axis=1, keepdims=True) * (1.0 / N)        # (C, 1)
    d = jnp.sum(xm * wld, axis=0, keepdims=True) + wldb         # (1, 1)
    w_local = 1.0 / (1.0 + jnp.exp(-d))                         # weights[:, 0]
    w_global = 1.0 - w_local                                    # weights[:, 1]

    # ---- global branch: MHA mixing the B axis (seq len == B) ----------------
    wqkv = cslab_ref[co["wqkv"]:co["wqkv"] + 3 * C, :]          # (3C, C)
    bqkv = cslab_ref[co["bqkv"]:co["bqkv"] + 3 * C, 0:1]        # (3C, 1)
    wo = cslab_ref[co["wo"]:co["wo"] + C, :]                    # (C, C)
    bo = cslab_ref[co["bo"]:co["bo"] + C, 0:1]                  # (C, 1)
    mseg = cslab_ref[co["mseg"]:co["mseg"] + heads, :]          # (heads, C) 0/1
    msegt = cslab_ref[co["msegt"]:co["msegt"] + C, 0:heads]     # (C, heads) 0/1

    # q scale (1/sqrt(head_dim)) pre-folded into rows [0, C) of wqkv / bqkv.
    q_b = jnp.dot(wqkv[:C, :], x_b, preferred_element_type=f32) + bqkv[:C, :]

    wkv = wqkv[C:, :]                                           # (2C, C)
    bkv = bqkv[C:, :]                                           # (2C, 1)
    m = denom = num = None
    for e in range(B):        # online softmax over frames: O(1) live tiles
        kv = jnp.dot(wkv, x_ref[e], preferred_element_type=f32) + bkv  # (2C,N)
        k_e = kv[:C, :]
        v_e = kv[C:, :]
        # per-head scores via segment-sum on the MXU -> (heads, N)
        s = jnp.dot(mseg, q_b * k_e, preferred_element_type=f32)
        if e == 0:
            m, denom, num = s, jnp.ones_like(s), v_e
        else:
            m_new = jnp.maximum(m, s)
            a = jnp.exp(m - m_new)
            p = jnp.exp(s - m_new)
            denom = a * denom + p
            num = (jnp.dot(msegt, a, preferred_element_type=f32) * num
                   + jnp.dot(msegt, p, preferred_element_type=f32) * v_e)
            m = m_new
    attn = num * jnp.dot(msegt, 1.0 / denom, preferred_element_type=f32)
    x_global = jnp.dot(wo, attn, preferred_element_type=f32) + bo

    # ---- fuse & store (lane-dense (C, N) block) ------------------------------
    o_ref[0] = (w_local * x_local + w_global * x_global).astype(o_ref.dtype)


# ----------------------------------------------------------------------------
# One-time parameter / constant packing (hoisted out of the per-call wrapper).
# ----------------------------------------------------------------------------
def prepare_params(params, *, num_tokens, num_heads=8, window_size=7):
    f32 = jnp.float32
    C = int(params["ln_gamma"].shape[0])
    K = window_size
    N = num_tokens
    H = W = int(round(math.sqrt(N)))
    assert H * W == N
    assert W == C, "module only runs when sqrt(N) == dim (LayerNorm-on-NCHW quirk)"
    assert C % num_heads == 0
    pad = K // 2
    hd = C // num_heads

    # ---- lane-width-N slab ----------------------------------------------------
    no, rows_n = _nslab_layout(K, H, C)
    w_of_n = jnp.tile(jnp.arange(W, dtype=jnp.int32), H)
    h_of_n = jnp.repeat(jnp.arange(H, dtype=jnp.int32), W)
    d = jnp.arange(K, dtype=jnp.int32).reshape(K, 1) - pad
    maskw = ((w_of_n[None, :] + d >= 0) & (w_of_n[None, :] + d < W)).astype(f32)
    maskh = ((h_of_n[None, :] + d >= 0) & (h_of_n[None, :] + d < H)).astype(f32)
    lngb = jnp.stack([jnp.tile(params["ln_gamma"].astype(f32), H),
                      jnp.tile(params["ln_beta"].astype(f32), H)], axis=0)
    bcast = jnp.repeat(jnp.eye(H, dtype=f32), W, axis=1)                 # (H, N)
    wconv = jnp.pad(params["conv_w"].astype(f32).reshape(C, K * K),
                    ((0, 0), (0, N - K * K)))
    nslab = jnp.zeros((rows_n, N), f32)
    nslab = nslab.at[no["maskw"]:no["maskw"] + K].set(maskw)
    nslab = nslab.at[no["maskh"]:no["maskh"] + K].set(maskh)
    nslab = nslab.at[no["lngb"]:no["lngb"] + 2].set(lngb)
    nslab = nslab.at[no["bcast"]:no["bcast"] + H].set(bcast)
    nslab = nslab.at[no["wconv"]:no["wconv"] + C].set(wconv)

    # ---- lane-width-C slab ----------------------------------------------------
    co, rows_c = _cslab_layout(C, num_heads, N)
    in_w = params["in_proj_w"].astype(f32)                               # (3C, C)
    in_b = params["in_proj_b"].astype(f32)
    scale = 1.0 / math.sqrt(hd)
    wqkv = jnp.concatenate([in_w[:C] * scale, in_w[C:]], axis=0)         # (3C, C)
    bqkv = jnp.concatenate([in_b[:C] * scale, in_b[C:]], axis=0)         # (3C,)
    mseg = jnp.repeat(jnp.eye(num_heads, dtype=f32), hd, axis=1)         # (heads,C)
    msegt = jnp.pad(mseg.T, ((0, 0), (0, C - num_heads)))                # (C, C)
    pool = jnp.repeat(jnp.eye(H, dtype=f32), W, axis=0) / W              # (N, H==C)
    wl_w = params["wl_w"].astype(f32)
    wl_b = params["wl_b"].astype(f32)

    def col0(vec):
        vec = jnp.atleast_1d(vec)
        blk = jnp.zeros((vec.shape[0], C), f32)
        return blk.at[:, 0].set(vec)

    cslab = jnp.zeros((rows_c, C), f32)
    cslab = cslab.at[co["wqkv"]:co["wqkv"] + 3 * C].set(wqkv)
    cslab = cslab.at[co["wo"]:co["wo"] + C].set(params["out_proj_w"].astype(f32))
    cslab = cslab.at[co["msegt"]:co["msegt"] + C].set(msegt)
    cslab = cslab.at[co["mseg"]:co["mseg"] + num_heads].set(mseg)
    cslab = cslab.at[co["pool"]:co["pool"] + N].set(pool)
    cslab = cslab.at[co["bqkv"]:co["bqkv"] + 3 * C].set(col0(bqkv))
    cslab = cslab.at[co["bo"]:co["bo"] + C].set(
        col0(params["out_proj_b"].astype(f32)))
    cslab = cslab.at[co["wld"]:co["wld"] + C].set(col0(wl_w[0] - wl_w[1]))
    cslab = cslab.at[co["wldb"]:co["wldb"] + 1].set(col0(wl_b[0] - wl_b[1]))

    return {"nslab": nslab, "cslab": cslab}


# ----------------------------------------------------------------------------
# Per-call wrapper (transpose -> pallas_call -> transpose, nothing else).
# ----------------------------------------------------------------------------
def local_global_attention(x, prepped, *, num_heads=8, window_size=7):
    B, N, C = x.shape
    H = W = int(round(math.sqrt(N)))
    assert H * W == N and W == C and C % num_heads == 0
    f32 = jnp.float32
    nslab = prepped["nslab"]
    cslab = prepped["cslab"]

    # lane-dense transposed view of x: (B, C, N) with n = h*W + w
    x_t = jnp.transpose(x.astype(f32), (0, 2, 1))

    out_t = pl.pallas_call(
        functools.partial(_lga_kernel, W=W, K=window_size, heads=num_heads),
        out_shape=jax.ShapeDtypeStruct((B, C, N), f32),
        grid=(B,),
        in_specs=[
            pl.BlockSpec((B, C, N), lambda b: (0, 0, 0)),     # x resident
            pl.BlockSpec(nslab.shape, lambda b: (0, 0)),      # N-wide consts
            pl.BlockSpec(cslab.shape, lambda b: (0, 0)),      # C-wide consts
        ],
        out_specs=pl.BlockSpec((1, C, N), lambda b: (b, 0, 0)),
        compiler_params=pltpu.CompilerParams(
            dimension_semantics=("parallel",)),
    )(x_t, nslab, cslab)
    return jnp.transpose(out_t, (0, 2, 1))                    # back to (B, N, C)


# ----------------------------------------------------------------------------
# Pure-JAX reference mirroring the PyTorch forward (for verification)
# ----------------------------------------------------------------------------
def reference_forward(x, params, *, num_heads=8, window_size=7):
    hi = lax.Precision.HIGHEST
    B, N, C = x.shape
    H = W = int(round(math.sqrt(N)))
    K = window_size
    pad = K // 2
    f32 = jnp.float32
    x = x.astype(f32)

    # local branch (NCHW, as PyTorch)
    xl = x.reshape(B, H, W, C).transpose(0, 3, 1, 2)
    w_oihw = params["conv_w"].astype(f32)[:, None, :, :]
    y = lax.conv_general_dilated(
        xl, w_oihw, window_strides=(1, 1), padding=[(pad, pad), (pad, pad)],
        feature_group_count=C, dimension_numbers=("NCHW", "OIHW", "NCHW"),
        precision=hi)
    y = y + params["conv_b"].astype(f32)[None, :, None, None]
    mu = jnp.mean(y, axis=-1, keepdims=True)
    var = jnp.mean((y - mu) ** 2, axis=-1, keepdims=True)
    y = (y - mu) / jnp.sqrt(var + 1e-5)
    y = y * params["ln_gamma"].astype(f32) + params["ln_beta"].astype(f32)
    y = 0.5 * y * (1.0 + lax.erf(y / jnp.float32(_SQRT2)))
    x_local = y.transpose(0, 2, 3, 1).reshape(B, N, C)

    # global branch: MHA with seq axis = B, batch axis = N
    in_w = params["in_proj_w"].astype(f32)
    in_b = params["in_proj_b"].astype(f32)
    q = jnp.einsum("bnc,dc->bnd", x, in_w[:C], precision=hi) + in_b[:C]
    k = jnp.einsum("bnc,dc->bnd", x, in_w[C:2 * C], precision=hi) + in_b[C:2 * C]
    v = jnp.einsum("bnc,dc->bnd", x, in_w[2 * C:], precision=hi) + in_b[2 * C:]
    hd = C // num_heads
    qh = q.reshape(B, N, num_heads, hd)
    kh = k.reshape(B, N, num_heads, hd)
    vh = v.reshape(B, N, num_heads, hd)
    s = jnp.einsum("bnhd,enhd->nhbe", qh, kh, precision=hi) / math.sqrt(hd)
    p = jax.nn.softmax(s, axis=-1)
    o = jnp.einsum("nhbe,enhd->bnhd", p, vh, precision=hi).reshape(B, N, C)
    x_global = (jnp.einsum("bnc,dc->bnd", o, params["out_proj_w"].astype(f32),
                           precision=hi)
                + params["out_proj_b"].astype(f32))

    xm = x.mean(axis=1)
    logits = jnp.einsum("bc,dc->bd", xm, params["wl_w"].astype(f32),
                        precision=hi) + params["wl_b"].astype(f32)
    w = jax.nn.softmax(logits, axis=-1)
    return w[:, 0:1, None] * x_local + w[:, 1:2, None] * x_global


if __name__ == "__main__":
    B = 2
    dim = 16                 # sqrt(N) must equal dim (LayerNorm quirk)
    num_heads = 8
    window_size = 7
    N = dim * dim

    key = jax.random.PRNGKey(0)
    ks = jax.random.split(key, 11)
    params = {
        "conv_w": 0.2 * jax.random.normal(ks[0], (dim, window_size, window_size), jnp.float32),
        "conv_b": 0.05 * jax.random.normal(ks[1], (dim,), jnp.float32),
        "ln_gamma": 1.0 + 0.1 * jax.random.normal(ks[2], (dim,), jnp.float32),
        "ln_beta": 0.05 * jax.random.normal(ks[3], (dim,), jnp.float32),
        "in_proj_w": 0.2 * jax.random.normal(ks[4], (3 * dim, dim), jnp.float32),
        "in_proj_b": 0.05 * jax.random.normal(ks[5], (3 * dim,), jnp.float32),
        "out_proj_w": 0.2 * jax.random.normal(ks[6], (dim, dim), jnp.float32),
        "out_proj_b": 0.05 * jax.random.normal(ks[7], (dim,), jnp.float32),
        "wl_w": 0.3 * jax.random.normal(ks[8], (2, dim), jnp.float32),
        "wl_b": 0.05 * jax.random.normal(ks[9], (2,), jnp.float32),
    }
    x = jax.random.normal(ks[10], (B, N, dim), jnp.float32)

    # one-time constant packing, then a lean jitted forward
    prepped = prepare_params(params, num_tokens=N, num_heads=num_heads,
                             window_size=window_size)
    fwd = jax.jit(functools.partial(local_global_attention,
                                    num_heads=num_heads,
                                    window_size=window_size))

    out = jax.block_until_ready(fwd(x, prepped))
    ref = jax.block_until_ready(
        reference_forward(x, params, num_heads=num_heads,
                          window_size=window_size))
    err = float(jnp.max(jnp.abs(out - ref)))
    if out.shape != ref.shape or not (err < 2e-2):
        raise AssertionError(f"mismatch vs reference: max abs err = {err}")
    print("KERNEL_OK")
</pallas_src>

<mosaic_0001>
module attributes {stable_mosaic.version = 11 : i64} {
  func.func @_lga_kernel(%arg0: i32, %arg1: memref<2x16x256xf32, #tpu.memory_space<vmem>>, %arg2: memref<56x256xf32, #tpu.memory_space<vmem>>, %arg3: memref<432x16xf32, #tpu.memory_space<vmem>>, %arg4: memref<1x16x256xf32, #tpu.memory_space<vmem>>) attributes {dimension_semantics = [#tpu.dimension_semantics<parallel>], iteration_bounds = array<i64: 2>, scalar_prefetch = 0 : i64, scratch_operands = 0 : i64, tpu.core_type = #tpu.core_type<tc>, window_params = [{pipeline_mode = #tpu.pipeline_mode<synchronous>, transform_indices = @transform_0, window_bounds = array<i64: 2, 16, 256>}, {pipeline_mode = #tpu.pipeline_mode<synchronous>, transform_indices = @transform_1, window_bounds = array<i64: 56, 256>}, {pipeline_mode = #tpu.pipeline_mode<synchronous>, transform_indices = @transform_2, window_bounds = array<i64: 432, 16>}, {transform_indices = @transform_3, window_bounds = array<i64: 1, 16, 256>}]} {
    %0 = arith.index_cast %arg0 : i32 to index
    %c0 = arith.constant 0 : index
    %c0_0 = arith.constant 0 : index
    %1 = vector.load %arg1[%0, %c0, %c0_0] : memref<2x16x256xf32, #tpu.memory_space<vmem>>, vector<1x16x256xf32>
    %2 = vector.shape_cast %1 : vector<1x16x256xf32> to vector<16x256xf32>
    %c0_1 = arith.constant 0 : index
    %c0_2 = arith.constant 0 : index
    %3 = vector.load %arg2[%c0_1, %c0_2] : memref<56x256xf32, #tpu.memory_space<vmem>>, vector<7x256xf32>
    %c8 = arith.constant 8 : index
    %c0_3 = arith.constant 0 : index
    %4 = vector.load %arg2[%c8, %c0_3] : memref<56x256xf32, #tpu.memory_space<vmem>>, vector<7x256xf32>
    %c16 = arith.constant 16 : index
    %c0_4 = arith.constant 0 : index
    %5 = vector.load %arg2[%c16, %c0_4] : memref<56x256xf32, #tpu.memory_space<vmem>>, vector<1x256xf32>
    %c17 = arith.constant 17 : index
    %c0_5 = arith.constant 0 : index
    %6 = vector.load %arg2[%c17, %c0_5] : memref<56x256xf32, #tpu.memory_space<vmem>>, vector<1x256xf32>
    %c24 = arith.constant 24 : index
    %c0_6 = arith.constant 0 : index
    %7 = vector.load %arg2[%c24, %c0_6] : memref<56x256xf32, #tpu.memory_space<vmem>>, vector<16x256xf32>
    %c40 = arith.constant 40 : index
    %c0_7 = arith.constant 0 : index
    %8 = vector.load %arg2[%c40, %c0_7] : memref<56x256xf32, #tpu.memory_space<vmem>>, vector<16x49xf32>
    %c3_i32 = arith.constant 3 : i32
    %9 = tpu.dynamic_rotate %2 by %c3_i32 dim 1 : vector<16x256xf32>, i32 -> vector<16x256xf32>
    %10 = vector.extract_strided_slice %3 {offsets = [0, 0], sizes = [1, 256], strides = [1, 1]} : vector<7x256xf32> to vector<1x256xf32>
    %11 = vector.broadcast %10 : vector<1x256xf32> to vector<16x256xf32>
    %12 = arith.mulf %9, %11 : vector<16x256xf32>
    %c2_i32 = arith.constant 2 : i32
    %13 = tpu.dynamic_rotate %2 by %c2_i32 dim 1 : vector<16x256xf32>, i32 -> vector<16x256xf32>
    %14 = vector.extract_strided_slice %3 {offsets = [1, 0], sizes = [1, 256], strides = [1, 1]} : vector<7x256xf32> to vector<1x256xf32>
    %15 = vector.broadcast %14 : vector<1x256xf32> to vector<16x256xf32>
    %16 = arith.mulf %13, %15 : vector<16x256xf32>
    %c1_i32 = arith.constant 1 : i32
    %17 = tpu.dynamic_rotate %2 by %c1_i32 dim 1 : vector<16x256xf32>, i32 -> vector<16x256xf32>
    %18 = vector.extract_strided_slice %3 {offsets = [2, 0], sizes = [1, 256], strides = [1, 1]} : vector<7x256xf32> to vector<1x256xf32>
    %19 = vector.broadcast %18 : vector<1x256xf32> to vector<16x256xf32>
    %20 = arith.mulf %17, %19 : vector<16x256xf32>
    %c255_i32 = arith.constant 255 : i32
    %21 = tpu.dynamic_rotate %2 by %c255_i32 dim 1 : vector<16x256xf32>, i32 -> vector<16x256xf32>
    %22 = vector.extract_strided_slice %3 {offsets = [4, 0], sizes = [1, 256], strides = [1, 1]} : vector<7x256xf32> to vector<1x256xf32>
    %23 = vector.broadcast %22 : vector<1x256xf32> to vector<16x256xf32>
    %24 = arith.mulf %21, %23 : vector<16x256xf32>
    %c254_i32 = arith.constant 254 : i32
    %25 = tpu.dynamic_rotate %2 by %c254_i32 dim 1 : vector<16x256xf32>, i32 -> vector<16x256xf32>
    %26 = vector.extract_strided_slice %3 {offsets = [5, 0], sizes = [1, 256], strides = [1, 1]} : vector<7x256xf32> to vector<1x256xf32>
    %27 = vector.broadcast %26 : vector<1x256xf32> to vector<16x256xf32>
    %28 = arith.mulf %25, %27 : vector<16x256xf32>
    %c253_i32 = arith.constant 253 : i32
    %29 = tpu.dynamic_rotate %2 by %c253_i32 dim 1 : vector<16x256xf32>, i32 -> vector<16x256xf32>
    %30 = vector.extract_strided_slice %3 {offsets = [6, 0], sizes = [1, 256], strides = [1, 1]} : vector<7x256xf32> to vector<1x256xf32>
    %31 = vector.broadcast %30 : vector<1x256xf32> to vector<16x256xf32>
    %32 = arith.mulf %29, %31 : vector<16x256xf32>
    %33 = vector.extract_strided_slice %8 {offsets = [0, 0], sizes = [16, 1], strides = [1, 1]} : vector<16x49xf32> to vector<16x1xf32>
    %34 = vector.broadcast %33 : vector<16x1xf32> to vector<16x256xf32>
    %35 = arith.mulf %12, %34 : vector<16x256xf32>
    %36 = vector.extract_strided_slice %8 {offsets = [0, 1], sizes = [16, 1], strides = [1, 1]} : vector<16x49xf32> to vector<16x1xf32>
    %37 = vector.broadcast %36 : vector<16x1xf32> to vector<16x256xf32>
    %38 = arith.mulf %16, %37 : vector<16x256xf32>
    %39 = arith.addf %35, %38 : vector<16x256xf32>
    %40 = vector.extract_strided_slice %8 {offsets = [0, 2], sizes = [16, 1], strides = [1, 1]} : vector<16x49xf32> to vector<16x1xf32>
    %41 = vector.broadcast %40 : vector<16x1xf32> to vector<16x256xf32>
    %42 = arith.mulf %20, %41 : vector<16x256xf32>
    %43 = arith.addf %39, %42 : vector<16x256xf32>
    %44 = vector.extract_strided_slice %8 {offsets = [0, 3], sizes = [16, 1], strides = [1, 1]} : vector<16x49xf32> to vector<16x1xf32>
    %45 = vector.broadcast %44 : vector<16x1xf32> to vector<16x256xf32>
    %46 = arith.mulf %2, %45 : vector<16x256xf32>
    %47 = arith.addf %43, %46 : vector<16x256xf32>
    %48 = vector.extract_strided_slice %8 {offsets = [0, 4], sizes = [16, 1], strides = [1, 1]} : vector<16x49xf32> to vector<16x1xf32>
    %49 = vector.broadcast %48 : vector<16x1xf32> to vector<16x256xf32>
    %50 = arith.mulf %24, %49 : vector<16x256xf32>
    %51 = arith.addf %47, %50 : vector<16x256xf32>
    %52 = vector.extract_strided_slice %8 {offsets = [0, 5], sizes = [16, 1], strides = [1, 1]} : vector<16x49xf32> to vector<16x1xf32>
    %53 = vector.broadcast %52 : vector<16x1xf32> to vector<16x256xf32>
    %54 = arith.mulf %28, %53 : vector<16x256xf32>
    %55 = arith.addf %51, %54 : vector<16x256xf32>
    %56 = vector.extract_strided_slice %8 {offsets = [0, 6], sizes = [16, 1], strides = [1, 1]} : vector<16x49xf32> to vector<16x1xf32>
    %57 = vector.broadcast %56 : vector<16x1xf32> to vector<16x256xf32>
    %58 = arith.mulf %32, %57 : vector<16x256xf32>
    %59 = arith.addf %55, %58 : vector<16x256xf32>
    %c48_i32 = arith.constant 48 : i32
    %60 = tpu.dynamic_rotate %59 by %c48_i32 dim 1 : vector<16x256xf32>, i32 -> vector<16x256xf32>
    %61 = vector.extract_strided_slice %4 {offsets = [0, 0], sizes = [1, 256], strides = [1, 1]} : vector<7x256xf32> to vector<1x256xf32>
    %62 = vector.broadcast %61 : vector<1x256xf32> to vector<16x256xf32>
    %63 = arith.mulf %60, %62 : vector<16x256xf32>
    %64 = vector.extract_strided_slice %8 {offsets = [0, 7], sizes = [16, 1], strides = [1, 1]} : vector<16x49xf32> to vector<16x1xf32>
    %65 = vector.broadcast %64 : vector<16x1xf32> to vector<16x256xf32>
    %66 = arith.mulf %12, %65 : vector<16x256xf32>
    %67 = vector.extract_strided_slice %8 {offsets = [0, 8], sizes = [16, 1], strides = [1, 1]} : vector<16x49xf32> to vector<16x1xf32>
    %68 = vector.broadcast %67 : vector<16x1xf32> to vector<16x256xf32>
    %69 = arith.mulf %16, %68 : vector<16x256xf32>
    %70 = arith.addf %66, %69 : vector<16x256xf32>
    %71 = vector.extract_strided_slice %8 {offsets = [0, 9], sizes = [16, 1], strides = [1, 1]} : vector<16x49xf32> to vector<16x1xf32>
    %72 = vector.broadcast %71 : vector<16x1xf32> to vector<16x256xf32>
    %73 = arith.mulf %20, %72 : vector<16x256xf32>
    %74 = arith.addf %70, %73 : vector<16x256xf32>
    %75 = vector.extract_strided_slice %8 {offsets = [0, 10], sizes = [16, 1], strides = [1, 1]} : vector<16x49xf32> to vector<16x1xf32>
    %76 = vector.broadcast %75 : vector<16x1xf32> to vector<16x256xf32>
    %77 = arith.mulf %2, %76 : vector<16x256xf32>
    %78 = arith.addf %74, %77 : vector<16x256xf32>
    %79 = vector.extract_strided_slice %8 {offsets = [0, 11], sizes = [16, 1], strides = [1, 1]} : vector<16x49xf32> to vector<16x1xf32>
    %80 = vector.broadcast %79 : vector<16x1xf32> to vector<16x256xf32>
    %81 = arith.mulf %24, %80 : vector<16x256xf32>
    %82 = arith.addf %78, %81 : vector<16x256xf32>
    %83 = vector.extract_strided_slice %8 {offsets = [0, 12], sizes = [16, 1], strides = [1, 1]} : vector<16x49xf32> to vector<16x1xf32>
    %84 = vector.broadcast %83 : vector<16x1xf32> to vector<16x256xf32>
    %85 = arith.mulf %28, %84 : vector<16x256xf32>
    %86 = arith.addf %82, %85 : vector<16x256xf32>
    %87 = vector.extract_strided_slice %8 {offsets = [0, 13], sizes = [16, 1], strides = [1, 1]} : vector<16x49xf32> to vector<16x1xf32>
    %88 = vector.broadcast %87 : vector<16x1xf32> to vector<16x256xf32>
    %89 = arith.mulf %32, %88 : vector<16x256xf32>
    %90 = arith.addf %86, %89 : vector<16x256xf32>
    %c32_i32 = arith.constant 32 : i32
    %91 = tpu.dynamic_rotate %90 by %c32_i32 dim 1 : vector<16x256xf32>, i32 -> vector<16x256xf32>
    %92 = vector.extract_strided_slice %4 {offsets = [1, 0], sizes = [1, 256], strides = [1, 1]} : vector<7x256xf32> to vector<1x256xf32>
    %93 = vector.broadcast %92 : vector<1x256xf32> to vector<16x256xf32>
    %94 = arith.mulf %91, %93 : vector<16x256xf32>
    %95 = arith.addf %63, %94 : vector<16x256xf32>
    %96 = vector.extract_strided_slice %8 {offsets = [0, 14], sizes = [16, 1], strides = [1, 1]} : vector<16x49xf32> to vector<16x1xf32>
    %97 = vector.broadcast %96 : vector<16x1xf32> to vector<16x256xf32>
    %98 = arith.mulf %12, %97 : vector<16x256xf32>
    %99 = vector.extract_strided_slice %8 {offsets = [0, 15], sizes = [16, 1], strides = [1, 1]} : vector<16x49xf32> to vector<16x1xf32>
    %100 = vector.broadcast %99 : vector<16x1xf32> to vector<16x256xf32>
    %101 = arith.mulf %16, %100 : vector<16x256xf32>
    %102 = arith.addf %98, %101 : vector<16x256xf32>
    %103 = vector.extract_strided_slice %8 {offsets = [0, 16], sizes = [16, 1], strides = [1, 1]} : vector<16x49xf32> to vector<16x1xf32>
    %104 = vector.broadcast %103 : vector<16x1xf32> to vector<16x256xf32>
    %105 = arith.mulf %20, %104 : vector<16x256xf32>
    %106 = arith.addf %102, %105 : vector<16x256xf32>
    %107 = vector.extract_strided_slice %8 {offsets = [0, 17], sizes = [16, 1], strides = [1, 1]} : vector<16x49xf32> to vector<16x1xf32>
    %108 = vector.broadcast %107 : vector<16x1xf32> to vector<16x256xf32>
    %109 = arith.mulf %2, %108 : vector<16x256xf32>
    %110 = arith.addf %106, %109 : vector<16x256xf32>
    %111 = vector.extract_strided_slice %8 {offsets = [0, 18], sizes = [16, 1], strides = [1, 1]} : vector<16x49xf32> to vector<16x1xf32>
    %112 = vector.broadcast %111 : vector<16x1xf32> to vector<16x256xf32>
    %113 = arith.mulf %24, %112 : vector<16x256xf32>
    %114 = arith.addf %110, %113 : vector<16x256xf32>
    %115 = vector.extract_strided_slice %8 {offsets = [0, 19], sizes = [16, 1], strides = [1, 1]} : vector<16x49xf32> to vector<16x1xf32>
    %116 = vector.broadcast %115 : vector<16x1xf32> to vector<16x256xf32>
    %117 = arith.mulf %28, %116 : vector<16x256xf32>
    %118 = arith.addf %114, %117 : vector<16x256xf32>
    %119 = vector.extract_strided_slice %8 {offsets = [0, 20], sizes = [16, 1], strides = [1, 1]} : vector<16x49xf32> to vector<16x1xf32>
    %120 = vector.broadcast %119 : vector<16x1xf32> to vector<16x256xf32>
    %121 = arith.mulf %32, %120 : vector<16x256xf32>
    %122 = arith.addf %118, %121 : vector<16x256xf32>
    %c16_i32 = arith.constant 16 : i32
    %123 = tpu.dynamic_rotate %122 by %c16_i32 dim 1 : vector<16x256xf32>, i32 -> vector<16x256xf32>
    %124 = vector.extract_strided_slice %4 {offsets = [2, 0], sizes = [1, 256], strides = [1, 1]} : vector<7x256xf32> to vector<1x256xf32>
    %125 = vector.broadcast %124 : vector<1x256xf32> to vector<16x256xf32>
    %126 = arith.mulf %123, %125 : vector<16x256xf32>
    %127 = arith.addf %95, %126 : vector<16x256xf32>
    %128 = vector.extract_strided_slice %8 {offsets = [0, 21], sizes = [16, 1], strides = [1, 1]} : vector<16x49xf32> to vector<16x1xf32>
    %129 = vector.broadcast %128 : vector<16x1xf32> to vector<16x256xf32>
    %130 = arith.mulf %12, %129 : vector<16x256xf32>
    %131 = vector.extract_strided_slice %8 {offsets = [0, 22], sizes = [16, 1], strides = [1, 1]} : vector<16x49xf32> to vector<16x1xf32>
    %132 = vector.broadcast %131 : vector<16x1xf32> to vector<16x256xf32>
    %133 = arith.mulf %16, %132 : vector<16x256xf32>
    %134 = arith.addf %130, %133 : vector<16x256xf32>
    %135 = vector.extract_strided_slice %8 {offsets = [0, 23], sizes = [16, 1], strides = [1, 1]} : vector<16x49xf32> to vector<16x1xf32>
    %136 = vector.broadcast %135 : vector<16x1xf32> to vector<16x256xf32>
    %137 = arith.mulf %20, %136 : vector<16x256xf32>
    %138 = arith.addf %134, %137 : vector<16x256xf32>
    %139 = vector.extract_strided_slice %8 {offsets = [0, 24], sizes = [16, 1], strides = [1, 1]} : vector<16x49xf32> to vector<16x1xf32>
    %140 = vector.broadcast %139 : vector<16x1xf32> to vector<16x256xf32>
    %141 = arith.mulf %2, %140 : vector<16x256xf32>
    %142 = arith.addf %138, %141 : vector<16x256xf32>
    %143 = vector.extract_strided_slice %8 {offsets = [0, 25], sizes = [16, 1], strides = [1, 1]} : vector<16x49xf32> to vector<16x1xf32>
    %144 = vector.broadcast %143 : vector<16x1xf32> to vector<16x256xf32>
    %145 = arith.mulf %24, %144 : vector<16x256xf32>
    %146 = arith.addf %142, %145 : vector<16x256xf32>
    %147 = vector.extract_strided_slice %8 {offsets = [0, 26], sizes = [16, 1], strides = [1, 1]} : vector<16x49xf32> to vector<16x1xf32>
    %148 = vector.broadcast %147 : vector<16x1xf32> to vector<16x256xf32>
    %149 = arith.mulf %28, %148 : vector<16x256xf32>
    %150 = arith.addf %146, %149 : vector<16x256xf32>
    %151 = vector.extract_strided_slice %8 {offsets = [0, 27], sizes = [16, 1], strides = [1, 1]} : vector<16x49xf32> to vector<16x1xf32>
    %152 = vector.broadcast %151 : vector<16x1xf32> to vector<16x256xf32>
    %153 = arith.mulf %32, %152 : vector<16x256xf32>
    %154 = arith.addf %150, %153 : vector<16x256xf32>
    %155 = arith.addf %127, %154 : vector<16x256xf32>
    %156 = vector.extract_strided_slice %8 {offsets = [0, 28], sizes = [16, 1], strides = [1, 1]} : vector<16x49xf32> to vector<16x1xf32>
    %157 = vector.broadcast %156 : vector<16x1xf32> to vector<16x256xf32>
    %158 = arith.mulf %12, %157 : vector<16x256xf32>
    %159 = vector.extract_strided_slice %8 {offsets = [0, 29], sizes = [16, 1], strides = [1, 1]} : vector<16x49xf32> to vector<16x1xf32>
    %160 = vector.broadcast %159 : vector<16x1xf32> to vector<16x256xf32>
    %161 = arith.mulf %16, %160 : vector<16x256xf32>
    %162 = arith.addf %158, %161 : vector<16x256xf32>
    %163 = vector.extract_strided_slice %8 {offsets = [0, 30], sizes = [16, 1], strides = [1, 1]} : vector<16x49xf32> to vector<16x1xf32>
    %164 = vector.broadcast %163 : vector<16x1xf32> to vector<16x256xf32>
    %165 = arith.mulf %20, %164 : vector<16x256xf32>
    %166 = arith.addf %162, %165 : vector<16x256xf32>
    %167 = vector.extract_strided_slice %8 {offsets = [0, 31], sizes = [16, 1], strides = [1, 1]} : vector<16x49xf32> to vector<16x1xf32>
    %168 = vector.broadcast %167 : vector<16x1xf32> to vector<16x256xf32>
    %169 = arith.mulf %2, %168 : vector<16x256xf32>
    %170 = arith.addf %166, %169 : vector<16x256xf32>
    %171 = vector.extract_strided_slice %8 {offsets = [0, 32], sizes = [16, 1], strides = [1, 1]} : vector<16x49xf32> to vector<16x1xf32>
    %172 = vector.broadcast %171 : vector<16x1xf32> to vector<16x256xf32>
    %173 = arith.mulf %24, %172 : vector<16x256xf32>
    %174 = arith.addf %170, %173 : vector<16x256xf32>
    %175 = vector.extract_strided_slice %8 {offsets = [0, 33], sizes = [16, 1], strides = [1, 1]} : vector<16x49xf32> to vector<16x1xf32>
    %176 = vector.broadcast %175 : vector<16x1xf32> to vector<16x256xf32>
    %177 = arith.mulf %28, %176 : vector<16x256xf32>
    %178 = arith.addf %174, %177 : vector<16x256xf32>
    %179 = vector.extract_strided_slice %8 {offsets = [0, 34], sizes = [16, 1], strides = [1, 1]} : vector<16x49xf32> to vector<16x1xf32>
    %180 = vector.broadcast %179 : vector<16x1xf32> to vector<16x256xf32>
    %181 = arith.mulf %32, %180 : vector<16x256xf32>
    %182 = arith.addf %178, %181 : vector<16x256xf32>
    %c240_i32 = arith.constant 240 : i32
    %183 = tpu.dynamic_rotate %182 by %c240_i32 dim 1 : vector<16x256xf32>, i32 -> vector<16x256xf32>
    %184 = vector.extract_strided_slice %4 {offsets = [4, 0], sizes = [1, 256], strides = [1, 1]} : vector<7x256xf32> to vector<1x256xf32>
    %185 = vector.broadcast %184 : vector<1x256xf32> to vector<16x256xf32>
    %186 = arith.mulf %183, %185 : vector<16x256xf32>
    %187 = arith.addf %155, %186 : vector<16x256xf32>
    %188 = vector.extract_strided_slice %8 {offsets = [0, 35], sizes = [16, 1], strides = [1, 1]} : vector<16x49xf32> to vector<16x1xf32>
    %189 = vector.broadcast %188 : vector<16x1xf32> to vector<16x256xf32>
    %190 = arith.mulf %12, %189 : vector<16x256xf32>
    %191 = vector.extract_strided_slice %8 {offsets = [0, 36], sizes = [16, 1], strides = [1, 1]} : vector<16x49xf32> to vector<16x1xf32>
    %192 = vector.broadcast %191 : vector<16x1xf32> to vector<16x256xf32>
    %193 = arith.mulf %16, %192 : vector<16x256xf32>
    %194 = arith.addf %190, %193 : vector<16x256xf32>
    %195 = vector.extract_strided_slice %8 {offsets = [0, 37], sizes = [16, 1], strides = [1, 1]} : vector<16x49xf32> to vector<16x1xf32>
    %196 = vector.broadcast %195 : vector<16x1xf32> to vector<16x256xf32>
    %197 = arith.mulf %20, %196 : vector<16x256xf32>
    %198 = arith.addf %194, %197 : vector<16x256xf32>
    %199 = vector.extract_strided_slice %8 {offsets = [0, 38], sizes = [16, 1], strides = [1, 1]} : vector<16x49xf32> to vector<16x1xf32>
    %200 = vector.broadcast %199 : vector<16x1xf32> to vector<16x256xf32>
    %201 = arith.mulf %2, %200 : vector<16x256xf32>
    %202 = arith.addf %198, %201 : vector<16x256xf32>
    %203 = vector.extract_strided_slice %8 {offsets = [0, 39], sizes = [16, 1], strides = [1, 1]} : vector<16x49xf32> to vector<16x1xf32>
    %204 = vector.broadcast %203 : vector<16x1xf32> to vector<16x256xf32>
    %205 = arith.mulf %24, %204 : vector<16x256xf32>
    %206 = arith.addf %202, %205 : vector<16x256xf32>
    %207 = vector.extract_strided_slice %8 {offsets = [0, 40], sizes = [16, 1], strides = [1, 1]} : vector<16x49xf32> to vector<16x1xf32>
    %208 = vector.broadcast %207 : vector<16x1xf32> to vector<16x256xf32>
    %209 = arith.mulf %28, %208 : vector<16x256xf32>
    %210 = arith.addf %206, %209 : vector<16x256xf32>
    %211 = vector.extract_strided_slice %8 {offsets = [0, 41], sizes = [16, 1], strides = [1, 1]} : vector<16x49xf32> to vector<16x1xf32>
    %212 = vector.broadcast %211 : vector<16x1xf32> to vector<16x256xf32>
    %213 = arith.mulf %32, %212 : vector<16x256xf32>
    %214 = arith.addf %210, %213 : vector<16x256xf32>
    %c224_i32 = arith.constant 224 : i32
    %215 = tpu.dynamic_rotate %214 by %c224_i32 dim 1 : vector<16x256xf32>, i32 -> vector<16x256xf32>
    %216 = vector.extract_strided_slice %4 {offsets = [5, 0], sizes = [1, 256], strides = [1, 1]} : vector<7x256xf32> to vector<1x256xf32>
    %217 = vector.broadcast %216 : vector<1x256xf32> to vector<16x256xf32>
    %218 = arith.mulf %215, %217 : vector<16x256xf32>
    %219 = arith.addf %187, %218 : vector<16x256xf32>
    %220 = vector.extract_strided_slice %8 {offsets = [0, 42], sizes = [16, 1], strides = [1, 1]} : vector<16x49xf32> to vector<16x1xf32>
    %221 = vector.broadcast %220 : vector<16x1xf32> to vector<16x256xf32>
    %222 = arith.mulf %12, %221 : vector<16x256xf32>
    %223 = vector.extract_strided_slice %8 {offsets = [0, 43], sizes = [16, 1], strides = [1, 1]} : vector<16x49xf32> to vector<16x1xf32>
    %224 = vector.broadcast %223 : vector<16x1xf32> to vector<16x256xf32>
    %225 = arith.mulf %16, %224 : vector<16x256xf32>
    %226 = arith.addf %222, %225 : vector<16x256xf32>
    %227 = vector.extract_strided_slice %8 {offsets = [0, 44], sizes = [16, 1], strides = [1, 1]} : vector<16x49xf32> to vector<16x1xf32>
    %228 = vector.broadcast %227 : vector<16x1xf32> to vector<16x256xf32>
    %229 = arith.mulf %20, %228 : vector<16x256xf32>
    %230 = arith.addf %226, %229 : vector<16x256xf32>
    %231 = vector.extract_strided_slice %8 {offsets = [0, 45], sizes = [16, 1], strides = [1, 1]} : vector<16x49xf32> to vector<16x1xf32>
    %232 = vector.broadcast %231 : vector<16x1xf32> to vector<16x256xf32>
    %233 = arith.mulf %2, %232 : vector<16x256xf32>
    %234 = arith.addf %230, %233 : vector<16x256xf32>
    %235 = vector.extract_strided_slice %8 {offsets = [0, 46], sizes = [16, 1], strides = [1, 1]} : vector<16x49xf32> to vector<16x1xf32>
    %236 = vector.broadcast %235 : vector<16x1xf32> to vector<16x256xf32>
    %237 = arith.mulf %24, %236 : vector<16x256xf32>
    %238 = arith.addf %234, %237 : vector<16x256xf32>
    %239 = vector.extract_strided_slice %8 {offsets = [0, 47], sizes = [16, 1], strides = [1, 1]} : vector<16x49xf32> to vector<16x1xf32>
    %240 = vector.broadcast %239 : vector<16x1xf32> to vector<16x256xf32>
    %241 = arith.mulf %28, %240 : vector<16x256xf32>
    %242 = arith.addf %238, %241 : vector<16x256xf32>
    %243 = vector.extract_strided_slice %8 {offsets = [0, 48], sizes = [16, 1], strides = [1, 1]} : vector<16x49xf32> to vector<16x1xf32>
    %244 = vector.broadcast %243 : vector<16x1xf32> to vector<16x256xf32>
    %245 = arith.mulf %32, %244 : vector<16x256xf32>
    %246 = arith.addf %242, %245 : vector<16x256xf32>
    %c208_i32 = arith.constant 208 : i32
    %247 = tpu.dynamic_rotate %246 by %c208_i32 dim 1 : vector<16x256xf32>, i32 -> vector<16x256xf32>
    %248 = vector.extract_strided_slice %4 {offsets = [6, 0], sizes = [1, 256], strides = [1, 1]} : vector<7x256xf32> to vector<1x256xf32>
    %249 = vector.broadcast %248 : vector<1x256xf32> to vector<16x256xf32>
    %250 = arith.mulf %247, %249 : vector<16x256xf32>
    %251 = arith.addf %219, %250 : vector<16x256xf32>
    %c88 = arith.constant 88 : index
    %c0_8 = arith.constant 0 : index
    %252 = vector.load %arg3[%c88, %c0_8] : memref<432x16xf32, #tpu.memory_space<vmem>>, vector<256x16xf32>
    %253 = arith.mulf %251, %251 : vector<16x256xf32>
    %254 = tpu.concatenate %251, %253 in 0 : vector<16x256xf32>, vector<16x256xf32> -> vector<32x256xf32>
    %cst = arith.constant dense<0.000000e+00> : vector<32x16xf32>
    %255 = tpu.matmul %254, %252, %cst {dimension_numbers = #tpu.dot_dimension_numbers<[1], [0], [0], [1], [0, 0, 1, 1], [], []>} : vector<32x256xf32>, vector<256x16xf32>, vector<32x16xf32> -> vector<32x16xf32>
    %256 = vector.extract_strided_slice %255 {offsets = [0, 0], sizes = [16, 16], strides = [1, 1]} : vector<32x16xf32> to vector<16x16xf32>
    %257 = vector.extract_strided_slice %255 {offsets = [16, 0], sizes = [16, 16], strides = [1, 1]} : vector<32x16xf32> to vector<16x16xf32>
    %258 = arith.mulf %256, %256 : vector<16x16xf32>
    %259 = arith.subf %257, %258 : vector<16x16xf32>
    %cst_9 = arith.constant 0.000000e+00 : f32
    %260 = vector.broadcast %cst_9 : f32 to vector<16x16xf32>
    %261 = arith.maximumf %259, %260 : vector<16x16xf32>
    %cst_10 = arith.constant 9.99999974E-6 : f32
    %262 = vector.broadcast %cst_10 : f32 to vector<16x16xf32>
    %263 = arith.addf %261, %262 : vector<16x16xf32>
    %264 = math.rsqrt %263 : vector<16x16xf32>
    %265 = arith.mulf %256, %264 : vector<16x16xf32>
    %266 = tpu.concatenate %264, %265 in 0 : vector<16x16xf32>, vector<16x16xf32> -> vector<32x16xf32>
    %cst_11 = arith.constant dense<0.000000e+00> : vector<32x256xf32>
    %267 = tpu.matmul %266, %7, %cst_11 {dimension_numbers = #tpu.dot_dimension_numbers<[1], [0], [0], [1], [0, 0, 1, 1], [], []>} : vector<32x16xf32>, vector<16x256xf32>, vector<32x256xf32> -> vector<32x256xf32>
    %268 = vector.extract_strided_slice %267 {offsets = [0, 0], sizes = [16, 256], strides = [1, 1]} : vector<32x256xf32> to vector<16x256xf32>
    %269 = arith.mulf %251, %268 : vector<16x256xf32>
    %270 = vector.extract_strided_slice %267 {offsets = [16, 0], sizes = [16, 256], strides = [1, 1]} : vector<32x256xf32> to vector<16x256xf32>
    %271 = arith.subf %269, %270 : vector<16x256xf32>
    %272 = vector.broadcast %5 : vector<1x256xf32> to vector<16x256xf32>
    %273 = arith.mulf %271, %272 : vector<16x256xf32>
    %274 = vector.broadcast %6 : vector<1x256xf32> to vector<16x256xf32>
    %275 = arith.addf %273, %274 : vector<16x256xf32>
    %cst_12 = arith.constant 5.000000e-01 : f32
    %276 = vector.broadcast %cst_12 : f32 to vector<16x256xf32>
    %277 = arith.mulf %276, %275 : vector<16x256xf32>
    %cst_13 = arith.constant 4.471500e-02 : f32
    %278 = vector.broadcast %cst_13 : f32 to vector<16x256xf32>
    %279 = arith.mulf %278, %275 : vector<16x256xf32>
    %280 = arith.mulf %279, %275 : vector<16x256xf32>
    %281 = arith.mulf %280, %275 : vector<16x256xf32>
    %282 = arith.addf %275, %281 : vector<16x256xf32>
    %cst_14 = arith.constant 0.797884583 : f32
    %283 = vector.broadcast %cst_14 : f32 to vector<16x256xf32>
    %284 = arith.mulf %283, %282 : vector<16x256xf32>
    %285 = math.tanh %284 : vector<16x256xf32>
    %cst_15 = arith.constant 1.000000e+00 : f32
    %286 = vector.broadcast %cst_15 : f32 to vector<16x256xf32>
    %287 = arith.addf %286, %285 : vector<16x256xf32>
    %288 = arith.mulf %277, %287 : vector<16x256xf32>
    %c408 = arith.constant 408 : index
    %c0_16 = arith.constant 0 : index
    %289 = vector.load %arg3[%c408, %c0_16] : memref<432x16xf32, #tpu.memory_space<vmem>>, vector<16x1xf32>
    %c424 = arith.constant 424 : index
    %c0_17 = arith.constant 0 : index
    %290 = vector.load %arg3[%c424, %c0_17] : memref<432x16xf32, #tpu.memory_space<vmem>>, vector<1x1xf32>
    %cst_18 = arith.constant dense<0.000000e+00> : vector<16xf32>
    %291 = vector.multi_reduction <add>, %2, %cst_18 [1] : vector<16x256xf32> to vector<16xf32>
    %292 = vector.shape_cast %291 : vector<16xf32> to vector<16x1xf32>
    %cst_19 = arith.constant 3.906250e-03 : f32
    %293 = vector.broadcast %cst_19 : f32 to vector<16x1xf32>
    %294 = arith.mulf %292, %293 : vector<16x1xf32>
    %295 = arith.mulf %294, %289 : vector<16x1xf32>
    %cst_20 = arith.constant dense<0.000000e+00> : vector<1xf32>
    %296 = vector.multi_reduction <add>, %295, %cst_20 [0] : vector<16x1xf32> to vector<1xf32>
    %297 = vector.shape_cast %296 : vector<1xf32> to vector<1x1xf32>
    %298 = arith.addf %297, %290 : vector<1x1xf32>
    %cst_21 = arith.constant 0.000000e+00 : f32
    %299 = vector.broadcast %cst_21 : f32 to vector<1x1xf32>
    %300 = arith.subf %299, %298 : vector<1x1xf32>
    %301 = math.exp %300 : vector<1x1xf32>
    %cst_22 = arith.constant 1.000000e+00 : f32
    %302 = vector.broadcast %cst_22 : f32 to vector<1x1xf32>
    %303 = arith.addf %302, %301 : vector<1x1xf32>
    %cst_23 = arith.constant 1.000000e+00 : f32
    %304 = vector.broadcast %cst_23 : f32 to vector<1x1xf32>
    %305 = arith.divf %304, %303 : vector<1x1xf32>
    %cst_24 = arith.constant 1.000000e+00 : f32
    %306 = vector.broadcast %cst_24 : f32 to vector<1x1xf32>
    %307 = arith.subf %306, %305 : vector<1x1xf32>
    %c0_25 = arith.constant 0 : index
    %c0_26 = arith.constant 0 : index
    %308 = vector.load %arg3[%c0_25, %c0_26] : memref<432x16xf32, #tpu.memory_space<vmem>>, vector<48x16xf32>
    %c344 = arith.constant 344 : index
    %c0_27 = arith.constant 0 : index
    %309 = vector.load %arg3[%c344, %c0_27] : memref<432x16xf32, #tpu.memory_space<vmem>>, vector<48x1xf32>
    %c48 = arith.constant 48 : index
    %c0_28 = arith.constant 0 : index
    %310 = vector.load %arg3[%c48, %c0_28] : memref<432x16xf32, #tpu.memory_space<vmem>>, vector<16x16xf32>
    %c392 = arith.constant 392 : index
    %c0_29 = arith.constant 0 : index
    %311 = vector.load %arg3[%c392, %c0_29] : memref<432x16xf32, #tpu.memory_space<vmem>>, vector<16x1xf32>
    %c80 = arith.constant 80 : index
    %c0_30 = arith.constant 0 : index
    %312 = vector.load %arg3[%c80, %c0_30] : memref<432x16xf32, #tpu.memory_space<vmem>>, vector<8x16xf32>
    %c64 = arith.constant 64 : index
    %c0_31 = arith.constant 0 : index
    %313 = vector.load %arg3[%c64, %c0_31] : memref<432x16xf32, #tpu.memory_space<vmem>>, vector<16x8xf32>
    %314 = vector.extract_strided_slice %308 {offsets = [0, 0], sizes = [16, 16], strides = [1, 1]} : vector<48x16xf32> to vector<16x16xf32>
    %cst_32 = arith.constant dense<0.000000e+00> : vector<16x256xf32>
    %315 = tpu.matmul %314, %2, %cst_32 {dimension_numbers = #tpu.dot_dimension_numbers<[1], [0], [0], [1], [0, 0, 1, 1], [], []>} : vector<16x16xf32>, vector<16x256xf32>, vector<16x256xf32> -> vector<16x256xf32>
    %316 = vector.extract_strided_slice %309 {offsets = [0, 0], sizes = [16, 1], strides = [1, 1]} : vector<48x1xf32> to vector<16x1xf32>
    %317 = vector.broadcast %316 : vector<16x1xf32> to vector<16x256xf32>
    %318 = arith.addf %315, %317 : vector<16x256xf32>
    %319 = vector.extract_strided_slice %308 {offsets = [16, 0], sizes = [32, 16], strides = [1, 1]} : vector<48x16xf32> to vector<32x16xf32>
    %320 = vector.extract_strided_slice %309 {offsets = [16, 0], sizes = [32, 1], strides = [1, 1]} : vector<48x1xf32> to vector<32x1xf32>
    %c0_33 = arith.constant 0 : index
    %c0_34 = arith.constant 0 : index
    %c0_35 = arith.constant 0 : index
    %321 = vector.load %arg1[%c0_33, %c0_34, %c0_35] : memref<2x16x256xf32, #tpu.memory_space<vmem>>, vector<1x16x256xf32>
    %322 = vector.shape_cast %321 : vector<1x16x256xf32> to vector<16x256xf32>
    %cst_36 = arith.constant dense<0.000000e+00> : vector<32x256xf32>
    %323 = tpu.matmul %319, %322, %cst_36 {dimension_numbers = #tpu.dot_dimension_numbers<[1], [0], [0], [1], [0, 0, 1, 1], [], []>} : vector<32x16xf32>, vector<16x256xf32>, vector<32x256xf32> -> vector<32x256xf32>
    %324 = vector.broadcast %320 : vector<32x1xf32> to vector<32x256xf32>
    %325 = arith.addf %323, %324 : vector<32x256xf32>
    %326 = vector.extract_strided_slice %325 {offsets = [0, 0], sizes = [16, 256], strides = [1, 1]} : vector<32x256xf32> to vector<16x256xf32>
    %327 = vector.extract_strided_slice %325 {offsets = [16, 0], sizes = [16, 256], strides = [1, 1]} : vector<32x256xf32> to vector<16x256xf32>
    %328 = arith.mulf %318, %326 : vector<16x256xf32>
    %cst_37 = arith.constant dense<0.000000e+00> : vector<8x256xf32>
    %329 = tpu.matmul %312, %328, %cst_37 {dimension_numbers = #tpu.dot_dimension_numbers<[1], [0], [0], [1], [0, 0, 1, 1], [], []>} : vector<8x16xf32>, vector<16x256xf32>, vector<8x256xf32> -> vector<8x256xf32>
    %cst_38 = arith.constant 1.000000e+00 : f32
    %330 = vector.broadcast %cst_38 : f32 to vector<8x256xf32>
    %c1 = arith.constant 1 : index
    %c0_39 = arith.constant 0 : index
    %c0_40 = arith.constant 0 : index
    %331 = vector.load %arg1[%c1, %c0_39, %c0_40] : memref<2x16x256xf32, #tpu.memory_space<vmem>>, vector<1x16x256xf32>
    %332 = vector.shape_cast %331 : vector<1x16x256xf32> to vector<16x256xf32>
    %cst_41 = arith.constant dense<0.000000e+00> : vector<32x256xf32>
    %333 = tpu.matmul %319, %332, %cst_41 {dimension_numbers = #tpu.dot_dimension_numbers<[1], [0], [0], [1], [0, 0, 1, 1], [], []>} : vector<32x16xf32>, vector<16x256xf32>, vector<32x256xf32> -> vector<32x256xf32>
    %334 = vector.broadcast %320 : vector<32x1xf32> to vector<32x256xf32>
    %335 = arith.addf %333, %334 : vector<32x256xf32>
    %336 = vector.extract_strided_slice %335 {offsets = [0, 0], sizes = [16, 256], strides = [1, 1]} : vector<32x256xf32> to vector<16x256xf32>
    %337 = vector.extract_strided_slice %335 {offsets = [16, 0], sizes = [16, 256], strides = [1, 1]} : vector<32x256xf32> to vector<16x256xf32>
    %338 = arith.mulf %318, %336 : vector<16x256xf32>
    %cst_42 = arith.constant dense<0.000000e+00> : vector<8x256xf32>
    %339 = tpu.matmul %312, %338, %cst_42 {dimension_numbers = #tpu.dot_dimension_numbers<[1], [0], [0], [1], [0, 0, 1, 1], [], []>} : vector<8x16xf32>, vector<16x256xf32>, vector<8x256xf32> -> vector<8x256xf32>
    %340 = arith.maximumf %329, %339 : vector<8x256xf32>
    %341 = arith.subf %329, %340 : vector<8x256xf32>
    %342 = math.exp %341 : vector<8x256xf32>
    %343 = arith.subf %339, %340 : vector<8x256xf32>
    %344 = math.exp %343 : vector<8x256xf32>
    %345 = arith.mulf %342, %330 : vector<8x256xf32>
    %346 = arith.addf %345, %344 : vector<8x256xf32>
    %cst_43 = arith.constant dense<0.000000e+00> : vector<16x256xf32>
    %347 = tpu.matmul %313, %342, %cst_43 {dimension_numbers = #tpu.dot_dimension_numbers<[1], [0], [0], [1], [0, 0, 1, 1], [], []>} : vector<16x8xf32>, vector<8x256xf32>, vector<16x256xf32> -> vector<16x256xf32>
    %348 = arith.mulf %347, %327 : vector<16x256xf32>
    %cst_44 = arith.constant dense<0.000000e+00> : vector<16x256xf32>
    %349 = tpu.matmul %313, %344, %cst_44 {dimension_numbers = #tpu.dot_dimension_numbers<[1], [0], [0], [1], [0, 0, 1, 1], [], []>} : vector<16x8xf32>, vector<8x256xf32>, vector<16x256xf32> -> vector<16x256xf32>
    %350 = arith.mulf %349, %337 : vector<16x256xf32>
    %351 = arith.addf %348, %350 : vector<16x256xf32>
    %cst_45 = arith.constant 1.000000e+00 : f32
    %352 = vector.broadcast %cst_45 : f32 to vector<8x256xf32>
    %353 = arith.divf %352, %346 : vector<8x256xf32>
    %cst_46 = arith.constant dense<0.000000e+00> : vector<16x256xf32>
    %354 = tpu.matmul %313, %353, %cst_46 {dimension_numbers = #tpu.dot_dimension_numbers<[1], [0], [0], [1], [0, 0, 1, 1], [], []>} : vector<16x8xf32>, vector<8x256xf32>, vector<16x256xf32> -> vector<16x256xf32>
    %355 = arith.mulf %351, %354 : vector<16x256xf32>
    %cst_47 = arith.constant dense<0.000000e+00> : vector<16x256xf32>
    %356 = tpu.matmul %310, %355, %cst_47 {dimension_numbers = #tpu.dot_dimension_numbers<[1], [0], [0], [1], [0, 0, 1, 1], [], []>} : vector<16x16xf32>, vector<16x256xf32>, vector<16x256xf32> -> vector<16x256xf32>
    %357 = vector.broadcast %311 : vector<16x1xf32> to vector<16x256xf32>
    %358 = arith.addf %356, %357 : vector<16x256xf32>
    %359 = vector.broadcast %305 : vector<1x1xf32> to vector<16x256xf32>
    %360 = arith.mulf %359, %288 : vector<16x256xf32>
    %361 = vector.broadcast %307 : vector<1x1xf32> to vector<16x256xf32>
    %362 = arith.mulf %361, %358 : vector<16x256xf32>
    %363 = arith.addf %360, %362 : vector<16x256xf32>
    %c0_48 = arith.constant 0 : index
    %c0_49 = arith.constant 0 : index
    %c0_50 = arith.constant 0 : index
    %364 = vector.load %arg4[%c0_48, %c0_49, %c0_50] : memref<1x16x256xf32, #tpu.memory_space<vmem>>, vector<1x16x256xf32>
    %365 = vector.shape_cast %364 : vector<1x16x256xf32> to vector<16x256xf32>
    %366 = vector.shape_cast %363 : vector<16x256xf32> to vector<1x16x256xf32>
    tpu.vector_store %arg4[%c0_48, %c0_49, %c0_50], %366 {strides = array<i32>} : memref<1x16x256xf32, #tpu.memory_space<vmem>>, vector<1x16x256xf32>,
    return
  }
  func.func @transform_0(%arg0: i32) -> (i32, i32, i32) {
    %c0_i32 = arith.constant 0 : i32
    %c0_i32_0 = arith.constant 0 : i32
    %c0_i32_1 = arith.constant 0 : i32
    %c0_i32_2 = arith.constant 0 : i32
    return %c0_i32, %c0_i32_0, %c0_i32_1 : i32, i32, i32
  }
  func.func @transform_1(%arg0: i32) -> (i32, i32) {
    %c0_i32 = arith.constant 0 : i32
    %c0_i32_0 = arith.constant 0 : i32
    %c0_i32_1 = arith.constant 0 : i32
    return %c0_i32, %c0_i32_0 : i32, i32
  }
  func.func @transform_2(%arg0: i32) -> (i32, i32) {
    %c0_i32 = arith.constant 0 : i32
    %c0_i32_0 = arith.constant 0 : i32
    %c0_i32_1 = arith.constant 0 : i32
    return %c0_i32, %c0_i32_0 : i32, i32
  }
  func.func @transform_3(%arg0: i32) -> (i32, i32, i32) {
    %c0_i32 = arith.constant 0 : i32
    %c0_i32_0 = arith.constant 0 : i32
    %c0_i32_1 = arith.constant 0 : i32
    return %arg0, %c0_i32, %c0_i32_0 : i32, i32, i32
  }
}

</mosaic_0001>

<bundles_post_ra>
// kernel: local_global_attention.1
= control target key start
LH: loop header
LB: loop body
LE: loop exit
PB: predicated region body
PF: predicated region fallthrough
CT: control target
= control target key end

     0   :  { %8 = vsyncpa [#allocation3], 0  ;;  %s4842_s0 = inlined_call_operand.vmem [shape: f32[2,16,256], index: 0, kind: input, shape index: {}]   ;;  %s4843_s1 = inlined_call_operand.vmem [shape: f32[56,256], index: 1, kind: input, shape index: {}]   ;;  %s4844_s2 = inlined_call_operand.vmem [shape: f32[432,16], index: 2, kind: input, shape index: {}]   ;;  %s4845_s3 = inlined_call_operand.hbm [shape: f32[2,16,256], index: 3, kind: output, shape index: {}]  }
   0x1   :  { %10 = vsyncpa [#allocation3 + $0x1], 0  ;;  %s3065_s12 = smov 0   ;;  %s3067_s13 = smov 0  }
   0x2   :  { %s3069_s14 = smov 0   ;;  %s3071_s15 = smov 0  }
   0x3 LB: > { %s3086_s16 = sadd.s32 4294967295, %s2979_s15   ;;  %s2535_s17 = sadd.s32 4294967294, %s2979_s15   ;;  %s2979_s15 = sphi %s3071_s15, %s5095_s15   ;;  %s2975_s14 = sphi %s3069_s14, %s5094_s14   ;;  %s2971_s13 = sphi %s3067_s13, %s5093_s13   ;;  %s2967_s12 = sphi %s3065_s12, %s5092_s12  }
   0x4   : > { %s3090_s18 = sadd.s32 1, %s2979_s15   ;;  %s86_s19 = sadd.s32 1, %s2975_s14 }
   0x5   : > { %s83_s20 = ssub.s32 %s2979_s15, %s3090_s18  ;;  %p96_p0 = scmp.ne.s32.totalorder %s2975_s14, %s2971_s13 }
   0x6   : > { %p84_p1 = scmp.eq.s32.totalorder %s83_s20, 0  ;;  %p97_p2 = scmp.eq.s32.totalorder %s3086_s16, 1 }
   0x7   : > { %p102_p3 = scmp.ne.s32.totalorder %s2971_s13, %s2967_s12  ;;  %p103_p4 = scmp.eq.s32.totalorder %s2535_s17, 1 }
   0x8   : > { %s3101_s21 = scalar_select %p84_p1, %s2975_s14, %s86_s19  }
   0x9   : > { %p3103_p5 = por %p97_p2, %p96_p0  ;;  %p3107_p6 = por %p103_p4, %p102_p3 }
   0xa   : > { %p2537_p7 = scmp.ge.s32.totalorder %s2979_s15, 1  ;;  %p130_p8 = scmp.lt.s32.totalorder %s2979_s15, 3 }
   0xc   : > { %p131_p9 = pnand %p2537_p7, %p130_p8 }
   0xe   : > { %134 = sbr.rel (%p131_p9) target bundleno = 1793 (0x701), region = 32 }
  0x15   : > { %v3116_v0 = vld [vmem:[%s4843_s1 + $0x50] sm:$0xff]  ;;  %v2981_v1 = vmov 7   ;;  %v2982_v2 = vmov 1   ;;  %v2983_v3 = vmov 8   ;;  %v2984_v4 = vmov 9   ;;  %s2576_s26 = sshll.u32 %s3086_s16, 5 }
  0x16   : > { %2789 = vset.pattern.permute.xlu1 %v2981_v1  ;;  %2788 = vset.pattern.permute.xlu0 %v2982_v2  ;;  %s3126_s29 = scalar_lea.vmem %s4842_s0, %s2576_s26  ;;  %v2985_v5 = vmov 2   ;;  %v4846_v6 = vmov 0   ;;  %v2987_v8 = vmov 14   ;;  %s2988_s30 = smov 3   ;;  %v2990_v9 = vmov 15   ;;  %v3142_v10 = vld [vmem:[%s4843_s1 + $0x60] sm:$0xff] }
  0x17   : > { %458 = vperm.xlu1 %2789, %v3116_v0   ;;  %337 = vperm.xlu0 %2788, %v3116_v0   ;;  %v3132_v7 = vld [vmem:[%s3126_s29] sm:$0xff]  ;;  %s2989_s4 = smov 2   ;;  %v3146_v11 = vld [vmem:[%s3126_s29 + $0x8] sm:$0xff]  ;;  %v2991_v12 = vmov 16   ;;  %v2992_v13 = vmov 3   ;;  %v2993_v14 = vmov 11  }
  0x18   : > { %v2994_v15 = vmov 10   ;;  %v2995_v16 = vmov 17   ;;  %v3166_v17 = vld [vmem:[%s3126_s29 + $0x10] sm:$0xff]  ;;  %s2996_s7 = smov 1   ;;  %v2997_v18 = vmov 4   ;;  %v2998_v19 = vmov 12  }
  0x19   : > { %4943 = vst [vmem:[#allocation5_spill] sm:$0xff] %v3166_v17  ;;  %v2999_v20 = vmov 30   ;;  %s3000_s8 = smov 127   ;;  %v3001_v21 = vmov 28   ;;  %v3002_v22 = vmov 29   ;;  %v3003_v23 = vmov 13  }
  0x1a   : > { %v3195_v24 = vld [vmem:[%s3126_s29 + $0x18] sm:$0xff]  ;;  %v3004_v25 = vmov 5   ;;  %v3005_v26 = vmov 37   ;;  %s3006_s9 = smov 126   ;;  %v3007_v27 = vmov 35   ;;  %v3008_v28 = vmov 18  }
  0x1b   : > { %2790 = vset.pattern.permute.xlu1 %v2983_v3  ;;  %2792 = vset.pattern.permute.xlu0 %v2984_v4  ;;  %v4853_v29 = vmov 44   ;;  %s3010_s10 = smov 125   ;;  %v3011_v30 = vmov 6   ;;  %v3012_v31 = vmov 36   ;;  %v3013_v32 = vmov 31   ;;  %s3036_s24 = smov 48  }
  0x1c   : > { %470 = vperm.xlu1 %2790, %v3116_v0   ;;  %486 = vperm.xlu0 %2792, %v3116_v0   ;;  %v4852_v34 = vmov 39   ;;  %v3015_v36 = vmov 20   ;;  %v3016_v39 = vmov 38   ;;  %v3017_v42 = vmov 19   ;;  %s3037_s25 = smov 32   ;;  %s3038_s26 = smov 16  }
  0x1d   : > { %v4849_v43 = vmov 46   ;;  %v3019_v47 = vmov 33   ;;  %v3020_v50 = vmov 45   ;;  %v3021_v51 = vmov 42   ;;  %s3040_s27 = smov 96   ;;  %s3041_s6 = smov 80  }
  0x1e   : > { %v3022_v54 = vmov 43   ;;  %v4854_v56 = vmov 40   ;;  %v4850_v59 = vmov 41   ;;  %v3025_v62 = vmov 21   ;;  %s2577_s5 = sshll.u32 %s3086_s16, 9 }
  0x1f   : > { %vm1387_vm12 = vcmask 130048   ;;  %vm1576_vm13 = vcmask 7168   ;;  %vm2094_vm14 = vcmask 64512  }
  0x20   : > { %2791 = vset.pattern.permute.xlu1 %v2985_v5  ;;  %2793 = vset.pattern.permute.xlu0 %v4846_v6  ;;  %v4851_v6 = vmov 27  }
  0x21   : > { %353 = vperm.xlu1 %2791, %v3116_v0   ;;  %324 = vperm.xlu0 %2793, %v3116_v0  }
  0x25   : > { %2794 = vset.pattern.permute.xlu1 %v2987_v8  ;;  %170 = vrot.lane.b32.xlu0 %v3132_v7, %s2988_s30 }
  0x26   : > { %595 = vperm.xlu1 %2794, %v3116_v0  }
  0x29   : > { %197 = vrot.lane.b32.xlu0 %v3132_v7, %s2989_s4 }
  0x2a   : > { %2795 = vset.pattern.permute.xlu1 %v2990_v9 }
  0x2b   : > { %607 = vperm.xlu1 %2795, %v3116_v0  }
  0x2d   : > { %329 = vperm.xlu0 %2793, %v3142_v10  }
  0x2f   : > { %174 = vrot.lane.b32.xlu1 %v3146_v11, %s2988_s30 }
  0x30   : > { %2796 = vset.pattern.permute.xlu1 %v2982_v2 }
  0x31   : > { %2798 = vset.pattern.permute.xlu0 %v2981_v1 }
  0x32   : > { %462 = vperm.xlu0 %2798, %v3142_v10  }
  0x33   : > { %201 = vrot.lane.b32.xlu1 %v3146_v11, %s2989_s4 }
  0x36   : > { %2801 = vset.pattern.permute.xlu0 %v2991_v12 }
  0x37   : > { %341 = vperm.xlu1 %2796, %v3142_v10   ;;  %623 = vperm.xlu0 %2801, %v3116_v0  }
  0x3b   : > { %2797 = vset.pattern.permute.xlu1 %v2992_v13  ;;  %2802 = vset.pattern.permute.xlu0 %v2985_v5  ;;  %v3027_v5 = vmov 32  }
  0x3c   : > { %369 = vperm.xlu1 %2797, %v3116_v0   ;;  %357 = vperm.xlu0 %2802, %v3142_v10  }
  0x40   : > { %2799 = vset.pattern.permute.xlu1 %v2983_v3  ;;  %2805 = vset.pattern.permute.xlu0 %v2993_v14  ;;  %v3026_v3 = vmov 24  }
  0x41   : > { %474 = vperm.xlu1 %2799, %v3142_v10   ;;  %518 = vperm.xlu0 %2805, %v3116_v0  }
  0x45   : > { %2800 = vset.pattern.permute.xlu1 %v2994_v15  ;;  %2808 = vset.pattern.permute.xlu0 %v2995_v16 }
  0x46   : > { %502 = vperm.xlu1 %2800, %v3116_v0   ;;  %639 = vperm.xlu0 %2808, %v3116_v0  }
  0x4a   : > { %222 = vrot.lane.b32.xlu1 %v3132_v7, %s2996_s7  ;;  %172 = vrot.lane.b32.xlu0 %v3166_v17, %s2988_s30 }
  0x4b   : > { %2803 = vset.pattern.permute.xlu1 %v2997_v18  ;;  %2811 = vset.pattern.permute.xlu0 %v2992_v13  ;;  %v4848_v13 = vmov 25  }
  0x4e   : > { %226 = vrot.lane.b32.xlu1 %v3146_v11, %s2996_s7  ;;  %199 = vrot.lane.b32.xlu0 %v3166_v17, %s2989_s4 }
  0x52   : > { %385 = vperm.xlu1 %2803, %v3116_v0   ;;  %373 = vperm.xlu0 %2811, %v3142_v10  }
  0x56   : > { %2804 = vset.pattern.permute.xlu1 %v2984_v4  ;;  %2814 = vset.pattern.permute.xlu0 %v2998_v19 }
  0x57   : > { %490 = vperm.xlu1 %2804, %v3142_v10   ;;  %534 = vperm.xlu0 %2814, %v3116_v0  }
  0x5b   : > { %2806 = vset.pattern.permute.xlu1 %v2987_v8  ;;  %2817 = vset.pattern.permute.xlu0 %v2999_v20 }
  0x5c   : > { %599 = vperm.xlu1 %2806, %v3142_v10   ;;  %872 = vperm.xlu0 %2817, %v3116_v0  }
  0x60   : > { %2807 = vset.pattern.permute.xlu1 %v2990_v9  ;;  %224 = vrot.lane.b32.xlu0 %v3166_v17, %s2996_s7 }
  0x61   : > { %611 = vperm.xlu1 %2807, %v3142_v10   ;;  %2820 = vset.pattern.permute.xlu0 %v2997_v18 }
  0x64   : > { %247 = vrot.lane.b32.xlu0 %v3132_v7, %s3000_s8 }
  0x65   : > { %2809 = vset.pattern.permute.xlu1 %v3001_v21 }
  0x66   : > { %844 = vperm.xlu1 %2809, %v3116_v0  }
  0x68   : > { %389 = vperm.xlu0 %2820, %v3142_v10  }
  0x6a   : > { %2810 = vset.pattern.permute.xlu1 %v3002_v22 }
  0x6b   : > { %856 = vperm.xlu1 %2810, %v3116_v0  }
  0x6c   : > { %2823 = vset.pattern.permute.xlu0 %v3003_v23 }
  0x6d   : > { %550 = vperm.xlu0 %2823, %v3116_v0  }
  0x6f   : > { %176 = vrot.lane.b32.xlu1 %v3195_v24, %s2988_s30  ;;  %s146_s30 = sand.u32 1, %s2971_s13  }
  0x70   : > { %2812 = vset.pattern.permute.xlu1 %v3004_v25  ;;  %s4800_s16 = scalar_lea.sflag [#allocation3], %s146_s30 }
  0x71   : > { %2826 = vset.pattern.permute.xlu0 %v3001_v21 }
  0x72   : > { %848 = vperm.xlu0 %2826, %v3142_v10  }
  0x73   : > { %203 = vrot.lane.b32.xlu1 %v3195_v24, %s2989_s4  ;;  %s2538_s4 = sshll.u32 %s146_s30, 5 }
  0x76   : > { %2829 = vset.pattern.permute.xlu0 %v3005_v26 }
  0x77   : > { %401 = vperm.xlu1 %2812, %v3116_v0   ;;  %1009 = vperm.xlu0 %2829, %v3116_v0  }
  0x7b   : > { %2813 = vset.pattern.permute.xlu1 %v2994_v15  ;;  %272 = vrot.lane.b32.xlu0 %v3132_v7, %s3006_s9 }
  0x7c   : > { %506 = vperm.xlu1 %2813, %v3142_v10   ;;  %2832 = vset.pattern.permute.xlu0 %v3004_v25 }
  0x7f   : > { %405 = vperm.xlu0 %2832, %v3142_v10  }
  0x80   : > { %2815 = vset.pattern.permute.xlu1 %v2991_v12 }
  0x81   : > { %627 = vperm.xlu1 %2815, %v3142_v10  }
  0x83   : > { %2837 = vset.pattern.permute.xlu0 %v3007_v27 }
  0x84   : > { %985 = vperm.xlu0 %2837, %v3142_v10  }
  0x85   : > { %2816 = vset.pattern.permute.xlu1 %v3008_v28 }
  0x86   : > { %655 = vperm.xlu1 %2816, %v3116_v0  }
  0x88   : > { %2840 = vset.pattern.permute.xlu0 %v4853_v29 }
  0x89   : > { %1146 = vperm.xlu0 %2840, %v3116_v0  }
  0x8a   : > { %2818 = vset.pattern.permute.xlu1 %v3007_v27  ;;  %v3353_v27 = vld [vmem:[%s4843_s1] sm:$0x7f] }
  0x8b   : > { %981 = vperm.xlu1 %2818, %v3116_v0  }
  0x8d   : > { %297 = vrot.lane.b32.xlu0 %v3132_v7, %s3010_s10 }
  0x8e   : > { %2841 = vset.pattern.permute.xlu0 %v3011_v30 }
  0x8f   : > { %2819 = vset.pattern.permute.xlu1 %v3012_v31 }
  0x90   : > { %993 = vperm.xlu1 %2819, %v3116_v0  }
  0x91   : > { %421 = vperm.xlu0 %2841, %v3142_v10  }
  0x94   : > { %228 = vrot.lane.b32.xlu1 %v3195_v24, %s2996_s7 }
  0x95   : > { %2844 = vset.pattern.permute.xlu0 %v3013_v32  ;;  %2821 = vset.pattern.permute.xlu1 %v3011_v30 }
  0x96   : > { %v3225_v33 = vpop.permute.xlu1 %458  ;;  %892 = vperm.xlu0 %2844, %v3142_v10   ;;  %v3247_v40 = vpop.permute.xlu0 %337 }
  0x98   : > { %251 = vrot.lane.b32.xlu1 %v3146_v11, %s3000_s8 }
  0x9a   : > { %2847 = vset.pattern.permute.xlu0 %v4852_v34 }
  0x9b   : > { %v3231_v35 = vpop.permute.xlu1 %470  ;;  %1041 = vperm.xlu0 %2847, %v3116_v0   ;;  %v3258_v45 = vpop.permute.xlu0 %486 }
  0x9c   : > { %417 = vperm.xlu1 %2821, %v3116_v0  }
  0x9f   : > { %2848 = vset.pattern.permute.xlu0 %v3015_v36 }
  0xa0   : > { %v3235_v37 = vpop.permute.xlu1 %353  ;;  %2822 = vset.pattern.permute.xlu1 %v2993_v14  ;;  %687 = vperm.xlu0 %2848, %v3116_v0   ;;  %v3266_v48 = vpop.permute.xlu0 %324 }
  0xa1   : > { %522 = vperm.xlu1 %2822, %v3142_v10  }
  0xa4   : > { %691 = vperm.xlu0 %2848, %v3142_v10   ;;  %v3275_v53 = vpop.permute.xlu0 %170 }
  0xa5   : > { %v3241_v38 = vpop.permute.xlu1 %595  ;;  %2824 = vset.pattern.permute.xlu1 %v2995_v16  ;;  %v178_v16 = vlaneseq }
  0xa6   : > { %643 = vperm.xlu1 %2824, %v3142_v10  }
  0xa7   : > { %v3343_v21 = vand.u32 127, %v178_v16 }
  0xa8   : > { %2853 = vset.pattern.permute.xlu0 %v3016_v39  ;;  %v3284_v57 = vpop.permute.xlu0 %197 }
  0xa9   : > { %1029 = vperm.xlu0 %2853, %v3142_v10   ;;  %4954 = vst [vmem:[#allocation16_spill] sm:$0xff] %v3343_v21  ;;  %vm180_vm0 = vcmp.lt.s32.totalorder %v3343_v21, 3  ;;  %vm205_vm1 = vcmp.lt.s32.totalorder %v3343_v21, 2  ;;  %vm230_vm2 = vcmp.lt.s32.totalorder %v3343_v21, 1  ;;  %vm255_vm3 = vcmp.lt.s32.totalorder %v3343_v21, 127 }
  0xaa   : > { %v3249_v41 = vpop.permute.xlu1 %607  ;;  %2825 = vset.pattern.permute.xlu1 %v3017_v42  ;;  %vm280_vm4 = vcmp.lt.s32.totalorder %v3343_v21, 126  ;;  %vm305_vm5 = vcmp.lt.s32.totalorder %v3343_v21, 125 }
  0xab   : > { %671 = vperm.xlu1 %2825, %v3116_v0  }
  0xac   : > { %v3294_v60 = vpop.permute.xlu0 %329 }
  0xad   : > { %2856 = vset.pattern.permute.xlu0 %v4849_v43  ;;  %4946 = vst [vmem:[#allocation8_spill] sm:$0xff] %v3294_v60  ;;  %v4974_v60 = vmov 39  }
  0xae   : > { %v3254_v44 = vpop.permute.xlu1 %174  ;;  %1178 = vperm.xlu0 %2856, %v3116_v0  }
  0xaf   : > { %2827 = vset.pattern.permute.xlu1 %v3002_v22 }
  0xb0   : > { %860 = vperm.xlu1 %2827, %v3142_v10  }
  0xb1   : > { %v3303_v1 = vpop.permute.xlu0 %462 }
  0xb2   : > { %v3261_v46 = vpop.permute.xlu1 %201  ;;  %2857 = vset.pattern.permute.xlu0 %v3019_v47  ;;  %4947 = vst [vmem:[#allocation9_spill] sm:$0xff] %v3303_v1  ;;  %v4969_v1 = vmov 40  }
  0xb3   : > { %924 = vperm.xlu0 %2857, %v3142_v10  }
  0xb4   : > { %2828 = vset.pattern.permute.xlu1 %v3013_v32 }
  0xb5   : > { %888 = vperm.xlu1 %2828, %v3116_v0  }
  0xb6   : > { %v3268_v49 = vpop.permute.xlu1 %341  ;;  %v3310_v4 = vpop.permute.xlu0 %623 }
  0xb7   : > { %4944 = vst [vmem:[#allocation6_spill] sm:$0xff] %v3268_v49  ;;  %2858 = vset.pattern.permute.xlu0 %v3020_v50 }
  0xb8   : > { %1162 = vperm.xlu0 %2858, %v3116_v0  }
  0xb9   : > { %2830 = vset.pattern.permute.xlu1 %v3021_v51 }
  0xba   : > { %1118 = vperm.xlu1 %2830, %v3116_v0  }
  0xbb   : > { %v3273_v52 = vpop.permute.xlu1 %369  ;;  %v3318_v9 = vpop.permute.xlu0 %357 }
  0xbc   : > { %1166 = vperm.xlu0 %2858, %v3142_v10   ;;  %4949 = vst [vmem:[#allocation11_spill] sm:$0xff] %v3318_v9  ;;  %v3030_v9 = vmov 34  }
  0xbe   : > { %2831 = vset.pattern.permute.xlu1 %v3022_v54 }
  0xbf   : > { %1130 = vperm.xlu1 %2831, %v3116_v0  }
  0xc0   : > { %v3280_v55 = vpop.permute.xlu1 %474  ;;  %2863 = vset.pattern.permute.xlu0 %v4854_v56  ;;  %v3327_v14 = vpop.permute.xlu0 %518 }
  0xc1   : > { %4945 = vst [vmem:[#allocation7_spill] sm:$0xff] %v3280_v55  ;;  %1061 = vperm.xlu0 %2863, %v3142_v10  }
  0xc3   : > { %276 = vrot.lane.b32.xlu1 %v3146_v11, %s3006_s9 }
  0xc4   : > { %2833 = vset.pattern.permute.xlu1 %v2998_v19  ;;  %v3337_v19 = vshrl.u32 %v178_v16, 7 }
  0xc5   : > { %v3289_v58 = vpop.permute.xlu1 %502  ;;  %2866 = vset.pattern.permute.xlu0 %v4850_v59 }
  0xc6   : > { %1077 = vperm.xlu0 %2866, %v3142_v10   ;;  %v3346_v22 = vsub.s32 0, %v3337_v19  ;;  %v3365_v30 = vsub.s32 1, %v3337_v19 }
  0xc7   : > { %538 = vperm.xlu1 %2833, %v3142_v10  }
  0xc8   : > { %4955 = vst [vmem:[#allocation17_spill] sm:$0xff] %v3346_v22  ;;  %4957 = vst [vmem:[#allocation19_spill] sm:$0xff] %v3365_v30 }
  0xc9   : > { %v3296_v61 = vpop.permute.xlu1 %222 }
  0xca   : > { %2869 = vset.pattern.permute.xlu0 %v3025_v62 }
  0xcb   : > { %2834 = vset.pattern.permute.xlu1 %v3008_v28  ;;  %732 = vperm.xlu0 %2869, %v3116_v0   ;;  %v3362_v28 = vrot.slane %v3353_v27, %v3346_v22 }
  0xcc   : > { %659 = vperm.xlu1 %2834, %v3142_v10  }
  0xcd   : > { %v3301_v63 = vpop.permute.xlu1 %226 }
  0xcf   : > { %736 = vperm.xlu0 %2869, %v3142_v10  }
  0xd0   : > { %2835 = vset.pattern.permute.xlu1 %v2999_v20  ;;  %v3339_v20 = vpop.permute.xlu0 %639 }
  0xd1   : > { %876 = vperm.xlu1 %2835, %v3142_v10   ;;  %v3308_v2 = vpop.permute.xlu1 %385  ;;  %4953 = vst [vmem:[#allocation15_spill] sm:$0xff] %v3339_v20 }
  0xd3   : > { %2873 = vset.pattern.permute.xlu0 %v3026_v3 }
  0xd4   : > { %776 = vperm.xlu0 %2873, %v3116_v0  }
  0xd5   : > { %2836 = vset.pattern.permute.xlu1 %v3027_v5 }
  0xd6   : > { %904 = vperm.xlu1 %2836, %v3116_v0   ;;  %v3315_v8 = vpop.permute.xlu1 %490 }
  0xd7   : > { %4948 = vst [vmem:[#allocation10_spill] sm:$0xff] %v3315_v8 }
  0xd8   : > { %780 = vperm.xlu0 %2873, %v3142_v10  }
  0xda   : > { %2838 = vset.pattern.permute.xlu1 %v3012_v31 }
  0xdb   : > { %997 = vperm.xlu1 %2838, %v3142_v10   ;;  %v3322_v12 = vpop.permute.xlu1 %599 }
  0xdc   : > { %4950 = vst [vmem:[#allocation12_spill] sm:$0xff] %v3322_v12  ;;  %2877 = vset.pattern.permute.xlu0 %v4848_v13 }
  0xdd   : > { %796 = vperm.xlu0 %2877, %v3142_v10  }
  0xdf   : > { %2839 = vset.pattern.permute.xlu1 %v3016_v39  ;;  %v3380_v39 = vrot.slane %v3353_v27, %v3365_v30 }
  0xe0   : > { %1025 = vperm.xlu1 %2839, %v3116_v0   ;;  %v3330_v15 = vpop.permute.xlu1 %611 }
  0xe1   : > { %4951 = vst [vmem:[#allocation13_spill] sm:$0xff] %v3330_v15  ;;  %2880 = vset.pattern.permute.xlu0 %v4851_v6 }
  0xe4   : > { %249 = vrot.lane.b32.xlu1 %v3166_v17, %s3000_s8 }
  0xe5   : > { %v3334_v18 = vpop.permute.xlu1 %844  ;;  %2842 = vset.pattern.permute.xlu1 %v3003_v23  ;;  %v3355_v23 = vpop.permute.xlu0 %172 }
  0xe6   : > { %4952 = vst [vmem:[#allocation14_spill] sm:$0xff] %v3334_v18 }
  0xe8   : > { %253 = vrot.lane.b32.xlu1 %v3195_v24, %s3000_s8  ;;  %s3039_s8 = smov 112  }
  0xe9   : > { %v200_v50 = vpop.permute.xlu0 %199 }
  0xea   : > { %v3348_v25 = vpop.permute.xlu1 %856 }
  0xeb   : > { %4956 = vst [vmem:[#allocation18_spill] sm:$0xff] %v3348_v25 }
  0xec   : > { %301 = vrot.lane.b32.xlu1 %v3146_v11, %s3010_s10 }
  0xed   : > { %v3396_v43 = vpop.permute.xlu0 %373 }
  0xee   : > { %v3367_v31 = vpop.permute.xlu1 %176  ;;  %4960 = vst [vmem:[#allocation22_spill] sm:$0xff] %v3396_v43 }
  0xef   : > { %v184_v32 = vsel %vm180_vm0, %v3367_v31, %v3355_v23 }
  0xf0   : > { %v3374_v36 = vmul.f32 %v3362_v28, %v184_v32  ;;  %554 = vperm.xlu1 %2842, %v3142_v10  }
  0xf2   : > { %4958 = vst [vmem:[#allocation20_spill] sm:$0xff] %v3374_v36  ;;  %v204_v62 = vpop.permute.xlu1 %203 }
  0xf3   : > { %v3384_v3 = vsel %vm205_vm1, %v200_v50, %v204_v62  ;;  %v209_v16 = vsel %vm205_vm1, %v204_v62, %v200_v50  ;;  %v3403_v50 = vpop.permute.xlu0 %534 }
  0xf4   : > { %v3389_v32 = vmul.f32 %v3380_v39, %v209_v16  ;;  %2843 = vset.pattern.permute.xlu1 %v3017_v42 }
  0xf5   : > { %675 = vperm.xlu1 %2843, %v3142_v10  }
  0xf6   : > { %4959 = vst [vmem:[#allocation21_spill] sm:$0xff] %v3389_v32  ;;  %v3394_v13 = vpop.permute.xlu1 %401 }
  0xf7   : > { %v3410_v62 = vpop.permute.xlu0 %872 }
  0xf8   : > { %4963 = vst [vmem:[#allocation25_spill] sm:$0xff] %v3410_v62 }
  0xf9   : > { %2845 = vset.pattern.permute.xlu1 %v3019_v47 }
  0xfa   : > { %920 = vperm.xlu1 %2845, %v3116_v0  }
  0xfb   : > { %v3400_v59 = vpop.permute.xlu1 %506  ;;  %v225_v47 = vpop.permute.xlu0 %224 }
  0xfc   : > { %4961 = vst [vmem:[#allocation23_spill] sm:$0xff] %v3400_v59 }
  0xfe   : > { %2846 = vset.pattern.permute.xlu1 %v3005_v26 }
  0xff   : > { %1013 = vperm.xlu1 %2846, %v3142_v10   ;;  %v3424_v6 = vpop.permute.xlu0 %247 }
 0x100   : > { %v3406_v42 = vpop.permute.xlu1 %627 }
 0x101   : > { %4962 = vst [vmem:[#allocation24_spill] sm:$0xff] %v3406_v42 }
 0x103   : > { %2849 = vset.pattern.permute.xlu1 %v3021_v51  ;;  %v3422_v51 = vsub.s32 2, %v3337_v19  ;;  %v3439_v59 = vpop.permute.xlu0 %389 }
 0x104   : > { %1122 = vperm.xlu1 %2849, %v3142_v10   ;;  %4968 = vst [vmem:[#allocation30_spill] sm:$0xff] %v3439_v59 }
 0x105   : > { %v3412_v16 = vpop.permute.xlu1 %655  ;;  %4966 = vst [vmem:[#allocation28_spill] sm:$0xff] %v3422_v51 }
 0x106   : > { %4964 = vst [vmem:[#allocation26_spill] sm:$0xff] %v3412_v16 }
 0x107   : > { %v3448_v55 = vpop.permute.xlu0 %550 }
 0x108   : > { %2850 = vset.pattern.permute.xlu1 %v3022_v54  ;;  %v3433_v54 = vrot.slane %v3353_v27, %v3422_v51 }
 0x109   : > { %1134 = vperm.xlu1 %2850, %v3142_v10  }
 0x10a   : > { %v3416_v26 = vpop.permute.xlu1 %981 }
 0x10b   : > { %4965 = vst [vmem:[#allocation27_spill] sm:$0xff] %v3416_v26 }
 0x10d   : > { %274 = vrot.lane.b32.xlu1 %v3166_v17, %s3006_s9 }
 0x10e   : > { %2851 = vset.pattern.permute.xlu1 %v3027_v5 }
 0x10f   : > { %v3426_v34 = vpop.permute.xlu1 %993 }
 0x110   : > { %4967 = vst [vmem:[#allocation29_spill] sm:$0xff] %v3426_v34 }
 0x111   : > { %278 = vrot.lane.b32.xlu1 %v3195_v24, %s3006_s9 }
 0x113   : > { %v229_v29 = vpop.permute.xlu1 %228 }
 0x114   : > { %v232_v5 = vsel %vm230_vm2, %v225_v47, %v229_v29  ;;  %v234_v56 = vsel %vm230_vm2, %v229_v29, %v225_v47  ;;  %v4971_v47 = vmov 44  }
 0x115   : > { %v3442_v42 = vmul.f32 %v3433_v54, %v234_v56  ;;  %908 = vperm.xlu1 %2851, %v3142_v10   ;;  %v849_v56 = vpop.permute.xlu0 %848 }
 0x117   : > { %v3445_v8 = vpop.permute.xlu1 %251 }
 0x119   : > { %2852 = vset.pattern.permute.xlu1 %v3030_v9  ;;  %v3460_v49 = vpop.permute.xlu0 %1009 }
 0x11a   : > { %936 = vperm.xlu1 %2852, %v3116_v0   ;;  %4973 = vst [vmem:[#allocation33_spill] sm:$0xff] %v3460_v49 }
 0x11b   : > { %v3450_v26 = vpop.permute.xlu1 %417 }
 0x11e   : > { %2854 = vset.pattern.permute.xlu1 %v4969_v1  ;;  %v3469_v1 = vpop.permute.xlu0 %272 }
 0x11f   : > { %1057 = vperm.xlu1 %2854, %v3116_v0  }
 0x120   : > { %v3454_v29 = vpop.permute.xlu1 %522 }
 0x121   : > { %4970 = vst [vmem:[#allocation31_spill] sm:$0xff] %v3454_v29 }
 0x123   : > { %2855 = vset.pattern.permute.xlu1 %v4971_v47  ;;  %v3472_v47 = vpop.permute.xlu0 %405 }
 0x124   : > { %1150 = vperm.xlu1 %2855, %v3142_v10   ;;  %4976 = vst [vmem:[#allocation35_spill] sm:$0xff] %v3472_v47 }
 0x125   : > { %v3458_v59 = vpop.permute.xlu1 %643 }
 0x126   : > { %4972 = vst [vmem:[#allocation32_spill] sm:$0xff] %v3458_v59  ;;  %v4977_v59 = vmov 41  }
 0x127   : > { %v3478_v34 = vpop.permute.xlu0 %985 }
 0x128   : > { %299 = vrot.lane.b32.xlu1 %v3166_v17, %s3010_s10  ;;  %4979 = vst [vmem:[#allocation37_spill] sm:$0xff] %v3478_v34 }
 0x129   : > { %2859 = vset.pattern.permute.xlu1 %v4974_v60  ;;  %v3031_v60 = vmov 47  }
 0x12a   : > { %v3465_v15 = vpop.permute.xlu1 %671 }
 0x12b   : > { %4975 = vst [vmem:[#allocation34_spill] sm:$0xff] %v3465_v15  ;;  %v3485_v62 = vpop.permute.xlu0 %1146 }
 0x12c   : > { %303 = vrot.lane.b32.xlu1 %v3195_v24, %s3010_s10  ;;  %4982 = vst [vmem:[#allocation40_spill] sm:$0xff] %v3485_v62  ;;  %v3032_v62 = vmov 48   ;;  %s3043_s10 = smov [#allocation2]  }
 0x12d   : > { %s2921_s11 = sshll.u32 %s3043_s10, 4  ;;  %s2922_s11 = int_to_ptr.vmem [resolvable:$false] %s2921_s11 }
 0x12e   : > { %s2923_s17 = scalar_lea.vmem %s2922_s11, 1024 }
 0x12f   : > { %v861_v29 = vpop.permute.xlu1 %860  ;;  %v3490_v47 = vpop.permute.xlu0 %297 }
 0x130   : > { %1045 = vperm.xlu1 %2859, %v3142_v10  }
 0x133   : > { %v3513_v25 = vpop.permute.xlu0 %421 }
 0x134   : > { %2860 = vset.pattern.permute.xlu1 %v4977_v59  ;;  %v3475_v49 = vpop.permute.xlu1 %888  ;;  %4985 = vst [vmem:[#allocation42_spill] sm:$0xff] %v3513_v25 }
 0x135   : > { %4978 = vst [vmem:[#allocation36_spill] sm:$0xff] %v3475_v49  ;;  %1073 = vperm.xlu1 %2860, %v3116_v0   ;;  %v4983_v49 = vmov 46  }
 0x137   : > { %v893_v16 = vpop.permute.xlu0 %892 }
 0x139   : > { %2861 = vset.pattern.permute.xlu1 %v3031_v60  ;;  %v3480_v12 = vpop.permute.xlu1 %1118 }
 0x13a   : > { %4980 = vst [vmem:[#allocation38_spill] sm:$0xff] %v3480_v12  ;;  %1194 = vperm.xlu1 %2861, %v3116_v0   ;;  %v3497_v12 = vld [vmem:[%s4843_s1 + $0x8] sm:$0x7f] }
 0x13b   : > { %v3507_v18 = vrot.slane %v3497_v12, %v3346_v22  ;;  %v3527_v22 = vrot.slane %v3497_v12, %v3422_v51  ;;  %v898_v51 = vmul.f32 %v893_v16, %v3195_v24 }
 0x13e   : > { %2862 = vset.pattern.permute.xlu1 %v3030_v9  ;;  %v3483_v43 = vpop.permute.xlu1 %1130 }
 0x13f   : > { %4981 = vst [vmem:[#allocation39_spill] sm:$0xff] %v3483_v43  ;;  %940 = vperm.xlu1 %2862, %v3142_v10   ;;  %v182_v43 = vsel %vm180_vm0, %v3355_v23, %v3367_v31 }
 0x142   : > { %v3488_v59 = vpop.permute.xlu1 %276 }
 0x143   : > { %2864 = vset.pattern.permute.xlu1 %v4983_v49  ;;  %v3511_v49 = vrot.slane %v3497_v12, %v3365_v30  ;;  %v865_v30 = vmul.f32 %v861_v29, %v3389_v32 }
 0x144   : > { %1182 = vperm.xlu1 %2864, %v3142_v10  }
 0x145   : > { %v3521_v23 = vmul.f32 %v3511_v49, %v3384_v3  ;;  %v3535_v3 = vmul.f32 %v3527_v22, %v232_v5 }
 0x146   : > { %v3499_v9 = vpop.permute.xlu1 %538 }
 0x147   : > { %4984 = vst [vmem:[#allocation41_spill] sm:$0xff] %v3499_v9  ;;  %v3517_v9 = vmul.f32 %v3507_v18, %v182_v43  ;;  %4987 = vst [vmem:[#allocation44_spill] sm:$0xff] %v3521_v23  ;;  %v866_v15 = vmul.f32 %v861_v29, %v3521_v23  ;;  %v853_v43 = vmul.f32 %v849_v56, %v3374_v36 }
 0x148   : > { %2865 = vset.pattern.permute.xlu1 %v3032_v62 }
 0x149   : > { %1210 = vperm.xlu1 %2865, %v3116_v0   ;;  %4986 = vst [vmem:[#allocation43_spill] sm:$0xff] %v3517_v9  ;;  %v854_v25 = vmul.f32 %v849_v56, %v3517_v9  ;;  %v869_v20 = vadd.f32 %v865_v30, %v853_v43  ;;  %v3034_v30 = vmov 23  }
 0x14b   : > { %v3523_v31 = vpop.permute.xlu1 %659  ;;  %v870_v32 = vadd.f32 %v866_v15, %v854_v25  ;;  %v233_v25 = vsel %vm230_vm2, %v3301_v63, %v3296_v61 }
 0x14c   : > { %4988 = vst [vmem:[#allocation45_spill] sm:$0xff] %v3523_v31  ;;  %v897_v31 = vmul.f32 %v893_v16, %v3166_v17  ;;  %v3033_v17 = vmov 22   ;;  %v3574_v16 = vmul.f32 %v3433_v54, %v233_v25  ;;  %v256_v54 = vsel %vm255_vm3, %v3424_v6, %v3445_v8 }
 0x14d   : > { %2867 = vset.pattern.permute.xlu1 %v3031_v60 }
 0x14e   : > { %1198 = vperm.xlu1 %2867, %v3142_v10   ;;  %4995 = vst [vmem:[#allocation52_spill] sm:$0xff] %v3574_v16 }
 0x150   : > { %v877_v34 = vpop.permute.xlu1 %876 }
 0x151   : > { %v881_v29 = vmul.f32 %v877_v34, %v3442_v42  ;;  %v882_v60 = vmul.f32 %v877_v34, %v3535_v3  ;;  %v208_v34 = vsel %vm205_vm1, %v3261_v46, %v3284_v57 }
 0x152   : > { %2868 = vset.pattern.permute.xlu1 %v3032_v62 }
 0x153   : > { %v885_v23 = vadd.f32 %v881_v29, %v869_v20  ;;  %v886_v36 = vadd.f32 %v882_v60, %v870_v32  ;;  %1214 = vperm.xlu1 %2868, %v3142_v10   ;;  %v183_v20 = vsel %vm180_vm0, %v3254_v44, %v3275_v53  ;;  %v3567_v32 = vsub.s32 4, %v3337_v19 }
 0x154   : > { %v3571_v62 = vmul.f32 %v3362_v28, %v183_v20  ;;  %v281_v60 = vsel %vm280_vm4, %v3469_v1, %v3488_v59  ;;  %v206_v20 = vsel %vm205_vm1, %v3284_v57, %v3261_v46  ;;  %v231_v46 = vsel %vm230_vm2, %v3296_v61, %v3301_v63 }
 0x155   : > { %v3542_v56 = vpop.permute.xlu1 %904  ;;  %v3544_v5 = vadd.f32 %v897_v31, %v885_v23  ;;  %v3546_v9 = vadd.f32 %v898_v51, %v886_v36  ;;  %v3564_v36 = vmul.f32 %v3380_v39, %v208_v34  ;;  %4993 = vst [vmem:[#allocation50_spill] sm:$0xff] %v3567_v32  ;;  %v3578_v51 = vsub.s32 5, %v3337_v19 }
 0x156   : > { %4989 = vst [vmem:[#allocation46_spill] sm:$0xff] %v3542_v56  ;;  %4994 = vst [vmem:[#allocation51_spill] sm:$0xff] %v3571_v62  ;;  %v263_v39 = vrot.slane %v3353_v27, %v3567_v32  ;;  %v332_v29 = vmul.f32 %v3266_v48, %v3571_v62  ;;  %v465_v56 = vmul.f32 %v3225_v33, %v3571_v62 }
 0x157   : > { %4990 = vst [vmem:[#allocation47_spill] sm:$0xff] %v3544_v5  ;;  %4991 = vst [vmem:[#allocation48_spill] sm:$0xff] %v3546_v9  ;;  %2870 = vset.pattern.permute.xlu1 %v3033_v17  ;;  %v344_v28 = vmul.f32 %v3247_v40, %v3564_v36  ;;  %v3594_v31 = vrot.slane %v3353_v27, %v3578_v51  ;;  %v477_v34 = vmul.f32 %v3231_v35, %v3564_v36 }
 0x158   : > { %744 = vperm.xlu1 %2870, %v3116_v0   ;;  %4992 = vst [vmem:[#allocation49_spill] sm:$0xff] %v3564_v36  ;;  %4996 = vst [vmem:[#allocation53_spill] sm:$0xff] %v3578_v51  ;;  %v3612_v25 = vmul.f32 %v263_v39, %v256_v54  ;;  %v3615_v9 = vsub.s32 6, %v3337_v19 }
 0x159   : > { %v348_v5 = vadd.f32 %v344_v28, %v332_v29  ;;  %v3628_v57 = vmul.f32 %v3594_v31, %v281_v60  ;;  %v481_v63 = vadd.f32 %v477_v34, %v465_v56  ;;  %v5004_v60 = vmov 25  }
 0x15a   : > { %v3553_v15 = vpop.permute.xlu1 %997  ;;  %4998 = vst [vmem:[#allocation55_spill] sm:$0xff] %v3612_v25  ;;  %4999 = vst [vmem:[#allocation56_spill] sm:$0xff] %v3615_v9 }
 0x15b   : > { %5000 = vst [vmem:[#allocation57_spill] sm:$0xff] %v3628_v57  ;;  %v408_v34 = vmul.f32 %v3394_v13, %v3628_v57 }
 0x15c   : > { %2871 = vset.pattern.permute.xlu1 %v3034_v30 }
 0x15d   : > { %760 = vperm.xlu1 %2871, %v3116_v0  }
 0x15f   : > { %v3580_v23 = vpop.permute.xlu1 %1025 }
 0x160   : > { %4997 = vst [vmem:[#allocation54_spill] sm:$0xff] %v3580_v23  ;;  %v181_v23 = vsel %vm180_vm0, %v3275_v53, %v3254_v44  ;;  %v493_v44 = vmul.f32 %v3258_v45, %v3574_v16  ;;  %v3636_v53 = vmul.f32 %v3511_v49, %v206_v20  ;;  %v392_v49 = vmul.f32 %v3308_v2, %v3612_v25 }
 0x161   : > { %2872 = vset.pattern.permute.xlu1 %v3033_v17  ;;  %v360_v17 = vmul.f32 %v3235_v37, %v3574_v16  ;;  %v3654_v29 = vmul.f32 %v3507_v18, %v181_v23 }
 0x162   : > { %748 = vperm.xlu1 %2872, %v3142_v10   ;;  %5001 = vst [vmem:[#allocation58_spill] sm:$0xff] %v3636_v53  ;;  %v497_v20 = vadd.f32 %v493_v44, %v481_v63  ;;  %v258_v44 = vsel %vm255_vm3, %v3445_v8, %v3424_v6  ;;  %v541_v6 = vmul.f32 %v3403_v50, %v3628_v57 }
 0x163   : > { %v3596_v43 = vpop.permute.xlu1 %249  ;;  %v364_v28 = vadd.f32 %v360_v17, %v348_v5  ;;  %v3649_v5 = vrot.slane %v3353_v27, %v3615_v9  ;;  %5002 = vst [vmem:[#allocation59_spill] sm:$0xff] %v3654_v29  ;;  %v3657_v17 = vmul.f32 %v3527_v22, %v231_v46  ;;  %v509_v27 = vmul.f32 %v3289_v58, %v3132_v7 }
 0x164   : > { %v345_v22 = vmul.f32 %v3247_v40, %v3636_v53  ;;  %v333_v63 = vmul.f32 %v3266_v48, %v3654_v29  ;;  %v283_v8 = vsel %vm280_vm4, %v3488_v59, %v3469_v1  ;;  %v3703_v48 = vrot.slane %v3497_v12, %v3615_v9 }
 0x165   : > { %5003 = vst [vmem:[#allocation60_spill] sm:$0xff] %v3657_v17  ;;  %v361_v40 = vmul.f32 %v3235_v37, %v3657_v17  ;;  %v3035_v37 = vmov 26   ;;  %v466_v59 = vmul.f32 %v3225_v33, %v3654_v29  ;;  %v377_v33 = vmul.f32 %v3273_v52, %v3146_v11 }
 0x166   : > { %2874 = vset.pattern.permute.xlu1 %v3034_v30  ;;  %v376_v30 = vmul.f32 %v3273_v52, %v3132_v7 }
 0x167   : > { %764 = vperm.xlu1 %2874, %v3142_v10   ;;  %v3631_v19 = vpop.permute.xlu1 %253 }
 0x168   : > { %v257_v61 = vsel %vm255_vm3, %v3596_v43, %v3631_v19 }
 0x169   : > { %v3644_v54 = vmul.f32 %v263_v39, %v257_v61  ;;  %v380_v39 = vadd.f32 %v376_v30, %v364_v28  ;;  %v3666_v61 = vrot.slane %v3497_v12, %v3567_v32  ;;  %v525_v28 = vmul.f32 %v3327_v14, %v3612_v25 }
 0x16a   : > { %v3685_v30 = vrot.slane %v3497_v12, %v3578_v51  ;;  %v349_v51 = vadd.f32 %v345_v22, %v333_v63 }
 0x16b   : > { %2875 = vset.pattern.permute.xlu1 %v5004_v60  ;;  %v302_v56 = vpop.permute.xlu1 %301  ;;  %v396_v46 = vadd.f32 %v392_v49, %v380_v39 }
 0x16c   : > { %v306_v18 = vsel %vm305_vm5, %v3490_v47, %v302_v56  ;;  %792 = vperm.xlu1 %2875, %v3116_v0   ;;  %v308_v12 = vsel %vm305_vm5, %v302_v56, %v3490_v47  ;;  %v3721_v22 = vmul.f32 %v3685_v30, %v283_v8  ;;  %v614_v47 = vmul.f32 %v3249_v41, %v3564_v36 }
 0x16d   : > { %v3675_v23 = vmul.f32 %v3649_v5, %v306_v18  ;;  %v412_v49 = vadd.f32 %v408_v34, %v396_v46  ;;  %v513_v18 = vadd.f32 %v509_v27, %v497_v20  ;;  %v478_v34 = vmul.f32 %v3231_v35, %v3636_v53 }
 0x16e   : > { %v3708_v20 = vmul.f32 %v3666_v61, %v258_v44  ;;  %v494_v35 = vmul.f32 %v3258_v45, %v3657_v17  ;;  %5006 = vst [vmem:[#allocation62_spill] sm:$0xff] %v3721_v22  ;;  %v365_v44 = vadd.f32 %v361_v40, %v349_v51  ;;  %v3731_v56 = vmul.f32 %v3703_v48, %v308_v12 }
 0x16f   : > { %5005 = vst [vmem:[#allocation61_spill] sm:$0xff] %v3675_v23  ;;  %v3691_v60 = vpop.permute.xlu1 %554  ;;  %v424_v39 = vmul.f32 %v3450_v26, %v3675_v23  ;;  %v529_v46 = vadd.f32 %v525_v28, %v513_v18  ;;  %v557_v1 = vmul.f32 %v3448_v55, %v3675_v23  ;;  %v5008_v45 = vmov 27  }
 0x170   : > { %2876 = vset.pattern.permute.xlu1 %v3035_v37  ;;  %5007 = vst [vmem:[#allocation63_spill] sm:$0xff] %v3731_v56  ;;  %v393_v18 = vmul.f32 %v3308_v2, %v3708_v20  ;;  %v602_v40 = vmul.f32 %v3241_v38, %v3571_v62  ;;  %v381_v52 = vadd.f32 %v377_v33, %v365_v44  ;;  %v5013_v33 = vld [vmem:[#allocation20_spill] sm:$0xff] }
 0x171   : > { %808 = vperm.xlu1 %2876, %v3116_v0   ;;  %v428_v27 = vadd.f32 %v424_v39, %v412_v49  ;;  %v545_v28 = vadd.f32 %v541_v6, %v529_v46  ;;  %v482_v49 = vadd.f32 %v478_v34, %v466_v59  ;;  %v630_v6 = vmul.f32 %v3310_v4, %v3574_v16 }
 0x172   : > { %v409_v8 = vmul.f32 %v3394_v13, %v3721_v22  ;;  %v615_v34 = vmul.f32 %v3249_v41, %v3636_v53  ;;  %v526_v2 = vmul.f32 %v3327_v14, %v3708_v20  ;;  %v603_v46 = vmul.f32 %v3241_v38, %v3654_v29 }
 0x173   : > { %432 = vrot.lane.b32.xlu0 %v428_v27, %s3036_s24  ;;  %v561_v39 = vadd.f32 %v557_v1, %v545_v28  ;;  %v498_v51 = vadd.f32 %v494_v35, %v482_v49  ;;  %v618_v27 = vadd.f32 %v614_v47, %v602_v40  ;;  %v5009_v1 = vld [vmem:[#allocation15_spill] sm:$0xff]  ;;  %v397_v35 = vadd.f32 %v393_v18, %v381_v52  ;;  %v5012_v49 = vld [vmem:[#allocation44_spill] sm:$0xff] }
 0x174   : > { %v3724_v63 = vpop.permute.xlu1 %675  ;;  %v646_v12 = vmul.f32 %v5009_v1, %v3132_v7  ;;  %v425_v13 = vmul.f32 %v3450_v26, %v3731_v56  ;;  %v631_v41 = vmul.f32 %v3310_v4, %v3657_v17  ;;  %v542_v38 = vmul.f32 %v3403_v50, %v3721_v22  ;;  %v5015_v50 = vld [vmem:[#allocation26_spill] sm:$0xff]  ;;  %v5016_v40 = vld [vmem:[#allocation43_spill] sm:$0xff] }
 0x175   : > { %2878 = vset.pattern.permute.xlu1 %v5008_v45  ;;  %v634_v44 = vadd.f32 %v630_v6, %v618_v27  ;;  %v1003_v7 = vmul.f32 %v3553_v15, %v5012_v49  ;;  %v413_v26 = vadd.f32 %v409_v8, %v397_v35  ;;  %v619_v47 = vadd.f32 %v615_v34, %v603_v46  ;;  %v5014_v45 = vld [vmem:[#allocation37_spill] sm:$0xff]  ;;  %v5017_v27 = vld [vmem:[#allocation34_spill] sm:$0xff] }
 0x176   : > { %824 = vperm.xlu1 %2878, %v3116_v0   ;;  %v510_v0 = vmul.f32 %v3289_v58, %v3146_v11  ;;  %v5011_v58 = vld [vmem:[#allocation21_spill] sm:$0xff]  ;;  %v647_v4 = vmul.f32 %v5009_v1, %v3146_v11  ;;  %v678_v46 = vmul.f32 %v5017_v27, %v3628_v57 }
 0x177   : > { %565 = vrot.lane.b32.xlu0 %v561_v39, %s3037_s25  ;;  %v1002_v28 = vmul.f32 %v3553_v15, %v5011_v58  ;;  %v3772_v39 = vpop.permute.xlu0 %1041  ;;  %v991_v15 = vmul.f32 %v5014_v45, %v5016_v40  ;;  %v429_v6 = vadd.f32 %v425_v13, %v413_v26  ;;  %v635_v52 = vadd.f32 %v631_v41, %v619_v47 }
 0x178   : > { %v514_v14 = vadd.f32 %v510_v0, %v498_v51  ;;  %v662_v51 = vmul.f32 %v5015_v50, %v3612_v25  ;;  %v650_v0 = vadd.f32 %v646_v12, %v634_v44 }
 0x179   : > { %v3754_v59 = vpop.permute.xlu1 %920  ;;  %v1007_v1 = vadd.f32 %v1003_v7, %v991_v15  ;;  %v651_v47 = vadd.f32 %v647_v4, %v635_v52  ;;  %v5023_v4 = vld [vmem:[#allocation18_spill] sm:$0xff] }
 0x17a   : > { %5010 = vst [vmem:[#allocation15_spill] sm:$0xff] %v3754_v59  ;;  %2879 = vset.pattern.permute.xlu1 %v3035_v37  ;;  %v990_v37 = vmul.f32 %v5014_v45, %v5013_v33  ;;  %v530_v18 = vadd.f32 %v526_v2, %v514_v14  ;;  %v5018_v14 = vmov 0   ;;  %v666_v26 = vadd.f32 %v662_v51, %v650_v0  ;;  %v5041_v59 = vld [vmem:[#allocation24_spill] sm:$0xff] }
 0x17b   : > { %812 = vperm.xlu1 %2879, %v3142_v10   ;;  %828 = vperm.xlu0 %2880, %v3142_v10   ;;  %v558_v10 = vmul.f32 %v3448_v55, %v3731_v56  ;;  %v688_v13 = vpop.permute.xlu0 %687  ;;  %v663_v55 = vmul.f32 %v5015_v50, %v3708_v20  ;;  %v679_v45 = vmul.f32 %v5017_v27, %v3721_v22 }
 0x17c   : > { %v1006_v8 = vadd.f32 %v1002_v28, %v990_v37  ;;  %v546_v11 = vadd.f32 %v542_v38, %v530_v18  ;;  %v694_v38 = vmul.f32 %v688_v13, %v3675_v23  ;;  %v682_v7 = vadd.f32 %v678_v46, %v666_v26  ;;  %v5026_v26 = vld [vmem:[#allocation25_spill] sm:$0xff] }
 0x17d   : > { %v667_v18 = vadd.f32 %v663_v55, %v651_v47  ;;  %v695_v50 = vmul.f32 %v688_v13, %v3731_v56  ;;  %v863_v52 = vmul.f32 %v5023_v4, %v3564_v36  ;;  %v879_v55 = vmul.f32 %v5026_v26, %v3574_v16 }
 0x17e   : > { %v1014_v34 = vpop.permute.xlu1 %1013  ;;  %v562_v28 = vadd.f32 %v558_v10, %v546_v11  ;;  %v698_v37 = vadd.f32 %v694_v38, %v682_v7  ;;  %v5024_v11 = vld [vmem:[#allocation14_spill] sm:$0xff]  ;;  %v5027_v38 = vld [vmem:[#allocation5_spill] sm:$0xff] }
 0x17f   : > { %v1018_v2 = vmul.f32 %v1014_v34, %v3442_v42  ;;  %v1019_v35 = vmul.f32 %v1014_v34, %v3535_v3  ;;  %436 = vrot.lane.b32.xlu1 %v429_v6, %s3036_s24  ;;  %2881 = vset.pattern.permute.xlu0 %v5018_v14  ;;  %v683_v51 = vadd.f32 %v679_v45, %v667_v18  ;;  %v5028_v7 = vld [vmem:[#allocation22_spill] sm:$0xff]  ;;  %v5029_v45 = vld [vmem:[#allocation12_spill] sm:$0xff] }
 0x180   : > { %2882 = vset.pattern.permute.xlu1 %v5018_v14  ;;  %v851_v0 = vmul.f32 %v5024_v11, %v3571_v62  ;;  %v852_v27 = vmul.f32 %v5024_v11, %v3654_v29  ;;  %v3823_v14 = vpop.permute.xlu0 %691  ;;  %v3833_v47 = vmul.f32 %v5028_v7, %v5027_v38  ;;  %v605_v18 = vmul.f32 %v5029_v45, %v5016_v40  ;;  %v5035_v38 = vld [vmem:[#allocation9_spill] sm:$0xff] }
 0x181   : > { %v3789_v12 = vadd.f32 %v1018_v2, %v1006_v8  ;;  %v3791_v41 = vadd.f32 %v1019_v35, %v1007_v1  ;;  %v699_v6 = vadd.f32 %v695_v50, %v683_v51  ;;  %v864_v8 = vmul.f32 %v5023_v4, %v3636_v53 }
 0x182   : > { %v867_v2 = vadd.f32 %v863_v52, %v851_v0  ;;  %v5031_v52 = vld [vmem:[#allocation13_spill] sm:$0xff]  ;;  %v5032_v0 = vld [vmem:[#allocation8_spill] sm:$0xff] }
 0x183   : > { %5019 = vst [vmem:[#allocation21_spill] sm:$0xff] %v3789_v12  ;;  %5020 = vst [vmem:[#allocation37_spill] sm:$0xff] %v3791_v41  ;;  %v3794_v44 = vpop.permute.xlu1 %1122  ;;  %569 = vrot.lane.b32.xlu1 %v562_v28, %s3037_s25  ;;  %v868_v35 = vadd.f32 %v864_v8, %v852_v27  ;;  %v880_v28 = vmul.f32 %v5026_v26, %v3657_v17  ;;  %v616_v8 = vmul.f32 %v5031_v52, %v5011_v58 }
 0x184   : > { %5021 = vst [vmem:[#allocation26_spill] sm:$0xff] %v3794_v44  ;;  %v3843_v50 = vadd.f32 %v879_v55, %v867_v2  ;;  %v617_v11 = vmul.f32 %v5031_v52, %v5012_v49  ;;  %v335_v27 = vmul.f32 %v5032_v0, %v5016_v40  ;;  %v3857_v26 = vpop.permute.xlu0 %1029  ;;  %v5038_v44 = vld [vmem:[#allocation33_spill] sm:$0xff] }
 0x185   : > { %v3845_v51 = vadd.f32 %v880_v28, %v868_v35  ;;  %v5034_v35 = vld [vmem:[#allocation6_spill] sm:$0xff]  ;;  %v334_v28 = vmul.f32 %v5032_v0, %v5013_v33  ;;  %v1016_v41 = vmul.f32 %v5038_v44, %v3574_v16  ;;  %v1017_v0 = vmul.f32 %v5038_v44, %v3657_v17 }
 0x186   : > { %v347_v55 = vmul.f32 %v5034_v35, %v5012_v49  ;;  %v346_v9 = vmul.f32 %v5034_v35, %v5011_v58  ;;  %v621_v56 = vadd.f32 %v617_v11, %v605_v18  ;;  %v5040_v44 = vld [vmem:[#allocation10_spill] sm:$0xff]  ;;  %v3896_v18 = vld [vmem:[%s3126_s29 + $0x10] sm:$0xff]  ;;  %v633_v11 = vmul.f32 %v5041_v59, %v3535_v3 }
 0x187   : > { %702 = vrot.lane.b32.xlu1 %v698_v37, %s3038_s26  ;;  %v604_v37 = vmul.f32 %v5029_v45, %v5013_v33  ;;  %v5036_v45 = vld [vmem:[#allocation27_spill] sm:$0xff]  ;;  %v496_v22 = vmul.f32 %v5040_v44, %v3535_v3 }
 0x188   : > { %v3801_v15 = vpop.permute.xlu1 %1134  ;;  %v988_v52 = vmul.f32 %v5036_v45, %v3571_v62 }
 0x189   : > { %5022 = vst [vmem:[#allocation34_spill] sm:$0xff] %v3801_v15  ;;  %v467_v15 = vmul.f32 %v5035_v38, %v5013_v33  ;;  %v351_v33 = vadd.f32 %v347_v55, %v335_v27  ;;  %v3904_v27 = vpop.permute.xlu0 %1178 }
 0x18b   : > { %706 = vrot.lane.b32.xlu1 %v699_v6, %s3038_s26  ;;  %v5030_v6 = vld [vmem:[#allocation29_spill] sm:$0xff] }
 0x18c   : > { %v3804_v10 = vpop.permute.xlu1 %274  ;;  %v1000_v4 = vmul.f32 %v5030_v6, %v3564_v36 }
 0x18e   : > { %v1004_v35 = vadd.f32 %v1000_v4, %v988_v52 }
 0x190   : > { %v3810_v34 = vpop.permute.xlu1 %278 }
 0x191   : > { %v282_v46 = vsel %vm280_vm4, %v3804_v10, %v3810_v34 }
 0x192   : > { %v3821_v1 = vmul.f32 %v3594_v31, %v282_v46  ;;  %v3837_v31 = vmul.f32 %v5028_v7, %v3195_v24  ;;  %v1001_v46 = vmul.f32 %v5030_v6, %v3636_v53  ;;  %v468_v7 = vmul.f32 %v5035_v38, %v5016_v40  ;;  %v5037_v6 = vld [vmem:[#allocation7_spill] sm:$0xff] }
 0x193   : > { %v480_v32 = vmul.f32 %v5037_v6, %v5012_v49  ;;  %v989_v40 = vmul.f32 %v5036_v45, %v3654_v29  ;;  %v479_v12 = vmul.f32 %v5037_v6, %v5011_v58  ;;  %v5039_v49 = vld [vmem:[#allocation11_spill] sm:$0xff]  ;;  %v632_v45 = vmul.f32 %v5041_v59, %v3442_v42 }
 0x194   : > { %v3825_v13 = vpop.permute.xlu1 %908  ;;  %v362_v23 = vmul.f32 %v5039_v49, %v3442_v42  ;;  %v350_v6 = vadd.f32 %v346_v9, %v334_v28  ;;  %v5043_v9 = vld [vmem:[#allocation40_spill] sm:$0xff]  ;;  %v3912_v28 = vadd.f32 %v1016_v41, %v1004_v35 }
 0x195   : > { %5025 = vst [vmem:[#allocation18_spill] sm:$0xff] %v3825_v13  ;;  %v620_v13 = vadd.f32 %v616_v8, %v604_v37  ;;  %v1005_v38 = vadd.f32 %v1001_v46, %v989_v40  ;;  %v484_v4 = vadd.f32 %v480_v32, %v468_v7  ;;  %v495_v37 = vmul.f32 %v5040_v44, %v3442_v42  ;;  %v5042_v40 = vld [vmem:[#allocation23_spill] sm:$0xff]  ;;  %v5044_v44 = vld [vmem:[#allocation32_spill] sm:$0xff] }
 0x196   : > { %v511_v8 = vmul.f32 %v3896_v18, %v5042_v40  ;;  %v483_v46 = vadd.f32 %v479_v12, %v467_v15  ;;  %v1153_v32 = vmul.f32 %v5043_v9, %v3574_v16  ;;  %v3910_v55 = vmul.f32 %v5043_v9, %v3657_v17  ;;  %v5045_v9 = vld [vmem:[#allocation39_spill] sm:$0xff] }
 0x197   : > { %v3914_v52 = vadd.f32 %v1017_v0, %v1005_v38  ;;  %v366_v59 = vadd.f32 %v362_v23, %v350_v6  ;;  %v500_v12 = vadd.f32 %v496_v22, %v484_v4  ;;  %v636_v15 = vadd.f32 %v632_v45, %v620_v13  ;;  %v3937_v22 = vpop.permute.xlu0 %924  ;;  %v5046_v0 = vld [vmem:[#allocation38_spill] sm:$0xff]  ;;  %v3952_v6 = vld [vmem:[%s3126_s29] sm:$0xff]  ;;  %v5048_v4 = vld [vmem:[#allocation36_spill] sm:$0xff] }
 0x198   : > { %v1137_v41 = vmul.f32 %v5045_v9, %v3564_v36  ;;  %v499_v35 = vadd.f32 %v495_v37, %v483_v46  ;;  %v1125_v38 = vmul.f32 %v5046_v0, %v3571_v62  ;;  %5047 = vst [vmem:[#allocation25_spill] sm:$0xff] %v3952_v6  ;;  %v895_v37 = vmul.f32 %v3952_v6, %v5048_v4 }
 0x199   : > { %v3859_v2 = vpop.permute.xlu1 %936  ;;  %v3970_v17 = vmul.f32 %v3896_v18, %v3857_v26 }
 0x19a   : > { %5033 = vst [vmem:[#allocation14_spill] sm:$0xff] %v3859_v2  ;;  %v363_v2 = vmul.f32 %v5039_v49, %v3535_v3  ;;  %v512_v49 = vmul.f32 %v5042_v40, %v3195_v24  ;;  %v259_v24 = vsel %vm255_vm3, %v3631_v19, %v3596_v43  ;;  %v648_v40 = vmul.f32 %v3896_v18, %v5044_v44  ;;  %v3933_v19 = vld [vmem:[%s3126_s29 + $0x18] sm:$0xff] }
 0x19b   : > { %v637_v43 = vadd.f32 %v633_v11, %v621_v56  ;;  %v649_v23 = vmul.f32 %v3933_v19, %v5044_v44  ;;  %v3944_v45 = vmul.f32 %v3666_v61, %v259_v24  ;;  %v284_v56 = vsel %vm280_vm4, %v3810_v34, %v3804_v10  ;;  %v3957_v11 = vld [vmem:[%s3126_s29 + $0x8] sm:$0xff] }
 0x19c   : > { %v367_v7 = vadd.f32 %v363_v2, %v351_v33  ;;  %v3926_v33 = vmul.f32 %v3772_v39, %v3612_v25  ;;  %v3930_v2 = vmul.f32 %v3772_v39, %v3708_v20  ;;  %5049 = vst [vmem:[#allocation5_spill] sm:$0xff] %v3957_v11  ;;  %v896_v46 = vmul.f32 %v3957_v11, %v5048_v4 }
 0x19d   : > { %v382_v61 = vadd.f32 %v3833_v47, %v366_v59  ;;  %v516_v24 = vadd.f32 %v512_v49, %v500_v12  ;;  %v3962_v44 = vadd.f32 %v648_v40, %v636_v15  ;;  %v1138_v10 = vmul.f32 %v5045_v9, %v3636_v53  ;;  %v1270_v59 = vld [vmem:[%s4844_s2 + $0xd8] sm:$0xff]  ;;  %v5050_v15 = vld [vmem:[#allocation30_spill] sm:$0xff] }
 0x19e   : > { %v3891_v57 = vpop.permute.xlu1 %1057  ;;  %v383_v39 = vadd.f32 %v3837_v31, %v367_v7  ;;  %v1141_v34 = vadd.f32 %v1137_v41, %v1125_v38  ;;  %v515_v31 = vadd.f32 %v511_v8, %v499_v35  ;;  %v3966_v7 = vadd.f32 %v649_v23, %v637_v43  ;;  %v1271_v8 = vld [vmem:[%s4844_s2 + $0xe0] sm:$0xff]  ;;  %v1254_v12 = vld [vmem:[%s4844_s2 + $0x58] sm:$0xff]  ;;  %v1163_v23 = vpop.permute.xlu0 %1162 }
 0x19f   : > { %v3974_v16 = vmul.f32 %v3933_v19, %v3857_v26  ;;  %v3977_v47 = vmul.f32 %v3685_v30, %v284_v56  ;;  %v3990_v26 = vmul.f32 %v3904_v27, %v3612_v25  ;;  %v1126_v30 = vmul.f32 %v5046_v0, %v3654_v29  ;;  %v1255_v41 = vld [vmem:[%s4844_s2 + $0x60] sm:$0xff] }
 0x1a0   : > { %v395_v40 = vmul.f32 %v5050_v15, %v3944_v45  ;;  %v2622_v9 = vpack.c.bf16 %v1271_v8, %v1270_v59  ;;  %v4000_v35 = vadd.f32 %v895_v37, %v3843_v50  ;;  %v4003_v43 = vadd.f32 %v896_v46, %v3845_v51  ;;  %v5051_v51 = vld [vmem:[#allocation35_spill] sm:$0xff] }
 0x1a1   : > { %v394_v38 = vmul.f32 %v5050_v15, %v3644_v54  ;;  %v2624_v56 = vpack.c.bf16 %v1255_v41, %v1254_v12  ;;  %v4008_v0 = vmul.f32 %v3952_v6, %v1163_v23  ;;  %v4011_v4 = vmul.f32 %v3957_v11, %v1163_v23  ;;  %v5052_v12 = vld [vmem:[#allocation31_spill] sm:$0xff] }
 0x1a2   : > { %v4013_v59 = vadd.f32 %v1138_v10, %v1126_v30  ;;  %v4015_v8 = vadd.f32 %v1153_v32, %v1141_v34  ;;  %2623 = vmatprep.subr.bf16.mxu0 %v2622_v9  ;;  %v411_v37 = vmul.f32 %v5051_v51, %v3977_v47  ;;  %v410_v46 = vmul.f32 %v5051_v51, %v3821_v1  ;;  %v1272_v32 = vld [vmem:[%s4844_s2 + $0xe8] sm:$0xff]  ;;  %v1273_v10 = vld [vmem:[%s4844_s2 + $0xf0] sm:$0xff] }
 0x1a3   : > { %v3939_v13 = vpop.permute.xlu1 %1150  ;;  %v528_v15 = vmul.f32 %v5052_v12, %v3944_v45  ;;  %v527_v41 = vmul.f32 %v5052_v12, %v3644_v54  ;;  %2625 = vmatpush3.bf16.msra.mxu0 %v2624_v56  ;;  %v399_v9 = vadd.f32 %v395_v40, %v383_v39  ;;  %v2626_v23 = vpack.c.bf16 %v1273_v10, %v1272_v32  ;;  %v1256_v56 = vld [vmem:[%s4844_s2 + $0x68] sm:$0xff]  ;;  %v1257_v51 = vld [vmem:[%s4844_s2 + $0x70] sm:$0xff] }
 0x1a4   : > { %v398_v36 = vadd.f32 %v394_v38, %v382_v61  ;;  %v2628_v29 = vpack.c.bf16 %v1257_v51, %v1256_v56 }
 0x1a5   : > { %2627 = vmatprep.subr.bf16.mxu0 %v2626_v23  ;;  %v532_v56 = vadd.f32 %v528_v15, %v516_v24  ;;  %v531_v51 = vadd.f32 %v527_v41, %v515_v31  ;;  %v1258_v31 = vld [vmem:[%s4844_s2 + $0x78] sm:$0xff]  ;;  %v1259_v15 = vld [vmem:[%s4844_s2 + $0x80] sm:$0xff]  ;;  %v5057_v41 = vld [vmem:[#allocation54_spill] sm:$0xff] }
 0x1a6   : > { %v414_v38 = vadd.f32 %v410_v46, %v398_v36  ;;  %v1275_v36 = vld [vmem:[%s4844_s2 + $0x100] sm:$0xff]  ;;  %v1032_v23 = vmul.f32 %v3952_v6, %v5057_v41 }
 0x1a7   : > { %v300_v49 = vpop.permute.xlu1 %299  ;;  %2629 = vmatpush3.bf16.msra.mxu0 %v2628_v29 }
 0x1ab   : > { %v304_v50 = vpop.permute.xlu1 %303 }
 0x1ac   : > { %v307_v34 = vsel %vm305_vm5, %v300_v49, %v304_v50  ;;  %v309_v30 = vsel %vm305_vm5, %v304_v50, %v300_v49  ;;  %v5053_v49 = vld [vmem:[#allocation46_spill] sm:$0xff]  ;;  %v5054_v50 = vld [vmem:[#allocation41_spill] sm:$0xff] }
 0x1ad   : > { %v4042_v12 = vmul.f32 %v3649_v5, %v307_v34  ;;  %v4045_v53 = vmul.f32 %v3703_v48, %v309_v30  ;;  %v911_v39 = vmul.f32 %v5053_v49, %v3612_v25  ;;  %v912_v40 = vmul.f32 %v5053_v49, %v3708_v20  ;;  %v5055_v48 = vld [vmem:[#allocation42_spill] sm:$0xff]  ;;  %v5056_v49 = vld [vmem:[#allocation45_spill] sm:$0xff] }
 0x1ae   : > { %v544_v32 = vmul.f32 %v5054_v50, %v3977_v47  ;;  %v543_v10 = vmul.f32 %v5054_v50, %v3821_v1  ;;  %v415_v34 = vadd.f32 %v411_v37, %v399_v9  ;;  %v665_v25 = vmul.f32 %v5056_v49, %v3944_v45  ;;  %v1274_v37 = vld [vmem:[%s4844_s2 + $0xf8] sm:$0xff] }
 0x1af   : > { %v4055_v5 = vpop.permute.xlu1 %1045  ;;  %v427_v61 = vmul.f32 %v5055_v48, %v4045_v53  ;;  %v426_v30 = vmul.f32 %v5055_v48, %v4042_v12  ;;  %v664_v50 = vmul.f32 %v5056_v49, %v3644_v54  ;;  %v560_v29 = vmul.f32 %v3691_v60, %v4045_v53  ;;  %v1276_v49 = vld [vmem:[%s4844_s2 + $0x108] sm:$0xff] }
 0x1b0   : > { %v559_v24 = vmul.f32 %v3691_v60, %v4042_v12  ;;  %v681_v48 = vmul.f32 %v3724_v63, %v3977_v47  ;;  %v680_v60 = vmul.f32 %v3724_v63, %v3821_v1  ;;  %v697_v63 = vmul.f32 %v3823_v14, %v4045_v53 }
 0x1b1   : > { %v431_v46 = vadd.f32 %v427_v61, %v415_v34  ;;  %v430_v9 = vadd.f32 %v426_v30, %v414_v38  ;;  %v1033_v34 = vmul.f32 %v3957_v11, %v5057_v41  ;;  %v548_v61 = vadd.f32 %v544_v32, %v532_v56  ;;  %v1277_v41 = vld [vmem:[%s4844_s2 + $0x110] sm:$0xff]  ;;  %v1260_v32 = vld [vmem:[%s4844_s2 + $0x88] sm:$0xff] }
 0x1b2   : > { %v547_v38 = vadd.f32 %v543_v10, %v531_v51  ;;  %v2630_v30 = vpack.c.bf16 %v1275_v36, %v1274_v37  ;;  %v669_v11 = vadd.f32 %v665_v25, %v3966_v7  ;;  %v1261_v10 = vld [vmem:[%s4844_s2 + $0x90] sm:$0xff]  ;;  %v696_v37 = vmul.f32 %v3823_v14, %v4042_v12 }
 0x1b3   : > { %438 = vrot.lane.b32.xlu1 %v431_v46, %s3036_s24  ;;  %434 = vrot.lane.b32.xlu0 %v430_v9, %s3036_s24  ;;  %v668_v46 = vadd.f32 %v664_v50, %v3962_v44  ;;  %v2632_v9 = vpack.c.bf16 %v1259_v15, %v1258_v31  ;;  %v564_v56 = vadd.f32 %v560_v29, %v548_v61  ;;  %v5058_v44 = vld [vmem:[#allocation57_spill] sm:$0xff]  ;;  %v5059_v50 = vld [vmem:[#allocation15_spill] sm:$0xff]  ;;  %v5060_v31 = vld [vmem:[#allocation62_spill] sm:$0xff] }
 0x1b4   : > { %v1074_v21 = vpop.permute.xlu1 %1073  ;;  %v563_v51 = vadd.f32 %v559_v24, %v547_v38  ;;  %2631 = vmatprep.subr.bf16.mxu0 %v2630_v30  ;;  %v2634_v25 = vpack.c.bf16 %v1277_v41, %v1276_v49  ;;  %v1158_v7 = vadd.f32 %v3910_v55, %v4013_v59  ;;  %v927_v36 = vmul.f32 %v5059_v50, %v5058_v44  ;;  %v1278_v55 = vld [vmem:[%s4844_s2 + $0x118] sm:$0xff]  ;;  %v1279_v59 = vld [vmem:[%s4844_s2 + $0x120] sm:$0xff]  ;;  %v5062_v38 = vld [vmem:[#allocation14_spill] sm:$0xff] }
 0x1b5   : > { %v928_v15 = vmul.f32 %v5059_v50, %v5060_v31  ;;  %2633 = vmatpush3.bf16.msra.mxu0 %v2632_v9  ;;  %v2636_v6 = vpack.c.bf16 %v1261_v10, %v1260_v32  ;;  %v915_v62 = vadd.f32 %v911_v39, %v4000_v35  ;;  %v685_v14 = vadd.f32 %v681_v48, %v669_v11  ;;  %v1262_v11 = vld [vmem:[%s4844_s2 + $0x98] sm:$0xff]  ;;  %v1263_v48 = vld [vmem:[%s4844_s2 + $0xa0] sm:$0xff]  ;;  %v5063_v49 = vld [vmem:[#allocation63_spill] sm:$0xff] }
 0x1b6   : > { %v684_v29 = vadd.f32 %v680_v60, %v668_v46  ;;  %v916_v24 = vadd.f32 %v912_v40, %v4003_v43  ;;  %v1036_v61 = vadd.f32 %v1032_v23, %v3912_v28  ;;  %v1037_v35 = vadd.f32 %v1033_v34, %v3914_v52  ;;  %2635 = vmatprep.subr.bf16.mxu0 %v2634_v25  ;;  %v5061_v60 = vld [vmem:[#allocation61_spill] sm:$0xff]  ;;  %v5064_v41 = vld [vmem:[#allocation18_spill] sm:$0xff]  ;;  %v1265_v50 = vld [vmem:[%s4844_s2 + $0xb0] sm:$0xff] }
 0x1b7   : > { %571 = vrot.lane.b32.xlu1 %v564_v56, %s3037_s25  ;;  %567 = vrot.lane.b32.xlu0 %v563_v51, %s3037_s25  ;;  %v2638_v39 = vpack.c.bf16 %v1279_v59, %v1278_v55  ;;  %v943_v30 = vmul.f32 %v5062_v38, %v5061_v60  ;;  %v944_v43 = vmul.f32 %v5062_v38, %v5063_v49  ;;  %v1264_v25 = vld [vmem:[%s4844_s2 + $0xa8] sm:$0xff]  ;;  %s4794_s25 = scalar_lea.hbm %s4845_s3, %s2577_s5 }
 0x1b8   : > { %v701_v28 = vadd.f32 %v697_v63, %v685_v14  ;;  %v700_v52 = vadd.f32 %v696_v37, %v684_v29  ;;  %v931_v23 = vadd.f32 %v927_v36, %v915_v62  ;;  %v932_v34 = vadd.f32 %v928_v15, %v916_v24  ;;  %v1280_v62 = vld [vmem:[%s4844_s2 + $0x128] sm:$0xff]  ;;  %v5065_v29 = vld [vmem:[#allocation47_spill] sm:$0xff] }
 0x1b9   : > { %v4137_v40 = vpop.permute.xlu1 %1194  ;;  %v913_v46 = vmul.f32 %v5064_v41, %v3644_v54  ;;  %2637 = vmatpush3.bf16.msra.mxu0 %v2636_v6  ;;  %v2640_v9 = vpack.c.bf16 %v1263_v48, %v1262_v11  ;;  %v914_v32 = vmul.f32 %v5064_v41, %v3944_v45  ;;  %v1064_v10 = vmul.f32 %v3891_v57, %v5058_v44  ;;  %v1281_v6 = vld [vmem:[%s4844_s2 + $0x130] sm:$0xff]  ;;  %v1284_v41 = vld [vmem:[%s4844_s2 + $0x148] sm:$0xff] }
 0x1ba   : > { %v1065_v56 = vmul.f32 %v3891_v57, %v5060_v31  ;;  %v1052_v63 = vadd.f32 %v3926_v33, %v1036_v61  ;;  %v1053_v51 = vadd.f32 %v3930_v2, %v1037_v35  ;;  %v1173_v37 = vadd.f32 %v4008_v0, %v4015_v8  ;;  %2639 = vmatprep.subr.bf16.mxu0 %v2638_v39  ;;  %v1282_v2 = vld [vmem:[%s4844_s2 + $0x138] sm:$0xff]  ;;  %v1283_v0 = vld [vmem:[%s4844_s2 + $0x140] sm:$0xff]  ;;  %v4177_v35 = vpop.permute.xlu0 %1166 }
 0x1bb   : > { %708 = vrot.lane.b32.xlu1 %v701_v28, %s3038_s26  ;;  %704 = vrot.lane.b32.xlu0 %v700_v52, %s3038_s26  ;;  %v2642_v57 = vpack.c.bf16 %v1281_v6, %v1280_v62  ;;  %v947_v36 = vadd.f32 %v943_v30, %v931_v23  ;;  %v948_v15 = vadd.f32 %v944_v43, %v932_v34 }
 0x1bc   : > { %v1080_v14 = vmul.f32 %v1074_v21, %v5061_v60  ;;  %v1081_v33 = vmul.f32 %v1074_v21, %v5063_v49  ;;  %v1186_v8 = vmul.f32 %v3904_v27, %v3708_v20  ;;  %v917_v55 = vadd.f32 %v913_v46, %v5065_v29  ;;  %v5066_v21 = vld [vmem:[#allocation48_spill] sm:$0xff]  ;;  %v5067_v46 = vld [vmem:[#allocation21_spill] sm:$0xff] }
 0x1bd   : > { %v1174_v59 = vadd.f32 %v4011_v4, %v1158_v7  ;;  %2641 = vmatpush3.bf16.msra.mxu0 %v2640_v9  ;;  %v2644_v61 = vpack.c.bf16 %v1265_v50, %v1264_v25  ;;  %v918_v39 = vadd.f32 %v914_v32, %v5066_v21  ;;  %v1068_v11 = vadd.f32 %v1064_v10, %v1052_v63  ;;  %v1266_v27 = vld [vmem:[%s4844_s2 + $0xb8] sm:$0xff]  ;;  %v1267_v4 = vld [vmem:[%s4844_s2 + $0xc0] sm:$0xff] }
 0x1be   : > { %v941_v24 = vpop.permute.xlu1 %940  ;;  %v1069_v48 = vadd.f32 %v1065_v56, %v1053_v51  ;;  %v1189_v7 = vadd.f32 %v3990_v26, %v1173_v37  ;;  %v929_v38 = vmul.f32 %v3937_v22, %v3821_v1  ;;  %v930_v30 = vmul.f32 %v3937_v22, %v3977_v47  ;;  %2643 = vmatprep.subr.bf16.mxu0 %v2642_v57  ;;  %v1285_v26 = vld [vmem:[%s4844_s2 + $0x150] sm:$0xff]  ;;  %v5068_v22 = vld [vmem:[#allocation37_spill] sm:$0xff]  ;;  %v5069_v37 = vld [vmem:[#allocation20_spill] sm:$0xff] }
 0x1bf   : > { %955 = vrot.lane.b32.xlu1 %v948_v15, %s3039_s8  ;;  %951 = vrot.lane.b32.xlu0 %v947_v36, %s3039_s8  ;;  %v2646_v43 = vpack.c.bf16 %v1283_v0, %v1282_v2  ;;  %v1084_v28 = vadd.f32 %v1080_v14, %v1068_v11  ;;  %v945_v23 = vmul.f32 %v941_v24, %v4042_v12  ;;  %v5070_v57 = vld [vmem:[#allocation26_spill] sm:$0xff]  ;;  %v5072_v36 = vld [vmem:[#allocation44_spill] sm:$0xff] }
 0x1c0   : > { %v1085_v52 = vadd.f32 %v1081_v33, %v1069_v48  ;;  %v946_v34 = vmul.f32 %v941_v24, %v4045_v53  ;;  %v1038_v9 = vadd.f32 %v3970_v17, %v5067_v46  ;;  %v1039_v32 = vadd.f32 %v3974_v16, %v5068_v22  ;;  %v1268_v16 = vld [vmem:[%s4844_s2 + $0xc8] sm:$0xff]  ;;  %v1269_v17 = vld [vmem:[%s4844_s2 + $0xd0] sm:$0xff]  ;;  %v1062_v33 = vpop.permute.xlu0 %1061 }
 0x1c1   : > { %v933_v10 = vadd.f32 %v929_v38, %v917_v55  ;;  %2645 = vmatpush3.bf16.msra.mxu0 %v2644_v61  ;;  %v2648_v56 = vpack.c.bf16 %v1267_v4, %v1266_v27  ;;  %v1050_v62 = vmul.f32 %v4055_v5, %v3644_v54  ;;  %v1051_v6 = vmul.f32 %v4055_v5, %v3944_v45  ;;  %v5071_v5 = vld [vmem:[#allocation34_spill] sm:$0xff]  ;;  %v5073_v24 = vld [vmem:[#allocation43_spill] sm:$0xff] }
 0x1c2   : > { %v934_v63 = vadd.f32 %v930_v30, %v918_v39  ;;  %v1127_v25 = vmul.f32 %v5070_v57, %v5069_v37  ;;  %v1139_v50 = vmul.f32 %v5071_v5, %v5011_v58  ;;  %v1140_v15 = vmul.f32 %v5071_v5, %v5072_v36  ;;  %2647 = vmatprep.subr.bf16.mxu0 %v2646_v43 }
 0x1c3   : > { %v1183_v51 = vpop.permute.xlu1 %1182  ;;  %1092 = vrot.lane.b32.xlu1 %v1085_v52, %s3040_s27  ;;  %1088 = vrot.lane.b32.xlu0 %v1084_v28, %s3040_s27  ;;  %v2650_v14 = vpack.c.bf16 %v1285_v26, %v1284_v41  ;;  %v1201_v2 = vmul.f32 %v4137_v40, %v5058_v44  ;;  %v1202_v0 = vmul.f32 %v4137_v40, %v5060_v31 }
 0x1c4   : > { %v949_v29 = vadd.f32 %v945_v23, %v933_v10  ;;  %v950_v55 = vadd.f32 %v946_v34, %v934_v63  ;;  %v1128_v61 = vmul.f32 %v5070_v57, %v5073_v24  ;;  %v1155_v21 = vmul.f32 %v3939_v13, %v3442_v42  ;;  %v1078_v46 = vpop.permute.xlu0 %1077 }
 0x1c5   : > { %v1156_v39 = vmul.f32 %v3939_v13, %v3535_v3  ;;  %2649 = vmatpush3.bf16.msra.mxu0 %v2648_v56  ;;  %v2652_v11 = vpack.c.bf16 %v1269_v17, %v1268_v16  ;;  %v1054_v48 = vadd.f32 %v1050_v62, %v1038_v9  ;;  %v1055_v27 = vadd.f32 %v1051_v6, %v1039_v32 }
 0x1c6   : > { %v1190_v4 = vadd.f32 %v1186_v8, %v1174_v59  ;;  %v1143_v40 = vadd.f32 %v1139_v50, %v1127_v25  ;;  %v1144_v38 = vadd.f32 %v1140_v15, %v1128_v61  ;;  %v1066_v30 = vmul.f32 %v1062_v33, %v3821_v1  ;;  %2651 = vmatprep.subr.bf16.mxu0 %v2650_v14  ;;  %v1601_v61 = vld [vmem:[%s4844_s2 + $0x160] sm:$0xff] }
 0x1c7   : > { %957 = vrot.lane.b32.xlu1 %v950_v55, %s3039_s8  ;;  %953 = vrot.lane.b32.xlu0 %v949_v29, %s3039_s8  ;;  %v1067_v43 = vmul.f32 %v1062_v33, %v3977_v47  ;;  %v1205_v52 = vadd.f32 %v1201_v2, %v1189_v7  ;;  %v1171_v8 = vmul.f32 %v3896_v18, %v4177_v35 }
 0x1c8   : > { %v1211_v28 = vpop.permute.xlu1 %1210  ;;  %v1206_v23 = vadd.f32 %v1202_v0, %v1190_v4  ;;  %v1172_v59 = vmul.f32 %v3933_v19, %v4177_v35  ;;  %v1159_v41 = vadd.f32 %v1155_v21, %v1143_v40  ;;  %v1160_v26 = vadd.f32 %v1156_v39, %v1144_v38  ;;  %v733_v4 = vpop.permute.xlu0 %732 }
 0x1c9   : > { %v1217_v13 = vmul.f32 %v1211_v28, %v5061_v60  ;;  %v1218_v34 = vmul.f32 %v1211_v28, %v5063_v49  ;;  %2653 = vmatpush3.bf16.msra.mxu0 %v2652_v11  ;;  %v1070_v9 = vadd.f32 %v1066_v30, %v1054_v48  ;;  %v1071_v22 = vadd.f32 %v1067_v43, %v1055_v27 }
 0x1ca   : > { %v1083_v7 = vmul.f32 %v1078_v46, %v4045_v53  ;;  %v1187_v56 = vmul.f32 %v1183_v51, %v3644_v54  ;;  %v1188_v62 = vmul.f32 %v1183_v51, %v3944_v45  ;;  %v1082_v35 = vmul.f32 %v1078_v46, %v4042_v12 }
 0x1cb   : > { %v1221_v32 = vadd.f32 %v1217_v13, %v1205_v52  ;;  %v1222_v10 = vadd.f32 %v1218_v34, %v1206_v23  ;;  %v1175_v63 = vadd.f32 %v1171_v8, %v1159_v41  ;;  %v1176_v16 = vadd.f32 %v1172_v59, %v1160_v26 }
 0x1cc   : > { %v1087_v25 = vadd.f32 %v1083_v7, %v1071_v22  ;;  %v1086_v5 = vadd.f32 %v1082_v35, %v1070_v9  ;;  %v737_v38 = vpop.permute.xlu0 %736  ;;  %v5075_v7 = vld [vmem:[#allocation59_spill] sm:$0xff]  ;;  %v5076_v35 = vld [vmem:[#allocation25_spill] sm:$0xff] }
 0x1cd   : > { %v1199_v6 = vpop.permute.xlu1 %1198  ;;  %1229 = vrot.lane.b32.xlu1 %v1222_v10, %s3041_s6  ;;  %1225 = vrot.lane.b32.xlu0 %v1221_v32, %s3041_s6  ;;  %v1191_v50 = vadd.f32 %v1187_v56, %v1175_v63  ;;  %v1192_v15 = vadd.f32 %v1188_v62, %v1176_v16  ;;  %v5074_v32 = vld [vmem:[#allocation51_spill] sm:$0xff]  ;;  %v740_v56 = vmul.f32 %v733_v4, %v5075_v7  ;;  %v5077_v16 = vld [vmem:[#allocation5_spill] sm:$0xff] }
 0x1ce   : > { %v1203_v17 = vmul.f32 %v1199_v6, %v3821_v1  ;;  %v1204_v57 = vmul.f32 %v1199_v6, %v3977_v47  ;;  %v739_v10 = vmul.f32 %v733_v4, %v5074_v32  ;;  %v741_v62 = vmul.f32 %v737_v38, %v5069_v37 }
 0x1cf   : > { %v742_v6 = vmul.f32 %v737_v38, %v5073_v24 }
 0x1d0   : > { %v1207_v14 = vadd.f32 %v1203_v17, %v1191_v50  ;;  %v1208_v33 = vadd.f32 %v1204_v57, %v1192_v15  ;;  %v777_v43 = vpop.permute.xlu0 %776  ;;  %v5078_v57 = vld [vmem:[#allocation49_spill] sm:$0xff]  ;;  %v4289_v15 = vld [vmem:[%s4843_s1 + $0x10] sm:$0x7f] }
 0x1d1   : > { %1094 = vrot.lane.b32.xlu1 %v1087_v25, %s3040_s27  ;;  %1090 = vrot.lane.b32.xlu0 %v1086_v5, %s3040_s27  ;;  %v783_v63 = vmul.f32 %v5076_v35, %v777_v43  ;;  %v784_v17 = vmul.f32 %v5077_v16, %v777_v43  ;;  %v5079_v5 = vld [vmem:[#allocation58_spill] sm:$0xff]  ;;  %v5082_v43 = vld [vmem:[#allocation16_spill] sm:$0xff] }
 0x1d2   : > { %v1215_v51 = vpop.permute.xlu1 %1214  ;;  %vm440_vm6 = vcmp.lt.s32.totalorder %v5082_v43, 48  ;;  %vm573_vm7 = vcmp.lt.s32.totalorder %v5082_v43, 32  ;;  %vm710_vm8 = vcmp.lt.s32.totalorder %v5082_v43, 16  ;;  %vm959_vm9 = vcmp.lt.s32.totalorder %v5082_v43, 112 }
 0x1d3   : > { %v1219_v2 = vmul.f32 %v1215_v51, %v4042_v12  ;;  %v1220_v0 = vmul.f32 %v1215_v51, %v4045_v53  ;;  %v4294_v51 = vld [vmem:[%s4843_s1 + $0x18] sm:$0x7f]  ;;  %vm1096_vm10 = vcmp.lt.s32.totalorder %v5082_v43, 96  ;;  %vm1233_vm11 = vcmp.lt.s32.totalorder %v5082_v43, 80 }
 0x1d4   : > { %v781_v52 = vpop.permute.xlu0 %780 }
 0x1d5   : > { %v1223_v29 = vadd.f32 %v1219_v2, %v1207_v14  ;;  %v1224_v55 = vadd.f32 %v1220_v0, %v1208_v33  ;;  %v785_v37 = vmul.f32 %v3896_v18, %v781_v52  ;;  %v786_v24 = vmul.f32 %v3933_v19, %v781_v52  ;;  %v5080_v2 = vld [vmem:[#allocation52_spill] sm:$0xff]  ;;  %v5083_v52 = vld [vmem:[#allocation17_spill] sm:$0xff] }
 0x1d7   : > { %1231 = vrot.lane.b32.xlu1 %v1224_v55, %s3041_s6  ;;  %1227 = vrot.lane.b32.xlu0 %v1223_v29, %s3041_s6  ;;  %v745_v21 = vpop.permute.xlu1 %744  ;;  %v5081_v29 = vld [vmem:[#allocation60_spill] sm:$0xff]  ;;  %s148_s6 = scalar_lea.vmem [#allocation2], %s2538_s4 }
 0x1d8   : > { %v797_v13 = vpop.permute.xlu0 %796  ;;  %v751_v25 = vmul.f32 %v745_v21, %v5078_v57  ;;  %v752_v50 = vmul.f32 %v745_v21, %v5079_v5  ;;  %v5085_v57 = vld [vmem:[#allocation28_spill] sm:$0xff] }
 0x1d9   : > { %v4299_v14 = vmul.f32 %v797_v13, %v3644_v54  ;;  %v4302_v33 = vmul.f32 %v797_v13, %v3944_v45  ;;  %v4315_v54 = vrot.slane %v4289_v15, %v5083_v52  ;;  %v4319_v45 = vrot.slane %v4294_v51, %v5083_v52  ;;  %v5084_v13 = vld [vmem:[#allocation19_spill] sm:$0xff] }
 0x1da   : > { %v4326_v32 = vrot.slane %v4289_v15, %v5084_v13  ;;  %v4330_v7 = vrot.slane %v4294_v51, %v5084_v13  ;;  %v4335_v5 = vrot.slane %v4289_v15, %v5085_v57 }
 0x1db   : > { %1620 = vperm.xlu1 %2882, %v1601_v61  }
 0x1dc   : > { %v761_v39 = vpop.permute.xlu1 %760 }
 0x1dd   : > { %v767_v0 = vmul.f32 %v761_v39, %v5080_v2  ;;  %v768_v55 = vmul.f32 %v761_v39, %v5081_v29  ;;  %v755_v39 = vadd.f32 %v751_v25, %v739_v10  ;;  %v5086_v2 = vld [vmem:[#allocation50_spill] sm:$0xff] }
 0x1de   : > { %v4348_v29 = vrot.slane %v4289_v15, %v5086_v2 }
 0x1df   : > { %v771_v10 = vadd.f32 %v767_v0, %v755_v39  ;;  %v4352_v0 = vrot.slane %v4294_v51, %v5086_v2  ;;  %v5088_v39 = vld [vmem:[#allocation55_spill] sm:$0xff] }
 0x1e1   : > { %v749_v11 = vpop.permute.xlu1 %748 }
 0x1e2   : > { %v753_v61 = vmul.f32 %v749_v11, %v5011_v58  ;;  %v754_v21 = vmul.f32 %v749_v11, %v5072_v36  ;;  %v756_v58 = vadd.f32 %v752_v50, %v740_v56 }
 0x1e4   : > { %v772_v56 = vadd.f32 %v768_v55, %v756_v58  ;;  %v757_v25 = vadd.f32 %v753_v61, %v741_v62  ;;  %v5087_v55 = vld [vmem:[#allocation53_spill] sm:$0xff] }
 0x1e5   : > { %v4266_v8 = vpop.permute.xlu0 %432  ;;  %v4357_v61 = vrot.slane %v4289_v15, %v5087_v55 }
 0x1e6   : > { %v765_v48 = vpop.permute.xlu1 %764 }
 0x1e7   : > { %v769_v36 = vmul.f32 %v765_v48, %v3442_v42  ;;  %v770_v11 = vmul.f32 %v765_v48, %v3535_v3  ;;  %v758_v42 = vadd.f32 %v754_v21, %v742_v6  ;;  %v4343_v48 = vrot.slane %v4294_v51, %v5085_v57 }
 0x1e8   : > { %v4361_v21 = vrot.slane %v4294_v51, %v5087_v55 }
 0x1e9   : > { %v566_v41 = vpop.permute.xlu0 %565  ;;  %v773_v62 = vadd.f32 %v769_v36, %v757_v25  ;;  %v774_v6 = vadd.f32 %v770_v11, %v758_v42  ;;  %v787_v25 = vadd.f32 %v783_v63, %v771_v10  ;;  %v788_v42 = vadd.f32 %v784_v17, %v772_v56 }
 0x1eb   : > { %v4256_v27 = vpop.permute.xlu1 %792 }
 0x1ec   : > { %v799_v58 = vmul.f32 %v4256_v27, %v5088_v39  ;;  %v800_v57 = vmul.f32 %v4256_v27, %v3708_v20 }
 0x1ee   : > { %v803_v17 = vadd.f32 %v799_v58, %v787_v25  ;;  %v804_v10 = vadd.f32 %v800_v57, %v788_v42  ;;  %v5089_v58 = vld [vmem:[#allocation56_spill] sm:$0xff] }
 0x1f0   : > { %v4258_v40 = vpop.permute.xlu1 %808 }
 0x1f1   : > { %v815_v2 = vmul.f32 %v4258_v40, %v5058_v44  ;;  %v816_v55 = vmul.f32 %v4258_v40, %v5060_v31  ;;  %v789_v40 = vadd.f32 %v785_v37, %v773_v62 }
 0x1f3   : > { %v819_v62 = vadd.f32 %v815_v2, %v803_v17 }
 0x1f5   : > { %v4260_v30 = vpop.permute.xlu1 %824 }
 0x1fa   : > { %v4262_v28 = vpop.permute.xlu1 %812  ;;  %v4270_v26 = vpop.permute.xlu0 %828 }
 0x1fe   : > { %v4264_v23 = vpop.permute.xlu1 %436 }
 0x1ff   : > { %v441_v20 = vsel %vm440_vm6, %v4266_v8, %v4264_v23  ;;  %v443_v27 = vsel %vm440_vm6, %v4264_v23, %v4266_v8  ;;  %v831_v23 = vmul.f32 %v4260_v30, %v5061_v60  ;;  %v832_v8 = vmul.f32 %v4260_v30, %v5063_v49 }
 0x200   : > { %v453_v56 = vmul.f32 %v4315_v54, %v443_v27  ;;  %v454_v39 = vmul.f32 %v4319_v45, %v441_v20  ;;  %v4404_v60 = vrot.slane %v4289_v15, %v5089_v58  ;;  %v4408_v49 = vrot.slane %v4294_v51, %v5089_v58 }
 0x201   : > { %v805_v30 = vadd.f32 %v4299_v14, %v789_v40  ;;  %v835_v25 = vadd.f32 %v831_v23, %v819_v62  ;;  %v818_v27 = vmul.f32 %v4262_v28, %v3977_v47  ;;  %v834_v58 = vmul.f32 %v4270_v26, %v4045_v53 }
 0x202   : > { %v570_v34 = vpop.permute.xlu1 %569 }
 0x203   : > { %v574_v36 = vsel %vm573_vm7, %v566_v41, %v570_v34  ;;  %v576_v11 = vsel %vm573_vm7, %v570_v34, %v566_v41  ;;  %v790_v34 = vadd.f32 %v786_v24, %v774_v6  ;;  %v820_v6 = vadd.f32 %v816_v55, %v804_v10 }
 0x204   : > { %v586_v41 = vmul.f32 %v4326_v32, %v576_v11  ;;  %v587_v63 = vmul.f32 %v4330_v7, %v574_v36 }
 0x205   : > { %v806_v57 = vadd.f32 %v4302_v33, %v790_v34  ;;  %v836_v42 = vadd.f32 %v832_v8, %v820_v6  ;;  %v817_v33 = vmul.f32 %v4262_v28, %v3821_v1 }
 0x206   : > { %v4268_v59 = vpop.permute.xlu1 %702  ;;  %v590_v36 = vadd.f32 %v586_v41, %v453_v56  ;;  %v591_v11 = vadd.f32 %v587_v63, %v454_v39 }
 0x207   : > { %v821_v10 = vadd.f32 %v817_v33, %v805_v30 }
 0x20a   : > { %v4272_v46 = vpop.permute.xlu1 %706 }
 0x20b   : > { %v711_v44 = vsel %vm710_vm8, %v4268_v59, %v4272_v46  ;;  %v713_v31 = vsel %vm710_vm8, %v4272_v46, %v4268_v59 }
 0x20c   : > { %v723_v59 = vmul.f32 %v4335_v5, %v713_v31  ;;  %v724_v46 = vmul.f32 %v4343_v48, %v711_v44 }
 0x20e   : > { %v727_v15 = vadd.f32 %v723_v59, %v590_v36  ;;  %v728_v20 = vadd.f32 %v724_v46, %v591_v11 }
 0x210   : > { %v840_v41 = vadd.f32 %v836_v42, %v728_v20 }
 0x225   : > { %v4274_v9 = vpop.permute.xlu1 %438  ;;  %v4276_v22 = vpop.permute.xlu0 %434 }
 0x226   : > { %v442_v44 = vsel %vm440_vm6, %v4276_v22, %v4274_v9 }
 0x227   : > { %v456_v23 = vmul.f32 %v4319_v45, %v442_v44 }
 0x229   : > { %v4308_v4 = vpop.permute.xlu1 %571  ;;  %v4310_v38 = vpop.permute.xlu0 %567 }
 0x22a   : > { %v575_v51 = vsel %vm573_vm7, %v4310_v38, %v4308_v4  ;;  %v577_v14 = vsel %vm573_vm7, %v4308_v4, %v4310_v38  ;;  %v444_v4 = vsel %vm440_vm6, %v4274_v9, %v4276_v22  ;;  %v839_v22 = vadd.f32 %v835_v25, %v727_v15 }
 0x22b   : > { %v588_v31 = vmul.f32 %v4326_v32, %v577_v14  ;;  %v589_v40 = vmul.f32 %v4330_v7, %v575_v51  ;;  %v822_v32 = vadd.f32 %v818_v27, %v806_v57  ;;  %v455_v7 = vmul.f32 %v4315_v54, %v444_v4 }
 0x22d   : > { %v4337_v50 = vpop.permute.xlu1 %708  ;;  %v4339_v3 = vpop.permute.xlu0 %704  ;;  %v838_v15 = vadd.f32 %v834_v58, %v822_v32  ;;  %v164_v32 = vld [vmem:[%s4843_s1 + $0x30] sm:$0xff] }
 0x22e   : > { %v712_v34 = vsel %vm710_vm8, %v4339_v3, %v4337_v50  ;;  %v714_v9 = vsel %vm710_vm8, %v4337_v50, %v4339_v3  ;;  %v592_v3 = vadd.f32 %v588_v31, %v455_v7 }
 0x22f   : > { %v725_v8 = vmul.f32 %v4335_v5, %v714_v9  ;;  %v726_v56 = vmul.f32 %v4343_v48, %v712_v34  ;;  %v833_v48 = vmul.f32 %v4270_v26, %v4042_v12  ;;  %v1602_v34 = vld [vmem:[%s4844_s2 + $0x168] sm:$0xff]  ;;  %v1600_v9 = vld [vmem:[%s4844_s2 + $0x158] sm:$0xff] }
 0x230   : > { %1712 = vperm.xlu1 %2882, %v1602_v34   ;;  %1615 = vperm.xlu0 %2881, %v1600_v9   ;;  %v1708_v34 = vld [vmem:[%s4842_s0 + $0x10] sm:$0xff] }
 0x231   : > { %v956_v13 = vpop.permute.xlu1 %955  ;;  %v952_v52 = vpop.permute.xlu0 %951  ;;  %v729_v36 = vadd.f32 %v725_v8, %v592_v3  ;;  %v837_v26 = vadd.f32 %v833_v48, %v821_v10  ;;  %v167_v10 = vld [vmem:[%s4843_s1 + $0x48] sm:$0xff]  ;;  %v3042_v8 = vmov 0.0   ;;  %v2554_v3 = vld [vmem:[%s4842_s0 + $0x20] sm:$0xff] }
 0x232   : > { %v960_v2 = vsel %vm959_vm9, %v952_v52, %v956_v13  ;;  %v962_v55 = vsel %vm959_vm9, %v956_v13, %v952_v52  ;;  %1464 = vmatprep.mubr.f32.mxu1 %v3042_v8 }
 0x233   : > { %v972_v1 = vmul.f32 %v4348_v29, %v960_v2  ;;  %v973_v47 = vmul.f32 %v4352_v0, %v962_v55  ;;  %v841_v14 = vadd.f32 %v837_v26, %v729_v36 }
 0x235   : > { %v1093_v37 = vpop.permute.xlu1 %1092  ;;  %v1089_v24 = vpop.permute.xlu0 %1088  ;;  %v976_v39 = vadd.f32 %v972_v1, %v839_v22  ;;  %v977_v59 = vadd.f32 %v973_v47, %v840_v41  ;;  %v1604_v22 = vld [vmem:[%s4844_s2 + $0x178] sm:$0xff]  ;;  %v1603_v41 = vld [vmem:[%s4844_s2 + $0x170] sm:$0xff] }
 0x236   : > { %v1097_v52 = vsel %vm1096_vm10, %v1089_v24, %v1093_v37  ;;  %v1099_v13 = vsel %vm1096_vm10, %v1093_v37, %v1089_v24  ;;  %v593_v37 = vadd.f32 %v589_v40, %v456_v23  ;;  %1722 = vperm.xlu1 %2882, %v1604_v22   ;;  %1717 = vperm.xlu0 %2881, %v1603_v41   ;;  %v166_v23 = vld [vmem:[%s4843_s1 + $0x40] sm:$0xff] }
 0x237   : > { %v1109_v63 = vmul.f32 %v4357_v61, %v1097_v52  ;;  %v1110_v17 = vmul.f32 %v4361_v21, %v1099_v13  ;;  %v1594_v41 = vld [vmem:[%s4844_s2] sm:$0xff] }
 0x238   : > { %v730_v11 = vadd.f32 %v726_v56, %v593_v37  ;;  %v2656_v56 = vpack.c.bf16 %v166_v23, %v164_v32 }
 0x239   : > { %v958_v28 = vpop.permute.xlu1 %957  ;;  %v954_v38 = vpop.permute.xlu0 %953  ;;  %v1113_v6 = vadd.f32 %v1109_v63, %v976_v39  ;;  %v1114_v54 = vadd.f32 %v1110_v17, %v977_v59  ;;  %v1605_v63 = vld [vmem:[%s4844_s2 + $0x180] sm:$0xff]  ;;  %v165_v17 = vld [vmem:[%s4843_s1 + $0x38] sm:$0xff]  ;;  %v2555_v39 = vld [vmem:[%s4842_s0 + $0x28] sm:$0xff] }
 0x23a   : > { %v961_v30 = vsel %vm959_vm9, %v954_v38, %v958_v28  ;;  %v963_v57 = vsel %vm959_vm9, %v958_v28, %v954_v38  ;;  %v842_v33 = vadd.f32 %v838_v15, %v730_v11  ;;  %1727 = vperm.xlu0 %2881, %v1605_v63   ;;  %v2654_v7 = vpack.c.bf16 %v167_v10, %v165_v17  ;;  %v2557_v59 = vld [vmem:[%s4842_s0 + $0x38] sm:$0xff]  ;;  %v1595_v17 = vld [vmem:[%s4844_s2 + $0x8] sm:$0xff] }
 0x23b   : > { %v974_v20 = vmul.f32 %v4348_v29, %v961_v30  ;;  %v975_v51 = vmul.f32 %v4352_v0, %v963_v57  ;;  %v2670_v37 = vpack.c.bf16 %v2557_v59, %v2555_v39  ;;  %v1564_v39 = vld [vmem:[%s4844_s2 + $0x1a0] sm:$0xff] }
 0x23c   : > { %2655 = vmatprep.subr.bf16.mxu1 %v2654_v7  ;;  %v1563_v7 = vld [vmem:[%s4844_s2 + $0x198] sm:$0xff] }
 0x23d   : > { %v978_v13 = vadd.f32 %v974_v20, %v841_v14  ;;  %v979_v44 = vadd.f32 %v975_v51, %v842_v33  ;;  %2657 = vmatpush1.bf16.msra.mxu1 %v2656_v56  ;;  %2671 = vmatprep.subr.bf16.mxu0 %v2670_v37 }
 0x23f   : > { %v1230_v46 = vpop.permute.xlu1 %1229  ;;  %v1226_v50 = vpop.permute.xlu0 %1225 }
 0x240   : > { %v1234_v24 = vsel %vm1233_vm11, %v1226_v50, %v1230_v46  ;;  %v1236_v62 = vsel %vm1233_vm11, %v1230_v46, %v1226_v50  ;;  %v1566_v46 = vadd.f32 %v5077_v16, %v5076_v35  ;;  %v1569_v50 = vadd.f32 %v3933_v19, %v3896_v18  ;;  %v4556_v18 = vld [vmem:[%s4844_s2 + $0x10] sm:$0xff] }
 0x241   : > { %v1246_v45 = vmul.f32 %v4404_v60, %v1234_v24  ;;  %v1247_v5 = vmul.f32 %v4408_v49, %v1236_v62  ;;  %v2556_v24 = vld [vmem:[%s4842_s0 + $0x30] sm:$0xff]  ;;  %v2658_v35 = vpack.c.bf16 %v3933_v19, %v5077_v16  ;;  %v4572_v19 = vld [vmem:[%s4844_s2 + $0x20] sm:$0xff]  ;;  %v4580_v16 = vld [vmem:[%s4844_s2 + $0x28] sm:$0xff] }
 0x242   : > { %v2672_v62 = vpack.c.bf16 %v2556_v24, %v2554_v3 }
 0x243   : > { %v1095_v25 = vpop.permute.xlu1 %1094  ;;  %v1091_v42 = vpop.permute.xlu0 %1090  ;;  %v4472_v2 = vadd.f32 %v1247_v5, %v1114_v54  ;;  %v4474_v55 = vadd.f32 %v1246_v45, %v1113_v6  ;;  %2659 = vmatprep.subr.bf16.mxu1 %v2658_v35  ;;  %v4564_v6 = vld [vmem:[%s4844_s2 + $0x18] sm:$0xff]  ;;  %v1609_v54 = vld [vmem:[%s4844_s2 + $0x190] sm:$0xff]  ;;  %v1608_v45 = vld [vmem:[%s4844_s2 + $0x188] sm:$0xff] }
 0x244   : > { %v1098_v12 = vsel %vm1096_vm10, %v1091_v42, %v1095_v25  ;;  %v1100_v53 = vsel %vm1096_vm10, %v1095_v25, %v1091_v42 }
 0x245   : > { %1354 = vmatprep.mubr.f32.mxu0 %v4472_v2  ;;  %v1111_v27 = vmul.f32 %v4357_v61, %v1098_v12  ;;  %v1112_v52 = vmul.f32 %v4361_v21, %v1100_v53  ;;  %v1287_v21 = vmul.f32 %v4472_v2, %v4472_v2  ;;  %v1286_v43 = vmul.f32 %v4474_v55, %v4474_v55 }
 0x246   : > { %1355 = vmatmul.mubr.f32.vlgmr.msra.gmra.mrb[0].mxu0 %v4474_v55 }
 0x247   : > { %v1115_v0 = vadd.f32 %v1111_v27, %v978_v13  ;;  %v1116_v28 = vadd.f32 %v1112_v52, %v979_v44  ;;  %2673 = vmatpush1.bf16.msra.mxu0 %v2672_v62  ;;  %v1707_v44 = vld [vmem:[%s4842_s0 + $0x8] sm:$0xff] }
 0x249   : > { %v1232_v4 = vpop.permute.xlu1 %1231  ;;  %v1228_v1 = vpop.permute.xlu0 %1227 }
 0x24a   : > { %v1235_v47 = vsel %vm1233_vm11, %v1228_v1, %v1232_v4  ;;  %v1237_v29 = vsel %vm1233_vm11, %v1232_v4, %v1228_v1  ;;  %v1709_v4 = vld [vmem:[%s4842_s0 + $0x18] sm:$0xff]  ;;  %v2915_v1 = vld [vmem:[%s3126_s29] sm:$0xff] }
 0x24b   : > { %v1248_v38 = vmul.f32 %v4404_v60, %v1235_v47  ;;  %v1249_v31 = vmul.f32 %v4408_v49, %v1237_v29  ;;  %v2916_v47 = vld [vmem:[%s3126_s29 + $0x10] sm:$0xff]  ;;  %s2483_s29 = sshll.u32 %s148_s6, 4  ;;  %s4796_s29 = int_to_ptr.vmem [resolvable:$true] %s2483_s29 }
 0x24c   : > { %v2660_v29 = vpack.c.bf16 %v2916_v47, %v2915_v1  ;;  %s2917_s9 = scalar_lea.vmem %s4796_s29, 512  ;;  %p2924_p13 = scmp.lt.s32.totalorder %s4796_s29, %s2922_s11 }
 0x24d   : > { %v4492_v40 = vadd.f32 %v1249_v31, %v1116_v28  ;;  %v4494_v61 = vadd.f32 %v1248_v38, %v1115_v0  ;;  %v2662_v0 = vpack.c.bf16 %v1709_v4, %v1707_v44  ;;  %p2918_p10 = scmp.ne.s32.totalorder %s4796_s29, %s2917_s9  ;;  %p2925_p0 = scmp.lt.s32.totalorder %s2923_s17, %s2917_s9 }
 0x24f   : > { %1359 = vmatprep.mubr.f32.mxu0 %v4492_v40  ;;  %v1289_v60 = vmul.f32 %v4492_v40, %v4492_v40  ;;  %v1288_v49 = vmul.f32 %v4494_v61, %v4494_v61  ;;  %p2919_p11 = pnand %p2918_p10, %p3103_p5  ;;  %p2926_p1 = por %p2925_p0, %p2924_p13 }
 0x250   : > { %1360 = vmatmul.mubr.f32.gmra.mrb[2].mxu0 %v4494_v61 }
 0x251   : > { %1364 = vmatprep.mubr.f32.mxu0 %v1287_v21  ;;  %p2920_p12 = pneg %p2919_p11 }
 0x253   : > { %p2927_p2 = pnand %p2926_p1, %p2920_p12 }
 0x254   : > { %1365 = vmatmul.mubr.f32.gmra.mrb[4].mxu0 %v1286_v43 }
 0x255   : > { %1369 = vmatprep.mubr.f32.mxu0 %v1289_v60 }
 0x258   : > { %1370 = vmatmul.mubr.f32.gmra.mrb[6].mxu0 %v1288_v49  ;;  %v1706_v49 = vld [vmem:[%s4842_s0] sm:$0xff] }
 0x259   : > { %1978 = vmatprep.mubr.f32.mxu0 %v3042_v8  ;;  %1570 = vadd.xlane.f32.xlu0 %v1569_v50  ;;  %v2664_v63 = vpack.c.bf16 %v1708_v34, %v1706_v49 }
 0x25a   : > { %1567 = vadd.xlane.f32.xlu1 %v1566_v46  ;;  %v4603_v43 = vpop.permute.xlu1 %1620 }
 0x25c   : > { %2558 = vmatmul.mubr.msk.f32.vlgmr.msra.gmra.mrb[8].mxu0 %vm1387_vm12, %v4556_v18 }
 0x25d   : > { %1984 = vmatprep.mubr.f32.mxu0 %v3042_v8 }
 0x260   : > { %2559 = vmatmul.mubr.msk.f32.gmra.mrb[10].mxu0 %vm1387_vm12, %v4564_v6 }
 0x261   : > { %1990 = vmatprep.mubr.f32.mxu0 %v3042_v8 }
 0x264   : > { %2560 = vmatmul.mubr.msk.f32.gmra.mrb[12].mxu0 %vm1387_vm12, %v4572_v19 }
 0x265   : > { %1996 = vmatprep.mubr.f32.mxu0 %v3042_v8 }
 0x268   : > { %2561 = vmatmul.mubr.msk.f32.gmra.mrb[14].mxu0 %vm1387_vm12, %v4580_v16 }
 0x269   : > { %2335 = vmatprep.mubr.f32.mxu0 %v3042_v8 }
 0x26b   : > { %2359 = vperm.xlu1 %2882, %v1609_v54  }
 0x26f   : > { %2354 = vperm.xlu0 %2881, %v1608_v45  }
 0x2af   : > { %v4605_v60 = vpop.permute.xlu0 %1615  ;;  %v4615_v9 = vpop.permute.xlu1 %1712 }
 0x2b5   : > { %v4618_v22 = vpop.permute.xlu0 %1717  ;;  %v4629_v10 = vpop.permute.xlu1 %1722 }
 0x2b9   : > { %v4631_v32 = vpop.permute.xlu0 %1727 }
 0x2e6   : > { %v1571_v59 = vpop.xlane.xlu0 %1570 }
 0x2e7   : > { %v1568_v23 = vpop.xlane.xlu1 %1567  ;;  %v1573_v46 = vmul.f32 0.00390625, %v1571_v59 }
 0x2e8   : > { %v1572_v56 = vmul.f32 0.00390625, %v1568_v23 }
 0x2e9   : > { %v1575_v3 = vmul.f32 %v1573_v46, %v1564_v39 }
 0x2ea   : > { %v1574_v50 = vmul.f32 %v1572_v56, %v1563_v7 }
 0x2eb   : > { %v1578_v24 = vsel %vm1576_vm13, %v1575_v3, 0.0 }
 0x2ec   : > { %v1577_v37 = vsel %vm1576_vm13, %v1574_v50, 0.0 }
 0x2ed   : > { %v1579_v62 = vadd.f32 %v1578_v24, %v1577_v37 }
 0x2ef   : > { %v1580_v35 = vrot.slane %v1579_v62, 4 }
 0x319   : > { %v2610_v5 = vpop.f32.mrb[0].mxu0 }
 0x31a   : > { %v2611_v48 = vpop.f32.mrb[1].mxu0 }
 0x31b   : > { %v2612_v58 = vadd.f32 %v2611_v48, %v2610_v5  ;;  %v1565_v5 = vld [vmem:[%s4844_s2 + $0x1a8] sm:$0x1] }
 0x31d   : > { %v1375_v42 = vmul.f32 %v2612_v58, %v2612_v58 }
 0x323   : > { %v2613_v30 = vpop.f32.mrb[2].mxu0 }
 0x324   : > { %v2614_v57 = vpop.f32.mrb[3].mxu0 }
 0x325   : > { %v2615_v36 = vadd.f32 %v2614_v57, %v2613_v30 }
 0x327   : > { %v2616_v11 = vpop.f32.mrb[4].mxu0  ;;  %v1376_v20 = vmul.f32 %v2615_v36, %v2615_v36 }
 0x328   : > { %v2617_v25 = vpop.f32.mrb[5].mxu0 }
 0x329   : > { %v2618_v12 = vadd.f32 %v2617_v25, %v2616_v11 }
 0x32b   : > { %v1377_v53 = vsub.f32 %v2618_v12, %v1375_v42  ;;  %v2619_v26 = vpop.f32.mrb[6].mxu0 }
 0x32c   : > { %v2620_v15 = vpop.f32.mrb[7].mxu0 }
 0x32d   : > { %v1379_v51 = vmax.f32 %v1377_v53, 0.0  ;;  %v2621_v14 = vadd.f32 %v2620_v15, %v2619_v26 }
 0x32f   : > { %v1381_v33 = vadd.f32 1e-05, %v1379_v51  ;;  %v1378_v27 = vsub.f32 %v2621_v14, %v1376_v20 }
 0x331   : > { %2883 = vrsqrt.f32 %v1381_v33  ;;  %v1380_v52 = vmax.f32 %v1378_v27, 0.0 }
 0x333   : > { %v1382_v13 = vadd.f32 1e-05, %v1380_v52 }
 0x335   : > { %2885 = vrsqrt.f32 %v1382_v13 }
 0x33b   : > { %v2884_v28 = vpop.eup %2883 }
 0x33c   : > { %2543 = vmatmul.mubr.msk.f32.vlgmr.msra.gmra.mrb[0].mxu1 %vm1387_vm12, %v2884_v28  ;;  %v1385_v38 = vmul.f32 %v2884_v28, %v2612_v58 }
 0x33d   : > { %1470 = vmatprep.mubr.f32.mxu1 %v3042_v8  ;;  %2661 = vmatpush1.bf16.msra.mxu1 %v2660_v29 }
 0x33e   : > { %2663 = vmatprep.subr.bf16.mxu1 %v2662_v0 }
 0x33f   : > { %v2886_v31 = vpop.eup %2885 }
 0x340   : > { %2544 = vmatmul.mubr.msk.f32.gmra.mrb[2].mxu1 %vm1387_vm12, %v2886_v31  ;;  %v1386_v21 = vmul.f32 %v2886_v31, %v2615_v36 }
 0x341   : > { %1476 = vmatprep.mubr.f32.mxu1 %v3042_v8 }
 0x344   : > { %2545 = vmatmul.mubr.msk.f32.gmra.mrb[4].mxu1 %vm1387_vm12, %v1385_v38 }
 0x345   : > { %1482 = vmatprep.mubr.f32.mxu1 %v3042_v8 }
 0x348   : > { %2546 = vmatmul.mubr.msk.f32.gmra.mrb[6].mxu1 %vm1387_vm12, %v1386_v21 }
 0x349   : > { %1693 = vmatprep.mubr.f32.mxu1 %v3042_v8 }
 0x34c   : > { %2547 = vmatmul.mubr.msk.f32.vlgmr.msra.gmra.mrb[8].mxu1 %vm1387_vm12, %v1594_v41 }
 0x34d   : > { %1699 = vmatprep.mubr.f32.mxu1 %v3042_v8  ;;  %2665 = vmatpush1.bf16.msra.mxu1 %v2664_v63 }
 0x350   : > { %2548 = vmatmul.mubr.msk.f32.gmra.mrb[10].mxu1 %vm1387_vm12, %v1595_v17 }
 0x351   : > { %1806 = vmatprep.mubr.f32.mxu1 %v3042_v8 }
 0x354   : > { %2549 = vmatmul.mubr.msk.f32.vlgmr.msra.gmra.mrb[12].mxu1 %vm1387_vm12, %v4556_v18  ;;  %v1581_v18 = vadd.f32 %v1580_v35, %v1579_v62 }
 0x355   : > { %1812 = vmatprep.mubr.f32.mxu1 %v3042_v8 }
 0x356   : > { %v1582_v54 = vrot.slane %v1581_v18, 2 }
 0x358   : > { %2550 = vmatmul.mubr.msk.f32.gmra.mrb[14].mxu1 %vm1387_vm12, %v4564_v6  ;;  %v1583_v45 = vadd.f32 %v1582_v54, %v1581_v18 }
 0x359   : > { %1818 = vmatprep.mubr.f32.mxu1 %v3042_v8 }
 0x35a   : > { %v1584_v6 = vrot.slane %v1583_v45, 1 }
 0x35c   : > { %2551 = vmatmul.mubr.msk.f32.gmra.mrb[16].mxu1 %vm1387_vm12, %v4572_v19  ;;  %v1585_v48 = vadd.f32 %v1584_v6, %v1583_v45 }
 0x35d   : > { %1824 = vmatprep.mubr.f32.mxu1 %v3042_v8 }
 0x35e   : > { %v1586_v58 = vadd.f32 %v1585_v48, %v1565_v5 }
 0x360   : > { %2552 = vmatmul.mubr.msk.f32.gmra.mrb[18].mxu1 %vm1387_vm12, %v4580_v16  ;;  %v1587_v30 = vsub.f32 0.0, %v1586_v58  ;;  %v1980_v16 = vpop.f32.mrb[8].mxu0 }
 0x361   : > { %1902 = vmatprep.mubr.f32.mxu1 %v3042_v8  ;;  %v1982_v25 = vpop.f32.mrb[9].mxu0  ;;  %v1981_v31 = vadd.f32 %v1980_v16, %v4615_v9 }
 0x362   : > { %v1588_v19 = vmul.f32 1.442695, %v1587_v30  ;;  %v1986_v42 = vpop.f32.mrb[10].mxu0  ;;  %v1983_v49 = vadd.f32 %v1982_v25, %v4615_v9  ;;  %v1610_v25 = vld [vmem:[%s4844_s2 + $0x50] sm:$0xff] }
 0x363   : > { %v1988_v12 = vpop.f32.mrb[11].mxu0  ;;  %v1987_v63 = vadd.f32 %v1986_v42, %v4618_v22 }
 0x364   : > { %2887 = vpow2.f32 %v1588_v19  ;;  %v4659_v53 = vpop.f32.mrb[12].mxu0  ;;  %v1989_v23 = vadd.f32 %v1988_v12, %v4618_v22 }
 0x365   : > { %v4661_v26 = vpop.f32.mrb[13].mxu0 }
 0x366   : > { %v4663_v15 = vpop.f32.mrb[14].mxu0 }
 0x367   : > { %v4665_v20 = vpop.f32.mrb[15].mxu0 }
 0x36e   : > { %v2888_v57 = vpop.eup %2887 }
 0x36f   : > { %v1590_v36 = vadd.f32 1.0, %v2888_v57 }
 0x371   : > { %2889 = vrcp.f32 %v1590_v36 }
 0x37b   : > { %v4656_v11 = vpop.eup %2889 }
 0x37c   : > { %2682 = vpush %v4656_v11 }
 0x3ad   : > { %s2683_s27 = spop %2682 }
 0x40f   : > { %v1466_v51 = vpop.f32.mrb[0].mxu1 }
 0x410   : > { %v1468_v14 = vpop.f32.mrb[1].mxu1  ;;  %v4668_v52 = vmul.f32 %v1466_v51, %v4474_v55 }
 0x411   : > { %v4671_v13 = vmul.f32 %v1468_v14, %v4472_v2 }
 0x413   : > { %v1472_v33 = vpop.f32.mrb[2].mxu1 }
 0x414   : > { %v1474_v27 = vpop.f32.mrb[3].mxu1  ;;  %v4682_v29 = vmul.f32 %v1472_v33, %v4494_v61 }
 0x415   : > { %v4685_v0 = vmul.f32 %v1474_v27, %v4492_v40 }
 0x417   : > { %v4673_v44 = vpop.f32.mrb[4].mxu1 }
 0x418   : > { %v1493_v4 = vsub.f32 %v4668_v52, %v4673_v44  ;;  %v4677_v1 = vpop.f32.mrb[5].mxu1 }
 0x419   : > { %v1494_v47 = vsub.f32 %v4671_v13, %v4677_v1 }
 0x41b   : > { %v4687_v55 = vpop.f32.mrb[6].mxu1 }
 0x41c   : > { %v1495_v2 = vsub.f32 %v4682_v29, %v4687_v55  ;;  %v4691_v28 = vpop.f32.mrb[7].mxu1 }
 0x41d   : > { %v1496_v38 = vsub.f32 %v4685_v0, %v4691_v28 }
 0x41f   : > { %v1695_v21 = vpop.f32.mrb[8].mxu1 }
 0x420   : > { %v1696_v61 = vadd.f32 %v1695_v21, %v4605_v60  ;;  %v1697_v34 = vpop.f32.mrb[9].mxu1 }
 0x421   : > { %v1698_v40 = vadd.f32 %v1697_v34, %v4605_v60 }
 0x422   : > { %v2003_v41 = vmul.f32 %v1981_v31, %v1696_v61 }
 0x423   : > { %v2004_v17 = vmul.f32 %v1983_v49, %v1698_v40  ;;  %v1701_v7 = vpop.f32.mrb[10].mxu1 }
 0x424   : > { %v1702_v56 = vadd.f32 %v1701_v7, %v4603_v43  ;;  %v1703_v39 = vpop.f32.mrb[11].mxu1 }
 0x425   : > { %v1704_v59 = vadd.f32 %v1703_v39, %v4603_v43 }
 0x426   : > { %v2005_v46 = vmul.f32 %v1987_v63, %v1702_v56 }
 0x427   : > { %v2006_v50 = vmul.f32 %v1989_v23, %v1704_v59  ;;  %v1808_v3 = vpop.f32.mrb[12].mxu1 }
 0x428   : > { %v2676_v37 = vpack.c.bf16 %v2005_v46, %v2003_v41  ;;  %v1809_v24 = vadd.f32 %v1808_v3, %v4615_v9  ;;  %v1810_v62 = vpop.f32.mrb[13].mxu1  ;;  %v1612_v46 = vld [vmem:[%s4844_s2 + $0x48] sm:$0xff] }
 0x429   : > { %v1811_v60 = vadd.f32 %v1810_v62, %v4615_v9  ;;  %v2674_v35 = vpack.c.bf16 %v2006_v50, %v2004_v17 }
 0x42a   : > { %v1831_v18 = vmul.f32 %v1809_v24, %v1696_v61 }
 0x42b   : > { %v1832_v54 = vmul.f32 %v1811_v60, %v1698_v40  ;;  %v1814_v45 = vpop.f32.mrb[14].mxu1 }
 0x42c   : > { %v1815_v6 = vadd.f32 %v1814_v45, %v4618_v22  ;;  %v1816_v5 = vpop.f32.mrb[15].mxu1 }
 0x42d   : > { %v1817_v48 = vadd.f32 %v1816_v5, %v4618_v22 }
 0x42e   : > { %v1833_v58 = vmul.f32 %v1815_v6, %v1702_v56  ;;  %v1611_v56 = vld [vmem:[%s4844_s2 + $0x40] sm:$0xff] }
 0x42f   : > { %v1834_v43 = vmul.f32 %v1817_v48, %v1704_v59  ;;  %v4707_v30 = vpop.f32.mrb[16].mxu1 }
 0x430   : > { %v2668_v19 = vpack.c.bf16 %v1833_v58, %v1831_v18  ;;  %v4709_v57 = vpop.f32.mrb[17].mxu1  ;;  %v1821_v24 = vadd.f32 %v4707_v30, %v4629_v10  ;;  %v1995_v30 = vadd.f32 %v4661_v26, %v4629_v10 }
 0x431   : > { %v2666_v36 = vpack.c.bf16 %v1834_v43, %v1832_v54  ;;  %v1823_v62 = vadd.f32 %v4709_v57, %v4629_v10  ;;  %v1993_v43 = vadd.f32 %v4659_v53, %v4629_v10 }
 0x433   : > { %v4711_v16 = vpop.f32.mrb[18].mxu1  ;;  %2667 = vmatprep.subr.bf16.mxu1 %v2666_v36 }
 0x434   : > { %v4713_v9 = vpop.f32.mrb[19].mxu1  ;;  %2669 = vmatpush1.bf16.msra.mxu1 %v2668_v19  ;;  %v1827_v45 = vadd.f32 %v4711_v16, %v4631_v32  ;;  %v1999_v16 = vadd.f32 %v4663_v15, %v4631_v32 }
 0x435   : > { %2675 = vmatprep.subr.bf16.mxu1 %v2674_v35  ;;  %v1829_v6 = vadd.f32 %v4713_v9, %v4631_v32  ;;  %v2001_v9 = vadd.f32 %v4665_v20, %v4631_v32  ;;  %v1606_v32 = vld [vmem:[%s4844_s2 + $0x30] sm:$0xff]  ;;  %v1607_v20 = vld [vmem:[%s4844_s2 + $0x38] sm:$0xff] }
 0x437   : > { %2553 = vmatmul.mubr.msk.f32.vlgmr.msra.gmra.mrb[20].mxu1 %vm1387_vm12, %v1610_v25 }
 0x438   : > { %2677 = vmatpush1.bf16.msra.mxu1 %v2676_v37  ;;  %2071 = vmatprep.mubr.f32.mxu1 %v3042_v8  ;;  %v1593_v37 = vsub.f32 1.0, %v4656_v11 }
 0x43a   : > { %2684 = vpush %v1593_v37 }
 0x43b   : > { %2562 = vmatmul.mubr.msk.f32.vlgmr.msra.gmra.mrb[22].mxu1 %vm1387_vm12, %v1610_v25 }
 0x43c   : > { %2165 = vmatprep.mubr.f32.mxu1 %v3042_v8 }
 0x46b   : > { %s2685_s28 = spop %2684 }
 0x50a   : > { %v1904_v22 = vpop.f32.mrb[20].mxu1 }
 0x50b   : > { %v1906_v42 = vpop.f32.mrb[21].mxu1 }
 0x50e   : > { %v2073_v12 = vpop.f32.mrb[22].mxu1 }
 0x50f   : > { %v2078_v51 = vmax.f32 %v1904_v22, %v2073_v12  ;;  %v2075_v14 = vpop.f32.mrb[23].mxu1 }
 0x510   : > { %v2079_v33 = vmax.f32 %v1906_v42, %v2075_v14 }
 0x511   : > { %v2080_v27 = vsub.f32 %v1904_v22, %v2078_v51  ;;  %v2086_v31 = vsub.f32 %v2073_v12, %v2078_v51 }
 0x512   : > { %v2081_v21 = vsub.f32 %v1906_v42, %v2079_v33  ;;  %v2087_v49 = vsub.f32 %v2075_v14, %v2079_v33 }
 0x513   : > { %v2082_v61 = vmul.f32 1.442695, %v2080_v27  ;;  %v2088_v34 = vmul.f32 1.442695, %v2086_v31 }
 0x514   : > { %v2084_v40 = vmul.f32 1.442695, %v2081_v21  ;;  %v2090_v41 = vmul.f32 1.442695, %v2087_v49 }
 0x515   : > { %2891 = vpow2.f32 %v2082_v61 }
 0x516   : > { %2893 = vpow2.f32 %v2088_v34 }
 0x517   : > { %2895 = vpow2.f32 %v2084_v40 }
 0x518   : > { %2897 = vpow2.f32 %v2090_v41 }
 0x51f   : > { %v2892_v63 = vpop.eup %2891 }
 0x520   : > { %v2894_v17 = vpop.eup %2893 }
 0x521   : > { %v2896_v7 = vpop.eup %2895  ;;  %v2092_v23 = vadd.f32 %v2894_v17, %v2892_v63 }
 0x522   : > { %v2898_v39 = vpop.eup %2897  ;;  %2101 = vmatprep.subr.mxu1 %v2896_v7 }
 0x523   : > { %v2093_v59 = vadd.f32 %v2898_v39, %v2896_v7  ;;  %2102 = vmatpush1.msra.mxu1 %v2892_v63  ;;  %v2541_v63 = vld [vmem:[%s4843_s1 + $0x20] ss:$8 sm:$0x3] }
 0x524   : > { %2563 = vmatmul.mubr.msk.f32.vlgmr.msra.gmra.mrb[24].mxu1 %vm2094_vm14, %v1611_v56  ;;  %2182 = vmatprep.subr.mxu1 %v2898_v39 }
 0x525   : > { %2899 = vrcp.f32 %v2093_v59  ;;  %2183 = vmatpush1.msra.mxu1 %v2894_v17  ;;  %2171 = vmatprep.mubr.f32.mxu1 %v3042_v8  ;;  %v5090_v17 = vld [vmem:[#allocation17_spill] sm:$0xff] }
 0x526   : > { %2901 = vrcp.f32 %v2092_v23  ;;  %v1501_v7 = vrot.slane %v2541_v63, %v5090_v17  ;;  %v2542_v23 = vld [vmem:[%s4843_s1 + $0x21] ss:$8 sm:$0x3] }
 0x527   : > { %v1516_v59 = vrot.slane %v2542_v23, %v5090_v17 }
 0x528   : > { %2564 = vmatmul.mubr.msk.f32.gmra.mrb[26].mxu1 %vm2094_vm14, %v1612_v46  ;;  %v1510_v37 = vmul.f32 %v1501_v7, %v1495_v2 }
 0x529   : > { %2246 = vmatprep.mubr.f32.mxu1 %v3042_v8 }
 0x52a   : > { %v1525_v44 = vadd.f32 %v1516_v59, %v1510_v37 }
 0x52c   : > { %2565 = vmatmul.mubr.msk.f32.vlgmr.msra.gmra.mrb[28].mxu1 %vm2094_vm14, %v1611_v56 }
 0x52d   : > { %2252 = vmatprep.mubr.f32.mxu1 %v3042_v8 }
 0x52f   : > { %v2900_v50 = vpop.eup %2899 }
 0x530   : > { %v2902_v3 = vpop.eup %2901  ;;  %2271 = vmatprep.subr.mxu0 %v2900_v50  ;;  %2566 = vmatmul.mubr.msk.f32.gmra.mrb[30].mxu1 %vm2094_vm14, %v1612_v46 }
 0x531   : > { %2272 = vmatpush1.msra.mxu0 %v2902_v3  ;;  %2432 = vmatprep.mubr.f32.mxu1 %v3042_v8 }
 0x532   : > { %2567 = vmatmul.mubr.msk.f32.vlgmr.msra.gmra.mrb[16].mxu0 %vm2094_vm14, %v1611_v56  ;;  %v5091_v56 = vld [vmem:[#allocation19_spill] sm:$0xff] }
 0x533   : > { %2341 = vmatprep.mubr.f32.mxu0 %v3042_v8  ;;  %v1505_v39 = vrot.slane %v2541_v63, %v5091_v56  ;;  %v1520_v50 = vrot.slane %v2542_v23, %v5091_v56 }
 0x536   : > { %2568 = vmatmul.mubr.msk.f32.gmra.mrb[18].mxu0 %vm2094_vm14, %v1612_v46  ;;  %v1509_v46 = vmul.f32 %v1505_v39, %v1494_v47 }
 0x5f7   : > { %v2167_v60 = vpop.f32.mrb[24].mxu1 }
 0x5f8   : > { %v2178_v35 = vmul.f32 %v2167_v60, %v1821_v24  ;;  %v2169_v18 = vpop.f32.mrb[25].mxu1  ;;  %v1524_v24 = vadd.f32 %v1520_v50, %v1509_v46 }
 0x5f9   : > { %v2179_v54 = vmul.f32 %v2169_v18, %v1823_v62  ;;  %v1511_v62 = vmul.f32 %v1505_v39, %v1496_v38 }
 0x5fb   : > { %v2173_v5 = vpop.f32.mrb[26].mxu1  ;;  %v1526_v60 = vadd.f32 %v1520_v50, %v1511_v62 }
 0x5fc   : > { %v2180_v48 = vmul.f32 %v2173_v5, %v1827_v45  ;;  %v2175_v11 = vpop.f32.mrb[27].mxu1 }
 0x5fd   : > { %v2181_v58 = vmul.f32 %v2175_v11, %v1829_v6  ;;  %v1534_v13 = vmul.f32 0.044715, %v1526_v60 }
 0x5ff   : > { %v2248_v19 = vpop.f32.mrb[28].mxu1  ;;  %v1538_v45 = vmul.f32 %v1534_v13, %v1526_v60 }
 0x600   : > { %v2259_v57 = vmul.f32 %v2248_v19, %v1993_v43  ;;  %v2250_v36 = vpop.f32.mrb[29].mxu1 }
 0x601   : > { %v2260_v25 = vmul.f32 %v2250_v36, %v1995_v30  ;;  %v1542_v55 = vmul.f32 %v1538_v45, %v1526_v60 }
 0x602   : > { %v2263_v22 = vadd.f32 %v2259_v57, %v2178_v35  ;;  %v1533_v35 = vmul.f32 0.044715, %v1525_v44 }
 0x603   : > { %v2254_v42 = vpop.f32.mrb[30].mxu1  ;;  %v2264_v12 = vadd.f32 %v2260_v25, %v2179_v54  ;;  %v1546_v0 = vadd.f32 %v1542_v55, %v1526_v60 }
 0x604   : > { %v2261_v51 = vmul.f32 %v2254_v42, %v1999_v16  ;;  %v2256_v14 = vpop.f32.mrb[31].mxu1  ;;  %v1537_v47 = vmul.f32 %v1533_v35, %v1525_v44 }
 0x605   : > { %v2262_v33 = vmul.f32 %v2256_v14, %v2001_v9  ;;  %v2337_v53 = vpop.f32.mrb[16].mxu0 }
 0x606   : > { %v2348_v27 = vmul.f32 %v2337_v53, %v2263_v22  ;;  %v2339_v31 = vpop.f32.mrb[17].mxu0  ;;  %v2265_v10 = vadd.f32 %v2261_v51, %v2180_v48  ;;  %v1541_v5 = vmul.f32 %v1537_v47, %v1525_v44  ;;  %v1528_v22 = vmul.f32 0.5, %v1524_v24 }
 0x607   : > { %v2349_v26 = vmul.f32 %v2339_v31, %v2264_v12  ;;  %v2266_v21 = vadd.f32 %v2262_v33, %v2181_v58  ;;  %v1550_v58 = vmul.f32 0.7978846, %v1546_v0  ;;  %v2355_v12 = vpop.permute.xlu0 %2354  ;;  %v2447_v33 = vstv %s2683_s27 }
 0x608   : > { %v1545_v48 = vadd.f32 %v1541_v5, %v1525_v44  ;;  %v1529_v31 = vmul.f32 0.5, %v1525_v44 }
 0x609   : > { %v2343_v49 = vpop.f32.mrb[18].mxu0 }
 0x60a   : > { %v2350_v61 = vmul.f32 %v2343_v49, %v2265_v10  ;;  %v2345_v34 = vpop.f32.mrb[19].mxu0  ;;  %v1549_v38 = vmul.f32 0.7978846, %v1545_v48 }
 0x60b   : > { %v2351_v40 = vmul.f32 %v2345_v34, %v2266_v21  ;;  %v1530_v21 = vmul.f32 0.5, %v1526_v60 }
 0x60c   : > { %v2680_v15 = vpack.c.bf16 %v2350_v61, %v2348_v27  ;;  %v2455_v27 = vstv %s2685_s28 }
 0x60d   : > { %v2678_v41 = vpack.c.bf16 %v2351_v40, %v2349_v26 }
 0x60f   : > { %2679 = vmatprep.subr.bf16.mxu1 %v2678_v41 }
 0x610   : > { %2681 = vmatpush1.bf16.msra.mxu1 %v2680_v15  ;;  %v2360_v15 = vpop.permute.xlu1 %2359 }
 0x613   : > { %2569 = vmatmul.mubr.msk.f32.vlgmr.msra.gmra.mrb[32].mxu1 %vm1387_vm12, %v1606_v32 }
 0x614   : > { %2438 = vmatprep.mubr.f32.mxu1 %v3042_v8  ;;  %v1508_v8 = vmul.f32 %v1501_v7, %v1493_v4  ;;  %v1532_v4 = vmul.f32 0.044715, %v1524_v24 }
 0x616   : > { %v1523_v3 = vadd.f32 %v1516_v59, %v1508_v8  ;;  %v1536_v1 = vmul.f32 %v1532_v4, %v1524_v24 }
 0x617   : > { %2570 = vmatmul.mubr.msk.f32.gmra.mrb[34].mxu1 %vm1387_vm12, %v1607_v20 }
 0x618   : > { %v1531_v52 = vmul.f32 0.044715, %v1523_v3  ;;  %v1540_v6 = vmul.f32 %v1536_v1, %v1524_v24  ;;  %v1527_v16 = vmul.f32 0.5, %v1523_v3 }
 0x61a   : > { %v1535_v18 = vmul.f32 %v1531_v52, %v1523_v3  ;;  %v1544_v2 = vadd.f32 %v1540_v6, %v1524_v24 }
 0x61c   : > { %v1539_v54 = vmul.f32 %v1535_v18, %v1523_v3  ;;  %v1548_v28 = vmul.f32 0.7978846, %v1544_v2 }
 0x61e   : > { %v1543_v29 = vadd.f32 %v1539_v54, %v1523_v3 }
 0x620   : > { %v1547_v11 = vmul.f32 0.7978846, %v1543_v29 }
 0x622   : > { %2903 = vtanh.f32 %v1547_v11 }
 0x623   : > { %2905 = vtanh.f32 %v1548_v28 }
 0x624   : > { %2907 = vtanh.f32 %v1549_v38 }
 0x625   : > { %2909 = vtanh.f32 %v1550_v58 }
 0x62c   : > { %v2904_v43 = vpop.eup %2903 }
 0x62d   : > { %v2906_v30 = vpop.eup %2905  ;;  %v1555_v19 = vadd.f32 1.0, %v2904_v43 }
 0x62e   : > { %v2908_v57 = vpop.eup %2907  ;;  %v1556_v36 = vadd.f32 1.0, %v2906_v30 }
 0x62f   : > { %v2910_v25 = vpop.eup %2909  ;;  %v1557_v9 = vadd.f32 1.0, %v2908_v57  ;;  %v1559_v42 = vmul.f32 %v1555_v19, %v1527_v16 }
 0x630   : > { %v1558_v51 = vadd.f32 1.0, %v2910_v25  ;;  %v1560_v14 = vmul.f32 %v1556_v36, %v1528_v22 }
 0x631   : > { %v1561_v61 = vmul.f32 %v1557_v9, %v1529_v31  ;;  %v2449_v34 = vmul.f32 %v2447_v33, %v1559_v42 }
 0x632   : > { %v1562_v41 = vmul.f32 %v1558_v51, %v1530_v21  ;;  %v2450_v32 = vmul.f32 %v2447_v33, %v1560_v14 }
 0x633   : > { %v2451_v8 = vmul.f32 %v2447_v33, %v1561_v61 }
 0x634   : > { %v2452_v46 = vmul.f32 %v2447_v33, %v1562_v41 }
 0x6e6   : > { %v2434_v53 = vpop.f32.mrb[32].mxu1 }
 0x6e7   : > { %v2435_v10 = vadd.f32 %v2434_v53, %v2355_v12  ;;  %v2436_v26 = vpop.f32.mrb[33].mxu1 }
 0x6e8   : > { %v2437_v49 = vadd.f32 %v2436_v26, %v2355_v12 }
 0x6e9   : > { %v2457_v40 = vmul.f32 %v2455_v27, %v2435_v10 }
 0x6ea   : > { %v2458_v20 = vmul.f32 %v2455_v27, %v2437_v49  ;;  %v2440_v63 = vpop.f32.mrb[34].mxu1 }
 0x6eb   : > { %v2461_v17 = vadd.f32 %v2457_v40, %v2449_v34  ;;  %v2441_v7 = vadd.f32 %v2440_v63, %v2360_v15  ;;  %v2442_v23 = vpop.f32.mrb[35].mxu1 }
 0x6ec   : > { %v2462_v56 = vadd.f32 %v2458_v20, %v2450_v32  ;;  %v2443_v39 = vadd.f32 %v2442_v23, %v2360_v15 }
 0x6ed   : > { %2465 = vst [vmem:[%s148_s6] sm:$0xff] %v2461_v17  ;;  %v2459_v59 = vmul.f32 %v2455_v27, %v2441_v7 }
 0x6ee   : > { %2466 = vst [vmem:[%s148_s6 + $0x8] sm:$0xff] %v2462_v56  ;;  %v2460_v50 = vmul.f32 %v2455_v27, %v2443_v39 }
 0x6ef   : > { %v2463_v3 = vadd.f32 %v2459_v59, %v2451_v8 }
 0x6f0   : > { %v2464_v37 = vadd.f32 %v2460_v50, %v2452_v46 }
 0x6f1   : > { %2467 = vst [vmem:[%s148_s6 + $0x10] sm:$0xff] %v2463_v3 }
 0x6f2   : > { %2468 = vst [vmem:[%s148_s6 + $0x18] sm:$0xff] %v2464_v37 }
 0x6f3   : > { %2930 = shalt.err (!%p2927_p2)
}
 0x6f4   : > { %s2931_s19 = scalar_lea.hbm %s4794_s25, 512  ;;  %s2935_s27 = scalar_lea.hbm %s4845_s3, 1024 }
 0x6f5   : > { %p2932_p3 = scmp.ne.s32.totalorder %s4794_s25, %s2931_s19  ;;  %p2936_p8 = scmp.lt.u32.totalorder %s4794_s25, %s4845_s3 }
 0x6f6   : > { %p2937_p9 = scmp.lt.u32.totalorder %s2935_s27, %s2931_s19  ;;  %p2939_p11 = scmp.lt.u32.totalorder %s2931_s19, %s4794_s25 }
 0x6f7   : > { %p2933_p4 = pnand %p2932_p3, %p3103_p5 }
 0x6f8   : > { %p2938_p10 = por %p2937_p9, %p2936_p8 }
 0x6f9   : > { %p2934_p7 = pneg %p2933_p4 }
 0x6fa   : > { %p2940_p12 = por %p2939_p11, %p2938_p10 }
 0x6fc   : > { %p2941_p13 = pnand %p2940_p12, %p2934_p7 }
 0x6fe   : > { %2944 = shalt.err (!%p2941_p13)
}
 0x6ff   : > { %s3044_s4 = smov 256  }
 0x700   : > { %2686 = dma.vmem_to_hbm [thread:$0]  (%p3103_p5), %s4796_s29, 512, %s4794_s25, %s4800_s16, %s3044_s4, %s3044_s4, %s3038_s26  }
 0x701 PF: > { %p2692_p0 = scmp.ge.s32.totalorder %s2979_s15, 2  ;;  %s2498_s5 = sand.u32 1, %s2967_s12  }
 0x702   : > { %s2499_s6 = scalar_lea.sflag [#allocation3], %s2498_s5 }
 0x703   : > { %p2689_p1 = pnand %p2692_p0, %p3107_p6 }
 0x705   : > { %2962 = dma.done.wait (!%p2689_p1), %s2499_s6, 512  }
 0x706   : > { %2964 = vsyncadd (!%p2689_p1), %s2499_s6, 4294966784  ;;  %p13_p2 = scmp.ge.s32.totalorder %s3090_s18, 4   ;;  %s5092_s12 = smov %s2971_s13 }
 0x707   : > { %s5093_s13 = smov %s2975_s14  ;;  %s5094_s14 = smov %s3101_s21 }
 0x708   : > { %s5095_s15 = smov %s3090_s18  ;;  %15 = sbr.rel (!%p13_p2) target bundleno = 3 (0x3), region = 68 }
 0x70f   :  { %2504 = vsyncpa [#allocation3], 1 }
 0x710   :  { %2506 = vsyncpa [#allocation3 + $0x1], 1 }

</bundles_post_ra>
